<compile_context>
chip_gen: v7x
topology: tpu7x:2x2x1
jax: 0.10.0
libtpu: 0.0.40
codegen_flags: <defaults>
</compile_context>

<pallas_src>
import numpy as np
import jax
import jax.numpy as jnp
from jax.experimental import pallas as pl
from jax.experimental.pallas import tpu as pltpu

KSIZE = 7
PAD = 3


def _round_up(x, m):
    return ((x + m - 1) // m) * m


def _make_cbam_kernel(NB, C, H, W, HW, HW_pad, HWP):
    inv_hw = 1.0 / float(HW)
    inv_c = 1.0 / float(C)

    def kernel(x_ref, w1t_ref, w2t_ref, wsa_ref, o_ref, out1_ref, rows_ref):
        # out1_ref: (NB, C, HW_pad) f32 scratch holding CA(x) * x.
        # rows_ref: (2*NB, HWP) f32 scratch; rows [0,NB) channel-mean maps,
        #           rows [NB,2NB) channel-max maps, lanes [HW_pad,HWP) zero halo.

        # ---------- Phase 1: channel attention, batched over the block ----------
        x_blk = x_ref[...].astype(jnp.float32)                       # (NB,C,HWp)
        avg_p = jnp.sum(x_blk, axis=2) * inv_hw                      # (NB,C)
        if HW_pad != HW:
            lane = jax.lax.broadcasted_iota(jnp.int32, (1, 1, HW_pad), 2)
            max_p = jnp.max(jnp.where(lane < HW, x_blk, -jnp.inf), axis=2)
        else:
            max_p = jnp.max(x_blk, axis=2)                           # (NB,C)

        pooled = jnp.concatenate([avg_p, max_p], axis=0)             # (2NB,C)
        h = jnp.dot(pooled, w1t_ref[...],
                    preferred_element_type=jnp.float32)              # (2NB,Cr)
        h = jnp.where(h >= 0.0, h, 0.01 * h)                         # LeakyReLU
        z = jnp.dot(h, w2t_ref[...],
                    preferred_element_type=jnp.float32)              # (2NB,C)
        ca = jax.nn.sigmoid(z[0:NB] + z[NB:2 * NB])                  # (NB,C)

        out1 = x_blk * ca[:, :, None]                                # (NB,C,HWp)
        out1_ref[...] = out1

        # Channel-wise mean/max maps.  Padded lanes [HW, HW_pad) of out1 are
        # exactly 0 (x is zero-padded there), so they extend the zero halo.
        rows_ref[0:NB, 0:HW_pad] = jnp.sum(out1, axis=1) * inv_c
        rows_ref[NB:2 * NB, 0:HW_pad] = jnp.max(out1, axis=1)
        if HWP > HW_pad:
            rows_ref[:, HW_pad:HWP] = jnp.zeros((2 * NB, HWP - HW_pad),
                                                jnp.float32)

        # ------- Phase 2: 7x7 conv on all 2*NB maps at once (flat domain) -------
        # out[y,x] = sum_{ky,kx} w[c,ky,kx] * img[y+ky-3, x+kx-3] (zero padded).
        # Flat index p = y*W + x; a (dy,dx) tap is a circular lane shift by
        # dy*W + dx on the zero-haloed slab, masked where x+dx leaves [0, W).
        slab = rows_ref[...]                                         # (2NB,HWP)
        xpos = jax.lax.broadcasted_iota(jnp.int32, (1, HWP), 1) % W
        row = jax.lax.broadcasted_iota(jnp.int32, (2 * NB, 1), 0)
        is_avg_row = row < NB                                        # (2NB,1)

        acc = jnp.zeros((2 * NB, HWP), jnp.float32)
        for kx in range(KSIZE):
            dx = kx - PAD
            acc_kx = jnp.zeros((2 * NB, HWP), jnp.float32)
            for ky in range(KSIZE):
                dy = ky - PAD
                shift = (-(dy * W + dx)) % HWP
                shifted = slab if shift == 0 else pltpu.roll(slab, shift, axis=1)
                w_avg = wsa_ref[ky * KSIZE + kx]                     # scalar SMEM
                w_max = wsa_ref[KSIZE * KSIZE + ky * KSIZE + kx]
                wcol = jnp.where(is_avg_row, w_avg, w_max)           # (2NB,1)
                acc_kx = acc_kx + wcol * shifted
            if dx != 0:   # x-boundary mask hoisted out of the ky loop
                maskf = jnp.where((xpos + dx >= 0) & (xpos + dx < W), 1.0, 0.0)
                acc_kx = acc_kx * maskf
            acc = acc + acc_kx

        # -------- Phase 3: apply spatial attention (NoActivate: no sigmoid) -----
        for b in range(NB):
            sa_b = acc[b:b + 1, 0:HW_pad] + acc[NB + b:NB + b + 1, 0:HW_pad]
            o_ref[b] = (out1_ref[b] * sa_b).astype(o_ref.dtype)

    return kernel


def cbam_no_activate(x, w_fc1, w_fc2, w_sa, *, nb_max=32):
    """x: (N, C, H, W); w_fc1: (C//16, C); w_fc2: (C, C//16); w_sa: (2, 7, 7)."""
    N, C, H, W = x.shape
    Cr = w_fc1.shape[0]
    HW = H * W
    HW_pad = _round_up(HW, 128)                     # lane-dense working width
    # Flat slab width: image (+ lane padding) in [0, HW_pad), zero halo in
    # [HW_pad, HWP) big enough that circular rolls (|shift| <= PAD*W+PAD)
    # never alias image data.
    HWP = max(_round_up(HW + (PAD * W + PAD), 128), HW_pad)

    dt_bytes = jnp.dtype(x.dtype).itemsize

    # VMEM budget: conservative on v7x (64 MiB physical), generous on v5e/v6e.
    try:
        vmem_phys = int(pltpu.get_tpu_info().vmem_capacity_bytes)
    except Exception:
        vmem_phys = 64 * 1024 * 1024
    vmem_limit = max(32 * 1024 * 1024,
                     min(vmem_phys * 3 // 4, 100 * 1024 * 1024))
    budget = vmem_limit // 2

    def footprint(nb):
        return (4 * nb * C * HW_pad * dt_bytes      # double-buffered in + out
                + nb * C * HW_pad * 4               # out1 f32 scratch
                + 2 * nb * HWP * 4)                 # conv slab scratch

    # Register-pressure cap for the in-register conv (slab/shifted/acc live).
    nb_vreg_cap = max(1, (20 * 1024) // (2 * HWP))

    nb = 1
    for cand in range(1, min(N, nb_max) + 1):
        if cand > nb_vreg_cap:
            break
        if footprint(cand) <= budget:
            nb = cand
    if N >= 2:                  # keep >= 2 grid steps (v7x dual-TC, pipelining)
        nb = min(nb, -(-N // 2))
    n_steps = -(-N // nb)
    N_pad = n_steps * nb        # pad batch instead of requiring a divisor

    x_flat = x.reshape(N, C, HW)
    if HW_pad != HW:
        x_flat = jnp.pad(x_flat, ((0, 0), (0, 0), (0, HW_pad - HW)))
    if N_pad != N:
        x_flat = jnp.pad(x_flat, ((0, N_pad - N), (0, 0), (0, 0)))

    w1t = jnp.asarray(w_fc1, jnp.float32).T            # (C, Cr)
    w2t = jnp.asarray(w_fc2, jnp.float32).T            # (Cr, C)
    w_sa_flat = jnp.asarray(w_sa, jnp.float32).reshape(-1)   # 2*49 scalars

    kernel = _make_cbam_kernel(nb, C, H, W, HW, HW_pad, HWP)

    flops = int(N_pad * (6 * C * HW + 4 * KSIZE * KSIZE * HW + 8 * Cr * C))
    bytes_accessed = int(dt_bytes * 2 * N_pad * C * HW_pad
                         + 4 * (2 * Cr * C + 2 * KSIZE * KSIZE))

    out_flat = pl.pallas_call(
        kernel,
        out_shape=jax.ShapeDtypeStruct((N_pad, C, HW_pad), x.dtype),
        grid_spec=pltpu.PrefetchScalarGridSpec(
            num_scalar_prefetch=0,
            grid=(n_steps,),
            in_specs=[
                pl.BlockSpec((nb, C, HW_pad), lambda n: (n, 0, 0)),
                pl.BlockSpec((C, Cr), lambda n: (0, 0)),
                pl.BlockSpec((Cr, C), lambda n: (0, 0)),
                pl.BlockSpec(memory_space=pltpu.MemorySpace.SMEM),
            ],
            out_specs=pl.BlockSpec((nb, C, HW_pad), lambda n: (n, 0, 0)),
            scratch_shapes=[
                pltpu.VMEM((nb, C, HW_pad), jnp.float32),   # CA*x (f32)
                pltpu.VMEM((2 * nb, HWP), jnp.float32),     # haloed conv slab
            ],
        ),
        compiler_params=pltpu.CompilerParams(
            dimension_semantics=("parallel",),
            vmem_limit_bytes=int(vmem_limit),
        ),
        cost_estimate=pl.CostEstimate(
            flops=flops,
            transcendentals=int(N_pad * C),
            bytes_accessed=bytes_accessed,
        ),
    )(x_flat, w1t, w2t, w_sa_flat)

    out = out_flat
    if N_pad != N:
        out = out[:N]
    if HW_pad != HW:
        out = out[:, :, :HW]
    return out.reshape(N, C, H, W)


def cbam_reference(x, w_fc1, w_fc2, w_sa):
    """Pure-JAX reference matching the PyTorch module semantics."""
    avg_p = jnp.mean(x, axis=(2, 3))                       # (N, C)
    max_p = jnp.max(x, axis=(2, 3))                        # (N, C)

    def mlp(p):
        h = p @ w_fc1.T
        h = jnp.where(h >= 0.0, h, 0.01 * h)
        return h @ w_fc2.T

    ca = jax.nn.sigmoid(mlp(avg_p) + mlp(max_p))           # (N, C)
    out1 = x * ca[:, :, None, None]

    avg_s = jnp.mean(out1, axis=1, keepdims=True)
    max_s = jnp.max(out1, axis=1, keepdims=True)
    cat = jnp.concatenate([avg_s, max_s], axis=1)          # (N, 2, H, W)
    sa = jax.lax.conv_general_dilated(
        cat, w_sa[None], window_strides=(1, 1),
        padding=((PAD, PAD), (PAD, PAD)),
        dimension_numbers=("NCHW", "OIHW", "NCHW"))        # (N, 1, H, W)
    return sa * out1


if __name__ == "__main__":
    N, C, H, W = 2, 32, 16, 16      # C must be >= 16 (module uses C // 16)
    Cr = C // 16

    key = jax.random.PRNGKey(0)
    k1, k2, k3, k4 = jax.random.split(key, 4)
    x = jax.random.normal(k1, (N, C, H, W), jnp.float32)
    # synthetic weights (1x1 conv weights squeezed to 2-D, 7x7 weight to (2,7,7))
    w_fc1 = 0.1 * jax.random.normal(k2, (Cr, C), jnp.float32)
    w_fc2 = 0.1 * jax.random.normal(k3, (C, Cr), jnp.float32)
    w_sa = 0.1 * jax.random.normal(k4, (2, KSIZE, KSIZE), jnp.float32)

    out = jax.block_until_ready(cbam_no_activate(x, w_fc1, w_fc2, w_sa))

    ref = cbam_reference(x, w_fc1, w_fc2, w_sa)
    np.testing.assert_allclose(np.asarray(out), np.asarray(ref),
                               rtol=2e-3, atol=2e-3)

    print("KERNEL_OK")
</pallas_src>

<mosaic_0001>
module attributes {stable_mosaic.version = 11 : i64} {
  func.func @kernel(%arg0: i32, %arg1: memref<1x32x256xf32, #tpu.memory_space<vmem>>, %arg2: memref<32x2xf32, #tpu.memory_space<vmem>>, %arg3: memref<2x32xf32, #tpu.memory_space<vmem>>, %arg4: memref<98xf32, #tpu.memory_space<smem>>, %arg5: memref<1x32x256xf32, #tpu.memory_space<vmem>>, %arg6: memref<1x32x256xf32, #tpu.memory_space<vmem>>, %arg7: memref<2x384xf32, #tpu.memory_space<vmem>>) attributes {dimension_semantics = [#tpu.dimension_semantics<parallel>], iteration_bounds = array<i64: 2>, scalar_prefetch = 0 : i64, scratch_operands = 2 : i64, tpu.core_type = #tpu.core_type<tc>, window_params = [{transform_indices = @transform_0, window_bounds = array<i64: 1, 32, 256>}, {pipeline_mode = #tpu.pipeline_mode<synchronous>, transform_indices = @transform_1, window_bounds = array<i64: 32, 2>}, {pipeline_mode = #tpu.pipeline_mode<synchronous>, transform_indices = @transform_2, window_bounds = array<i64: 2, 32>}, {transform_indices = @transform_3, window_bounds = array<i64: 98>}, {transform_indices = @transform_4, window_bounds = array<i64: 1, 32, 256>}]} {
    %c0 = arith.constant 0 : index
    %c0_0 = arith.constant 0 : index
    %c0_1 = arith.constant 0 : index
    %0 = vector.load %arg1[%c0, %c0_0, %c0_1] : memref<1x32x256xf32, #tpu.memory_space<vmem>>, vector<1x32x256xf32>
    %cst = arith.constant dense<0.000000e+00> : vector<1x32xf32>
    %1 = vector.multi_reduction <add>, %0, %cst [2] : vector<1x32x256xf32> to vector<1x32xf32>
    %cst_2 = arith.constant 3.906250e-03 : f32
    %2 = vector.broadcast %cst_2 : f32 to vector<1x32xf32>
    %3 = arith.mulf %1, %2 : vector<1x32xf32>
    %cst_3 = arith.constant dense<0xFF800000> : vector<1x32xf32>
    %4 = vector.multi_reduction <maximumf>, %0, %cst_3 [2] : vector<1x32x256xf32> to vector<1x32xf32>
    %5 = tpu.concatenate %3, %4 in 0 : vector<1x32xf32>, vector<1x32xf32> -> vector<2x32xf32>
    %c0_4 = arith.constant 0 : index
    %c0_5 = arith.constant 0 : index
    %6 = vector.load %arg2[%c0_4, %c0_5] : memref<32x2xf32, #tpu.memory_space<vmem>>, vector<32x2xf32>
    %cst_6 = arith.constant dense<0.000000e+00> : vector<2x2xf32>
    %7 = tpu.matmul %5, %6, %cst_6 {dimension_numbers = #tpu.dot_dimension_numbers<[1], [0], [0], [1], [0, 0, 1, 1], [], []>} : vector<2x32xf32>, vector<32x2xf32>, vector<2x2xf32> -> vector<2x2xf32>
    %cst_7 = arith.constant 0.000000e+00 : f32
    %8 = vector.broadcast %cst_7 : f32 to vector<2x2xf32>
    %9 = arith.cmpf oge, %7, %8 : vector<2x2xf32>
    %cst_8 = arith.constant 0.00999999977 : f32
    %10 = vector.broadcast %cst_8 : f32 to vector<2x2xf32>
    %11 = arith.mulf %10, %7 : vector<2x2xf32>
    %12 = arith.select %9, %7, %11 : vector<2x2xi1>, vector<2x2xf32>
    %c0_9 = arith.constant 0 : index
    %c0_10 = arith.constant 0 : index
    %13 = vector.load %arg3[%c0_9, %c0_10] : memref<2x32xf32, #tpu.memory_space<vmem>>, vector<2x32xf32>
    %cst_11 = arith.constant dense<0.000000e+00> : vector<2x32xf32>
    %14 = tpu.matmul %12, %13, %cst_11 {dimension_numbers = #tpu.dot_dimension_numbers<[1], [0], [0], [1], [0, 0, 1, 1], [], []>} : vector<2x2xf32>, vector<2x32xf32>, vector<2x32xf32> -> vector<2x32xf32>
    %15 = vector.extract_strided_slice %14 {offsets = [0, 0], sizes = [1, 32], strides = [1, 1]} : vector<2x32xf32> to vector<1x32xf32>
    %16 = vector.extract_strided_slice %14 {offsets = [1, 0], sizes = [1, 32], strides = [1, 1]} : vector<2x32xf32> to vector<1x32xf32>
    %17 = arith.addf %15, %16 : vector<1x32xf32>
    %18 = arith.negf %17 : vector<1x32xf32>
    %19 = math.exp %18 : vector<1x32xf32>
    %cst_12 = arith.constant 1.000000e+00 : f32
    %20 = vector.broadcast %cst_12 : f32 to vector<1x32xf32>
    %21 = arith.addf %20, %19 : vector<1x32xf32>
    %22 = arith.divf %20, %21 : vector<1x32xf32>
    %23 = vector.shape_cast %22 : vector<1x32xf32> to vector<1x32x1xf32>
    %24 = vector.broadcast %23 : vector<1x32x1xf32> to vector<1x32x256xf32>
    %25 = arith.mulf %0, %24 : vector<1x32x256xf32>
    %c0_13 = arith.constant 0 : index
    %c0_14 = arith.constant 0 : index
    %c0_15 = arith.constant 0 : index
    %26 = vector.load %arg6[%c0_13, %c0_14, %c0_15] : memref<1x32x256xf32, #tpu.memory_space<vmem>>, vector<1x32x256xf32>
    tpu.vector_store %arg6[%c0_13, %c0_14, %c0_15], %25 {strides = array<i32>} : memref<1x32x256xf32, #tpu.memory_space<vmem>>, vector<1x32x256xf32>,
    %cst_16 = arith.constant dense<0.000000e+00> : vector<1x256xf32>
    %27 = vector.multi_reduction <add>, %25, %cst_16 [1] : vector<1x32x256xf32> to vector<1x256xf32>
    %cst_17 = arith.constant 3.125000e-02 : f32
    %28 = vector.broadcast %cst_17 : f32 to vector<1x256xf32>
    %29 = arith.mulf %27, %28 : vector<1x256xf32>
    %c0_18 = arith.constant 0 : index
    %c0_19 = arith.constant 0 : index
    %30 = vector.load %arg7[%c0_18, %c0_19] : memref<2x384xf32, #tpu.memory_space<vmem>>, vector<1x256xf32>
    tpu.vector_store %arg7[%c0_18, %c0_19], %29 {strides = array<i32>} : memref<2x384xf32, #tpu.memory_space<vmem>>, vector<1x256xf32>,
    %cst_20 = arith.constant dense<0xFF800000> : vector<1x256xf32>
    %31 = vector.multi_reduction <maximumf>, %25, %cst_20 [1] : vector<1x32x256xf32> to vector<1x256xf32>
    %c1 = arith.constant 1 : index
    %c0_21 = arith.constant 0 : index
    %32 = vector.load %arg7[%c1, %c0_21] : memref<2x384xf32, #tpu.memory_space<vmem>>, vector<1x256xf32>
    tpu.vector_store %arg7[%c1, %c0_21], %31 {strides = array<i32>} : memref<2x384xf32, #tpu.memory_space<vmem>>, vector<1x256xf32>,
    %cst_22 = arith.constant 0.000000e+00 : f32
    %33 = vector.broadcast %cst_22 : f32 to vector<2x128xf32>
    %c0_23 = arith.constant 0 : index
    %c256 = arith.constant 256 : index
    %34 = vector.load %arg7[%c0_23, %c256] : memref<2x384xf32, #tpu.memory_space<vmem>>, vector<2x128xf32>
    tpu.vector_store %arg7[%c0_23, %c256], %33 {strides = array<i32>} : memref<2x384xf32, #tpu.memory_space<vmem>>, vector<2x128xf32>,
    %c0_24 = arith.constant 0 : index
    %c0_25 = arith.constant 0 : index
    %35 = vector.load %arg7[%c0_24, %c0_25] : memref<2x384xf32, #tpu.memory_space<vmem>>, vector<2x384xf32>
    %36 = tpu.iota {dimensions = array<i32: 1>} : vector<1x384xi32>
    %c16_i32 = arith.constant 16 : i32
    %c0_i32 = arith.constant 0 : i32
    %37 = arith.cmpi eq, %c16_i32, %c0_i32 : i32
    %c1_i32 = arith.constant 1 : i32
    %38 = arith.select %37, %c1_i32, %c16_i32 : i32
    %39 = vector.broadcast %38 : i32 to vector<1x384xi32>
    %40 = arith.remsi %36, %39 : vector<1x384xi32>
    %c0_i32_26 = arith.constant 0 : i32
    %41 = vector.broadcast %c0_i32_26 : i32 to vector<1x384xi32>
    %42 = arith.cmpi ne, %40, %41 : vector<1x384xi32>
    %c0_i32_27 = arith.constant 0 : i32
    %43 = vector.broadcast %c0_i32_27 : i32 to vector<1x384xi32>
    %44 = arith.cmpi slt, %40, %43 : vector<1x384xi32>
    %c0_i32_28 = arith.constant 0 : i32
    %45 = arith.cmpi slt, %38, %c0_i32_28 : i32
    %46 = vector.broadcast %45 : i1 to vector<1x384xi1>
    %47 = vector.broadcast %46 : vector<1x384xi1> to vector<1x384xi1>
    %48 = arith.xori %44, %47 : vector<1x384xi1>
    %49 = arith.andi %48, %42 : vector<1x384xi1>
    %50 = vector.broadcast %38 : i32 to vector<1x384xi32>
    %51 = arith.addi %40, %50 : vector<1x384xi32>
    %52 = arith.select %49, %51, %40 : vector<1x384xi1>, vector<1x384xi32>
    %53 = tpu.iota {dimensions = array<i32: 0>} : vector<2x1xi32>
    %c1_i32_29 = arith.constant 1 : i32
    %54 = vector.broadcast %c1_i32_29 : i32 to vector<2x1xi32>
    %55 = arith.cmpi slt, %53, %54 : vector<2x1xi32>
    %cst_30 = arith.constant 0.000000e+00 : f32
    %56 = vector.broadcast %cst_30 : f32 to vector<2x384xf32>
    %cst_31 = arith.constant 0.000000e+00 : f32
    %57 = vector.broadcast %cst_31 : f32 to vector<2x384xf32>
    %c51_i32 = arith.constant 51 : i32
    %58 = tpu.dynamic_rotate %35 by %c51_i32 dim 1 : vector<2x384xf32>, i32 -> vector<2x384xf32>
    %c0_32 = arith.constant 0 : index
    %59 = memref.load %arg4[%c0_32] : memref<98xf32, #tpu.memory_space<smem>>
    %c49 = arith.constant 49 : index
    %60 = memref.load %arg4[%c49] : memref<98xf32, #tpu.memory_space<smem>>
    %61 = vector.broadcast %59 : f32 to vector<2x1xf32>
    %62 = vector.broadcast %60 : f32 to vector<2x1xf32>
    %63 = arith.select %55, %61, %62 : vector<2x1xi1>, vector<2x1xf32>
    %64 = vector.broadcast %63 : vector<2x1xf32> to vector<2x384xf32>
    %65 = arith.mulf %64, %58 : vector<2x384xf32>
    %66 = arith.addf %57, %65 : vector<2x384xf32>
    %c35_i32 = arith.constant 35 : i32
    %67 = tpu.dynamic_rotate %35 by %c35_i32 dim 1 : vector<2x384xf32>, i32 -> vector<2x384xf32>
    %c7 = arith.constant 7 : index
    %68 = memref.load %arg4[%c7] : memref<98xf32, #tpu.memory_space<smem>>
    %c56 = arith.constant 56 : index
    %69 = memref.load %arg4[%c56] : memref<98xf32, #tpu.memory_space<smem>>
    %70 = vector.broadcast %68 : f32 to vector<2x1xf32>
    %71 = vector.broadcast %69 : f32 to vector<2x1xf32>
    %72 = arith.select %55, %70, %71 : vector<2x1xi1>, vector<2x1xf32>
    %73 = vector.broadcast %72 : vector<2x1xf32> to vector<2x384xf32>
    %74 = arith.mulf %73, %67 : vector<2x384xf32>
    %75 = arith.addf %66, %74 : vector<2x384xf32>
    %c19_i32 = arith.constant 19 : i32
    %76 = tpu.dynamic_rotate %35 by %c19_i32 dim 1 : vector<2x384xf32>, i32 -> vector<2x384xf32>
    %c14 = arith.constant 14 : index
    %77 = memref.load %arg4[%c14] : memref<98xf32, #tpu.memory_space<smem>>
    %c63 = arith.constant 63 : index
    %78 = memref.load %arg4[%c63] : memref<98xf32, #tpu.memory_space<smem>>
    %79 = vector.broadcast %77 : f32 to vector<2x1xf32>
    %80 = vector.broadcast %78 : f32 to vector<2x1xf32>
    %81 = arith.select %55, %79, %80 : vector<2x1xi1>, vector<2x1xf32>
    %82 = vector.broadcast %81 : vector<2x1xf32> to vector<2x384xf32>
    %83 = arith.mulf %82, %76 : vector<2x384xf32>
    %84 = arith.addf %75, %83 : vector<2x384xf32>
    %c3_i32 = arith.constant 3 : i32
    %85 = tpu.dynamic_rotate %35 by %c3_i32 dim 1 : vector<2x384xf32>, i32 -> vector<2x384xf32>
    %c21 = arith.constant 21 : index
    %86 = memref.load %arg4[%c21] : memref<98xf32, #tpu.memory_space<smem>>
    %c70 = arith.constant 70 : index
    %87 = memref.load %arg4[%c70] : memref<98xf32, #tpu.memory_space<smem>>
    %88 = vector.broadcast %86 : f32 to vector<2x1xf32>
    %89 = vector.broadcast %87 : f32 to vector<2x1xf32>
    %90 = arith.select %55, %88, %89 : vector<2x1xi1>, vector<2x1xf32>
    %91 = vector.broadcast %90 : vector<2x1xf32> to vector<2x384xf32>
    %92 = arith.mulf %91, %85 : vector<2x384xf32>
    %93 = arith.addf %84, %92 : vector<2x384xf32>
    %c371_i32 = arith.constant 371 : i32
    %94 = tpu.dynamic_rotate %35 by %c371_i32 dim 1 : vector<2x384xf32>, i32 -> vector<2x384xf32>
    %c28 = arith.constant 28 : index
    %95 = memref.load %arg4[%c28] : memref<98xf32, #tpu.memory_space<smem>>
    %c77 = arith.constant 77 : index
    %96 = memref.load %arg4[%c77] : memref<98xf32, #tpu.memory_space<smem>>
    %97 = vector.broadcast %95 : f32 to vector<2x1xf32>
    %98 = vector.broadcast %96 : f32 to vector<2x1xf32>
    %99 = arith.select %55, %97, %98 : vector<2x1xi1>, vector<2x1xf32>
    %100 = vector.broadcast %99 : vector<2x1xf32> to vector<2x384xf32>
    %101 = arith.mulf %100, %94 : vector<2x384xf32>
    %102 = arith.addf %93, %101 : vector<2x384xf32>
    %c355_i32 = arith.constant 355 : i32
    %103 = tpu.dynamic_rotate %35 by %c355_i32 dim 1 : vector<2x384xf32>, i32 -> vector<2x384xf32>
    %c35 = arith.constant 35 : index
    %104 = memref.load %arg4[%c35] : memref<98xf32, #tpu.memory_space<smem>>
    %c84 = arith.constant 84 : index
    %105 = memref.load %arg4[%c84] : memref<98xf32, #tpu.memory_space<smem>>
    %106 = vector.broadcast %104 : f32 to vector<2x1xf32>
    %107 = vector.broadcast %105 : f32 to vector<2x1xf32>
    %108 = arith.select %55, %106, %107 : vector<2x1xi1>, vector<2x1xf32>
    %109 = vector.broadcast %108 : vector<2x1xf32> to vector<2x384xf32>
    %110 = arith.mulf %109, %103 : vector<2x384xf32>
    %111 = arith.addf %102, %110 : vector<2x384xf32>
    %c339_i32 = arith.constant 339 : i32
    %112 = tpu.dynamic_rotate %35 by %c339_i32 dim 1 : vector<2x384xf32>, i32 -> vector<2x384xf32>
    %c42 = arith.constant 42 : index
    %113 = memref.load %arg4[%c42] : memref<98xf32, #tpu.memory_space<smem>>
    %c91 = arith.constant 91 : index
    %114 = memref.load %arg4[%c91] : memref<98xf32, #tpu.memory_space<smem>>
    %115 = vector.broadcast %113 : f32 to vector<2x1xf32>
    %116 = vector.broadcast %114 : f32 to vector<2x1xf32>
    %117 = arith.select %55, %115, %116 : vector<2x1xi1>, vector<2x1xf32>
    %118 = vector.broadcast %117 : vector<2x1xf32> to vector<2x384xf32>
    %119 = arith.mulf %118, %112 : vector<2x384xf32>
    %120 = arith.addf %111, %119 : vector<2x384xf32>
    %c-3_i32 = arith.constant -3 : i32
    %121 = vector.broadcast %c-3_i32 : i32 to vector<1x384xi32>
    %122 = arith.addi %52, %121 : vector<1x384xi32>
    %c0_i32_33 = arith.constant 0 : i32
    %123 = vector.broadcast %c0_i32_33 : i32 to vector<1x384xi32>
    %124 = arith.cmpi sge, %122, %123 : vector<1x384xi32>
    %c-3_i32_34 = arith.constant -3 : i32
    %125 = vector.broadcast %c-3_i32_34 : i32 to vector<1x384xi32>
    %126 = arith.addi %52, %125 : vector<1x384xi32>
    %c16_i32_35 = arith.constant 16 : i32
    %127 = vector.broadcast %c16_i32_35 : i32 to vector<1x384xi32>
    %128 = arith.cmpi slt, %126, %127 : vector<1x384xi32>
    %129 = arith.andi %124, %128 : vector<1x384xi1>
    %cst_36 = arith.constant 1.000000e+00 : f32
    %cst_37 = arith.constant 0.000000e+00 : f32
    %130 = vector.broadcast %cst_36 : f32 to vector<1x384xf32>
    %131 = vector.broadcast %cst_37 : f32 to vector<1x384xf32>
    %132 = arith.select %129, %130, %131 : vector<1x384xi1>, vector<1x384xf32>
    %133 = vector.broadcast %132 : vector<1x384xf32> to vector<2x384xf32>
    %134 = arith.mulf %120, %133 : vector<2x384xf32>
    %135 = arith.addf %56, %134 : vector<2x384xf32>
    %cst_38 = arith.constant 0.000000e+00 : f32
    %136 = vector.broadcast %cst_38 : f32 to vector<2x384xf32>
    %c50_i32 = arith.constant 50 : i32
    %137 = tpu.dynamic_rotate %35 by %c50_i32 dim 1 : vector<2x384xf32>, i32 -> vector<2x384xf32>
    %c1_39 = arith.constant 1 : index
    %138 = memref.load %arg4[%c1_39] : memref<98xf32, #tpu.memory_space<smem>>
    %c50 = arith.constant 50 : index
    %139 = memref.load %arg4[%c50] : memref<98xf32, #tpu.memory_space<smem>>
    %140 = vector.broadcast %138 : f32 to vector<2x1xf32>
    %141 = vector.broadcast %139 : f32 to vector<2x1xf32>
    %142 = arith.select %55, %140, %141 : vector<2x1xi1>, vector<2x1xf32>
    %143 = vector.broadcast %142 : vector<2x1xf32> to vector<2x384xf32>
    %144 = arith.mulf %143, %137 : vector<2x384xf32>
    %145 = arith.addf %136, %144 : vector<2x384xf32>
    %c34_i32 = arith.constant 34 : i32
    %146 = tpu.dynamic_rotate %35 by %c34_i32 dim 1 : vector<2x384xf32>, i32 -> vector<2x384xf32>
    %c8 = arith.constant 8 : index
    %147 = memref.load %arg4[%c8] : memref<98xf32, #tpu.memory_space<smem>>
    %c57 = arith.constant 57 : index
    %148 = memref.load %arg4[%c57] : memref<98xf32, #tpu.memory_space<smem>>
    %149 = vector.broadcast %147 : f32 to vector<2x1xf32>
    %150 = vector.broadcast %148 : f32 to vector<2x1xf32>
    %151 = arith.select %55, %149, %150 : vector<2x1xi1>, vector<2x1xf32>
    %152 = vector.broadcast %151 : vector<2x1xf32> to vector<2x384xf32>
    %153 = arith.mulf %152, %146 : vector<2x384xf32>
    %154 = arith.addf %145, %153 : vector<2x384xf32>
    %c18_i32 = arith.constant 18 : i32
    %155 = tpu.dynamic_rotate %35 by %c18_i32 dim 1 : vector<2x384xf32>, i32 -> vector<2x384xf32>
    %c15 = arith.constant 15 : index
    %156 = memref.load %arg4[%c15] : memref<98xf32, #tpu.memory_space<smem>>
    %c64 = arith.constant 64 : index
    %157 = memref.load %arg4[%c64] : memref<98xf32, #tpu.memory_space<smem>>
    %158 = vector.broadcast %156 : f32 to vector<2x1xf32>
    %159 = vector.broadcast %157 : f32 to vector<2x1xf32>
    %160 = arith.select %55, %158, %159 : vector<2x1xi1>, vector<2x1xf32>
    %161 = vector.broadcast %160 : vector<2x1xf32> to vector<2x384xf32>
    %162 = arith.mulf %161, %155 : vector<2x384xf32>
    %163 = arith.addf %154, %162 : vector<2x384xf32>
    %c2_i32 = arith.constant 2 : i32
    %164 = tpu.dynamic_rotate %35 by %c2_i32 dim 1 : vector<2x384xf32>, i32 -> vector<2x384xf32>
    %c22 = arith.constant 22 : index
    %165 = memref.load %arg4[%c22] : memref<98xf32, #tpu.memory_space<smem>>
    %c71 = arith.constant 71 : index
    %166 = memref.load %arg4[%c71] : memref<98xf32, #tpu.memory_space<smem>>
    %167 = vector.broadcast %165 : f32 to vector<2x1xf32>
    %168 = vector.broadcast %166 : f32 to vector<2x1xf32>
    %169 = arith.select %55, %167, %168 : vector<2x1xi1>, vector<2x1xf32>
    %170 = vector.broadcast %169 : vector<2x1xf32> to vector<2x384xf32>
    %171 = arith.mulf %170, %164 : vector<2x384xf32>
    %172 = arith.addf %163, %171 : vector<2x384xf32>
    %c370_i32 = arith.constant 370 : i32
    %173 = tpu.dynamic_rotate %35 by %c370_i32 dim 1 : vector<2x384xf32>, i32 -> vector<2x384xf32>
    %c29 = arith.constant 29 : index
    %174 = memref.load %arg4[%c29] : memref<98xf32, #tpu.memory_space<smem>>
    %c78 = arith.constant 78 : index
    %175 = memref.load %arg4[%c78] : memref<98xf32, #tpu.memory_space<smem>>
    %176 = vector.broadcast %174 : f32 to vector<2x1xf32>
    %177 = vector.broadcast %175 : f32 to vector<2x1xf32>
    %178 = arith.select %55, %176, %177 : vector<2x1xi1>, vector<2x1xf32>
    %179 = vector.broadcast %178 : vector<2x1xf32> to vector<2x384xf32>
    %180 = arith.mulf %179, %173 : vector<2x384xf32>
    %181 = arith.addf %172, %180 : vector<2x384xf32>
    %c354_i32 = arith.constant 354 : i32
    %182 = tpu.dynamic_rotate %35 by %c354_i32 dim 1 : vector<2x384xf32>, i32 -> vector<2x384xf32>
    %c36 = arith.constant 36 : index
    %183 = memref.load %arg4[%c36] : memref<98xf32, #tpu.memory_space<smem>>
    %c85 = arith.constant 85 : index
    %184 = memref.load %arg4[%c85] : memref<98xf32, #tpu.memory_space<smem>>
    %185 = vector.broadcast %183 : f32 to vector<2x1xf32>
    %186 = vector.broadcast %184 : f32 to vector<2x1xf32>
    %187 = arith.select %55, %185, %186 : vector<2x1xi1>, vector<2x1xf32>
    %188 = vector.broadcast %187 : vector<2x1xf32> to vector<2x384xf32>
    %189 = arith.mulf %188, %182 : vector<2x384xf32>
    %190 = arith.addf %181, %189 : vector<2x384xf32>
    %c338_i32 = arith.constant 338 : i32
    %191 = tpu.dynamic_rotate %35 by %c338_i32 dim 1 : vector<2x384xf32>, i32 -> vector<2x384xf32>
    %c43 = arith.constant 43 : index
    %192 = memref.load %arg4[%c43] : memref<98xf32, #tpu.memory_space<smem>>
    %c92 = arith.constant 92 : index
    %193 = memref.load %arg4[%c92] : memref<98xf32, #tpu.memory_space<smem>>
    %194 = vector.broadcast %192 : f32 to vector<2x1xf32>
    %195 = vector.broadcast %193 : f32 to vector<2x1xf32>
    %196 = arith.select %55, %194, %195 : vector<2x1xi1>, vector<2x1xf32>
    %197 = vector.broadcast %196 : vector<2x1xf32> to vector<2x384xf32>
    %198 = arith.mulf %197, %191 : vector<2x384xf32>
    %199 = arith.addf %190, %198 : vector<2x384xf32>
    %c-2_i32 = arith.constant -2 : i32
    %200 = vector.broadcast %c-2_i32 : i32 to vector<1x384xi32>
    %201 = arith.addi %52, %200 : vector<1x384xi32>
    %c0_i32_40 = arith.constant 0 : i32
    %202 = vector.broadcast %c0_i32_40 : i32 to vector<1x384xi32>
    %203 = arith.cmpi sge, %201, %202 : vector<1x384xi32>
    %c-2_i32_41 = arith.constant -2 : i32
    %204 = vector.broadcast %c-2_i32_41 : i32 to vector<1x384xi32>
    %205 = arith.addi %52, %204 : vector<1x384xi32>
    %c16_i32_42 = arith.constant 16 : i32
    %206 = vector.broadcast %c16_i32_42 : i32 to vector<1x384xi32>
    %207 = arith.cmpi slt, %205, %206 : vector<1x384xi32>
    %208 = arith.andi %203, %207 : vector<1x384xi1>
    %cst_43 = arith.constant 1.000000e+00 : f32
    %cst_44 = arith.constant 0.000000e+00 : f32
    %209 = vector.broadcast %cst_43 : f32 to vector<1x384xf32>
    %210 = vector.broadcast %cst_44 : f32 to vector<1x384xf32>
    %211 = arith.select %208, %209, %210 : vector<1x384xi1>, vector<1x384xf32>
    %212 = vector.broadcast %211 : vector<1x384xf32> to vector<2x384xf32>
    %213 = arith.mulf %199, %212 : vector<2x384xf32>
    %214 = arith.addf %135, %213 : vector<2x384xf32>
    %cst_45 = arith.constant 0.000000e+00 : f32
    %215 = vector.broadcast %cst_45 : f32 to vector<2x384xf32>
    %c49_i32 = arith.constant 49 : i32
    %216 = tpu.dynamic_rotate %35 by %c49_i32 dim 1 : vector<2x384xf32>, i32 -> vector<2x384xf32>
    %c2 = arith.constant 2 : index
    %217 = memref.load %arg4[%c2] : memref<98xf32, #tpu.memory_space<smem>>
    %c51 = arith.constant 51 : index
    %218 = memref.load %arg4[%c51] : memref<98xf32, #tpu.memory_space<smem>>
    %219 = vector.broadcast %217 : f32 to vector<2x1xf32>
    %220 = vector.broadcast %218 : f32 to vector<2x1xf32>
    %221 = arith.select %55, %219, %220 : vector<2x1xi1>, vector<2x1xf32>
    %222 = vector.broadcast %221 : vector<2x1xf32> to vector<2x384xf32>
    %223 = arith.mulf %222, %216 : vector<2x384xf32>
    %224 = arith.addf %215, %223 : vector<2x384xf32>
    %c33_i32 = arith.constant 33 : i32
    %225 = tpu.dynamic_rotate %35 by %c33_i32 dim 1 : vector<2x384xf32>, i32 -> vector<2x384xf32>
    %c9 = arith.constant 9 : index
    %226 = memref.load %arg4[%c9] : memref<98xf32, #tpu.memory_space<smem>>
    %c58 = arith.constant 58 : index
    %227 = memref.load %arg4[%c58] : memref<98xf32, #tpu.memory_space<smem>>
    %228 = vector.broadcast %226 : f32 to vector<2x1xf32>
    %229 = vector.broadcast %227 : f32 to vector<2x1xf32>
    %230 = arith.select %55, %228, %229 : vector<2x1xi1>, vector<2x1xf32>
    %231 = vector.broadcast %230 : vector<2x1xf32> to vector<2x384xf32>
    %232 = arith.mulf %231, %225 : vector<2x384xf32>
    %233 = arith.addf %224, %232 : vector<2x384xf32>
    %c17_i32 = arith.constant 17 : i32
    %234 = tpu.dynamic_rotate %35 by %c17_i32 dim 1 : vector<2x384xf32>, i32 -> vector<2x384xf32>
    %c16 = arith.constant 16 : index
    %235 = memref.load %arg4[%c16] : memref<98xf32, #tpu.memory_space<smem>>
    %c65 = arith.constant 65 : index
    %236 = memref.load %arg4[%c65] : memref<98xf32, #tpu.memory_space<smem>>
    %237 = vector.broadcast %235 : f32 to vector<2x1xf32>
    %238 = vector.broadcast %236 : f32 to vector<2x1xf32>
    %239 = arith.select %55, %237, %238 : vector<2x1xi1>, vector<2x1xf32>
    %240 = vector.broadcast %239 : vector<2x1xf32> to vector<2x384xf32>
    %241 = arith.mulf %240, %234 : vector<2x384xf32>
    %242 = arith.addf %233, %241 : vector<2x384xf32>
    %c1_i32_46 = arith.constant 1 : i32
    %243 = tpu.dynamic_rotate %35 by %c1_i32_46 dim 1 : vector<2x384xf32>, i32 -> vector<2x384xf32>
    %c23 = arith.constant 23 : index
    %244 = memref.load %arg4[%c23] : memref<98xf32, #tpu.memory_space<smem>>
    %c72 = arith.constant 72 : index
    %245 = memref.load %arg4[%c72] : memref<98xf32, #tpu.memory_space<smem>>
    %246 = vector.broadcast %244 : f32 to vector<2x1xf32>
    %247 = vector.broadcast %245 : f32 to vector<2x1xf32>
    %248 = arith.select %55, %246, %247 : vector<2x1xi1>, vector<2x1xf32>
    %249 = vector.broadcast %248 : vector<2x1xf32> to vector<2x384xf32>
    %250 = arith.mulf %249, %243 : vector<2x384xf32>
    %251 = arith.addf %242, %250 : vector<2x384xf32>
    %c369_i32 = arith.constant 369 : i32
    %252 = tpu.dynamic_rotate %35 by %c369_i32 dim 1 : vector<2x384xf32>, i32 -> vector<2x384xf32>
    %c30 = arith.constant 30 : index
    %253 = memref.load %arg4[%c30] : memref<98xf32, #tpu.memory_space<smem>>
    %c79 = arith.constant 79 : index
    %254 = memref.load %arg4[%c79] : memref<98xf32, #tpu.memory_space<smem>>
    %255 = vector.broadcast %253 : f32 to vector<2x1xf32>
    %256 = vector.broadcast %254 : f32 to vector<2x1xf32>
    %257 = arith.select %55, %255, %256 : vector<2x1xi1>, vector<2x1xf32>
    %258 = vector.broadcast %257 : vector<2x1xf32> to vector<2x384xf32>
    %259 = arith.mulf %258, %252 : vector<2x384xf32>
    %260 = arith.addf %251, %259 : vector<2x384xf32>
    %c353_i32 = arith.constant 353 : i32
    %261 = tpu.dynamic_rotate %35 by %c353_i32 dim 1 : vector<2x384xf32>, i32 -> vector<2x384xf32>
    %c37 = arith.constant 37 : index
    %262 = memref.load %arg4[%c37] : memref<98xf32, #tpu.memory_space<smem>>
    %c86 = arith.constant 86 : index
    %263 = memref.load %arg4[%c86] : memref<98xf32, #tpu.memory_space<smem>>
    %264 = vector.broadcast %262 : f32 to vector<2x1xf32>
    %265 = vector.broadcast %263 : f32 to vector<2x1xf32>
    %266 = arith.select %55, %264, %265 : vector<2x1xi1>, vector<2x1xf32>
    %267 = vector.broadcast %266 : vector<2x1xf32> to vector<2x384xf32>
    %268 = arith.mulf %267, %261 : vector<2x384xf32>
    %269 = arith.addf %260, %268 : vector<2x384xf32>
    %c337_i32 = arith.constant 337 : i32
    %270 = tpu.dynamic_rotate %35 by %c337_i32 dim 1 : vector<2x384xf32>, i32 -> vector<2x384xf32>
    %c44 = arith.constant 44 : index
    %271 = memref.load %arg4[%c44] : memref<98xf32, #tpu.memory_space<smem>>
    %c93 = arith.constant 93 : index
    %272 = memref.load %arg4[%c93] : memref<98xf32, #tpu.memory_space<smem>>
    %273 = vector.broadcast %271 : f32 to vector<2x1xf32>
    %274 = vector.broadcast %272 : f32 to vector<2x1xf32>
    %275 = arith.select %55, %273, %274 : vector<2x1xi1>, vector<2x1xf32>
    %276 = vector.broadcast %275 : vector<2x1xf32> to vector<2x384xf32>
    %277 = arith.mulf %276, %270 : vector<2x384xf32>
    %278 = arith.addf %269, %277 : vector<2x384xf32>
    %c-1_i32 = arith.constant -1 : i32
    %279 = vector.broadcast %c-1_i32 : i32 to vector<1x384xi32>
    %280 = arith.addi %52, %279 : vector<1x384xi32>
    %c0_i32_47 = arith.constant 0 : i32
    %281 = vector.broadcast %c0_i32_47 : i32 to vector<1x384xi32>
    %282 = arith.cmpi sge, %280, %281 : vector<1x384xi32>
    %c-1_i32_48 = arith.constant -1 : i32
    %283 = vector.broadcast %c-1_i32_48 : i32 to vector<1x384xi32>
    %284 = arith.addi %52, %283 : vector<1x384xi32>
    %c16_i32_49 = arith.constant 16 : i32
    %285 = vector.broadcast %c16_i32_49 : i32 to vector<1x384xi32>
    %286 = arith.cmpi slt, %284, %285 : vector<1x384xi32>
    %287 = arith.andi %282, %286 : vector<1x384xi1>
    %cst_50 = arith.constant 1.000000e+00 : f32
    %cst_51 = arith.constant 0.000000e+00 : f32
    %288 = vector.broadcast %cst_50 : f32 to vector<1x384xf32>
    %289 = vector.broadcast %cst_51 : f32 to vector<1x384xf32>
    %290 = arith.select %287, %288, %289 : vector<1x384xi1>, vector<1x384xf32>
    %291 = vector.broadcast %290 : vector<1x384xf32> to vector<2x384xf32>
    %292 = arith.mulf %278, %291 : vector<2x384xf32>
    %293 = arith.addf %214, %292 : vector<2x384xf32>
    %cst_52 = arith.constant 0.000000e+00 : f32
    %294 = vector.broadcast %cst_52 : f32 to vector<2x384xf32>
    %c48_i32 = arith.constant 48 : i32
    %295 = tpu.dynamic_rotate %35 by %c48_i32 dim 1 : vector<2x384xf32>, i32 -> vector<2x384xf32>
    %c3 = arith.constant 3 : index
    %296 = memref.load %arg4[%c3] : memref<98xf32, #tpu.memory_space<smem>>
    %c52 = arith.constant 52 : index
    %297 = memref.load %arg4[%c52] : memref<98xf32, #tpu.memory_space<smem>>
    %298 = vector.broadcast %296 : f32 to vector<2x1xf32>
    %299 = vector.broadcast %297 : f32 to vector<2x1xf32>
    %300 = arith.select %55, %298, %299 : vector<2x1xi1>, vector<2x1xf32>
    %301 = vector.broadcast %300 : vector<2x1xf32> to vector<2x384xf32>
    %302 = arith.mulf %301, %295 : vector<2x384xf32>
    %303 = arith.addf %294, %302 : vector<2x384xf32>
    %c32_i32 = arith.constant 32 : i32
    %304 = tpu.dynamic_rotate %35 by %c32_i32 dim 1 : vector<2x384xf32>, i32 -> vector<2x384xf32>
    %c10 = arith.constant 10 : index
    %305 = memref.load %arg4[%c10] : memref<98xf32, #tpu.memory_space<smem>>
    %c59 = arith.constant 59 : index
    %306 = memref.load %arg4[%c59] : memref<98xf32, #tpu.memory_space<smem>>
    %307 = vector.broadcast %305 : f32 to vector<2x1xf32>
    %308 = vector.broadcast %306 : f32 to vector<2x1xf32>
    %309 = arith.select %55, %307, %308 : vector<2x1xi1>, vector<2x1xf32>
    %310 = vector.broadcast %309 : vector<2x1xf32> to vector<2x384xf32>
    %311 = arith.mulf %310, %304 : vector<2x384xf32>
    %312 = arith.addf %303, %311 : vector<2x384xf32>
    %c16_i32_53 = arith.constant 16 : i32
    %313 = tpu.dynamic_rotate %35 by %c16_i32_53 dim 1 : vector<2x384xf32>, i32 -> vector<2x384xf32>
    %c17 = arith.constant 17 : index
    %314 = memref.load %arg4[%c17] : memref<98xf32, #tpu.memory_space<smem>>
    %c66 = arith.constant 66 : index
    %315 = memref.load %arg4[%c66] : memref<98xf32, #tpu.memory_space<smem>>
    %316 = vector.broadcast %314 : f32 to vector<2x1xf32>
    %317 = vector.broadcast %315 : f32 to vector<2x1xf32>
    %318 = arith.select %55, %316, %317 : vector<2x1xi1>, vector<2x1xf32>
    %319 = vector.broadcast %318 : vector<2x1xf32> to vector<2x384xf32>
    %320 = arith.mulf %319, %313 : vector<2x384xf32>
    %321 = arith.addf %312, %320 : vector<2x384xf32>
    %c24 = arith.constant 24 : index
    %322 = memref.load %arg4[%c24] : memref<98xf32, #tpu.memory_space<smem>>
    %c73 = arith.constant 73 : index
    %323 = memref.load %arg4[%c73] : memref<98xf32, #tpu.memory_space<smem>>
    %324 = vector.broadcast %322 : f32 to vector<2x1xf32>
    %325 = vector.broadcast %323 : f32 to vector<2x1xf32>
    %326 = arith.select %55, %324, %325 : vector<2x1xi1>, vector<2x1xf32>
    %327 = vector.broadcast %326 : vector<2x1xf32> to vector<2x384xf32>
    %328 = arith.mulf %327, %35 : vector<2x384xf32>
    %329 = arith.addf %321, %328 : vector<2x384xf32>
    %c368_i32 = arith.constant 368 : i32
    %330 = tpu.dynamic_rotate %35 by %c368_i32 dim 1 : vector<2x384xf32>, i32 -> vector<2x384xf32>
    %c31 = arith.constant 31 : index
    %331 = memref.load %arg4[%c31] : memref<98xf32, #tpu.memory_space<smem>>
    %c80 = arith.constant 80 : index
    %332 = memref.load %arg4[%c80] : memref<98xf32, #tpu.memory_space<smem>>
    %333 = vector.broadcast %331 : f32 to vector<2x1xf32>
    %334 = vector.broadcast %332 : f32 to vector<2x1xf32>
    %335 = arith.select %55, %333, %334 : vector<2x1xi1>, vector<2x1xf32>
    %336 = vector.broadcast %335 : vector<2x1xf32> to vector<2x384xf32>
    %337 = arith.mulf %336, %330 : vector<2x384xf32>
    %338 = arith.addf %329, %337 : vector<2x384xf32>
    %c352_i32 = arith.constant 352 : i32
    %339 = tpu.dynamic_rotate %35 by %c352_i32 dim 1 : vector<2x384xf32>, i32 -> vector<2x384xf32>
    %c38 = arith.constant 38 : index
    %340 = memref.load %arg4[%c38] : memref<98xf32, #tpu.memory_space<smem>>
    %c87 = arith.constant 87 : index
    %341 = memref.load %arg4[%c87] : memref<98xf32, #tpu.memory_space<smem>>
    %342 = vector.broadcast %340 : f32 to vector<2x1xf32>
    %343 = vector.broadcast %341 : f32 to vector<2x1xf32>
    %344 = arith.select %55, %342, %343 : vector<2x1xi1>, vector<2x1xf32>
    %345 = vector.broadcast %344 : vector<2x1xf32> to vector<2x384xf32>
    %346 = arith.mulf %345, %339 : vector<2x384xf32>
    %347 = arith.addf %338, %346 : vector<2x384xf32>
    %c336_i32 = arith.constant 336 : i32
    %348 = tpu.dynamic_rotate %35 by %c336_i32 dim 1 : vector<2x384xf32>, i32 -> vector<2x384xf32>
    %c45 = arith.constant 45 : index
    %349 = memref.load %arg4[%c45] : memref<98xf32, #tpu.memory_space<smem>>
    %c94 = arith.constant 94 : index
    %350 = memref.load %arg4[%c94] : memref<98xf32, #tpu.memory_space<smem>>
    %351 = vector.broadcast %349 : f32 to vector<2x1xf32>
    %352 = vector.broadcast %350 : f32 to vector<2x1xf32>
    %353 = arith.select %55, %351, %352 : vector<2x1xi1>, vector<2x1xf32>
    %354 = vector.broadcast %353 : vector<2x1xf32> to vector<2x384xf32>
    %355 = arith.mulf %354, %348 : vector<2x384xf32>
    %356 = arith.addf %347, %355 : vector<2x384xf32>
    %357 = arith.addf %293, %356 : vector<2x384xf32>
    %cst_54 = arith.constant 0.000000e+00 : f32
    %358 = vector.broadcast %cst_54 : f32 to vector<2x384xf32>
    %c47_i32 = arith.constant 47 : i32
    %359 = tpu.dynamic_rotate %35 by %c47_i32 dim 1 : vector<2x384xf32>, i32 -> vector<2x384xf32>
    %c4 = arith.constant 4 : index
    %360 = memref.load %arg4[%c4] : memref<98xf32, #tpu.memory_space<smem>>
    %c53 = arith.constant 53 : index
    %361 = memref.load %arg4[%c53] : memref<98xf32, #tpu.memory_space<smem>>
    %362 = vector.broadcast %360 : f32 to vector<2x1xf32>
    %363 = vector.broadcast %361 : f32 to vector<2x1xf32>
    %364 = arith.select %55, %362, %363 : vector<2x1xi1>, vector<2x1xf32>
    %365 = vector.broadcast %364 : vector<2x1xf32> to vector<2x384xf32>
    %366 = arith.mulf %365, %359 : vector<2x384xf32>
    %367 = arith.addf %358, %366 : vector<2x384xf32>
    %c31_i32 = arith.constant 31 : i32
    %368 = tpu.dynamic_rotate %35 by %c31_i32 dim 1 : vector<2x384xf32>, i32 -> vector<2x384xf32>
    %c11 = arith.constant 11 : index
    %369 = memref.load %arg4[%c11] : memref<98xf32, #tpu.memory_space<smem>>
    %c60 = arith.constant 60 : index
    %370 = memref.load %arg4[%c60] : memref<98xf32, #tpu.memory_space<smem>>
    %371 = vector.broadcast %369 : f32 to vector<2x1xf32>
    %372 = vector.broadcast %370 : f32 to vector<2x1xf32>
    %373 = arith.select %55, %371, %372 : vector<2x1xi1>, vector<2x1xf32>
    %374 = vector.broadcast %373 : vector<2x1xf32> to vector<2x384xf32>
    %375 = arith.mulf %374, %368 : vector<2x384xf32>
    %376 = arith.addf %367, %375 : vector<2x384xf32>
    %c15_i32 = arith.constant 15 : i32
    %377 = tpu.dynamic_rotate %35 by %c15_i32 dim 1 : vector<2x384xf32>, i32 -> vector<2x384xf32>
    %c18 = arith.constant 18 : index
    %378 = memref.load %arg4[%c18] : memref<98xf32, #tpu.memory_space<smem>>
    %c67 = arith.constant 67 : index
    %379 = memref.load %arg4[%c67] : memref<98xf32, #tpu.memory_space<smem>>
    %380 = vector.broadcast %378 : f32 to vector<2x1xf32>
    %381 = vector.broadcast %379 : f32 to vector<2x1xf32>
    %382 = arith.select %55, %380, %381 : vector<2x1xi1>, vector<2x1xf32>
    %383 = vector.broadcast %382 : vector<2x1xf32> to vector<2x384xf32>
    %384 = arith.mulf %383, %377 : vector<2x384xf32>
    %385 = arith.addf %376, %384 : vector<2x384xf32>
    %c383_i32 = arith.constant 383 : i32
    %386 = tpu.dynamic_rotate %35 by %c383_i32 dim 1 : vector<2x384xf32>, i32 -> vector<2x384xf32>
    %c25 = arith.constant 25 : index
    %387 = memref.load %arg4[%c25] : memref<98xf32, #tpu.memory_space<smem>>
    %c74 = arith.constant 74 : index
    %388 = memref.load %arg4[%c74] : memref<98xf32, #tpu.memory_space<smem>>
    %389 = vector.broadcast %387 : f32 to vector<2x1xf32>
    %390 = vector.broadcast %388 : f32 to vector<2x1xf32>
    %391 = arith.select %55, %389, %390 : vector<2x1xi1>, vector<2x1xf32>
    %392 = vector.broadcast %391 : vector<2x1xf32> to vector<2x384xf32>
    %393 = arith.mulf %392, %386 : vector<2x384xf32>
    %394 = arith.addf %385, %393 : vector<2x384xf32>
    %c367_i32 = arith.constant 367 : i32
    %395 = tpu.dynamic_rotate %35 by %c367_i32 dim 1 : vector<2x384xf32>, i32 -> vector<2x384xf32>
    %c32 = arith.constant 32 : index
    %396 = memref.load %arg4[%c32] : memref<98xf32, #tpu.memory_space<smem>>
    %c81 = arith.constant 81 : index
    %397 = memref.load %arg4[%c81] : memref<98xf32, #tpu.memory_space<smem>>
    %398 = vector.broadcast %396 : f32 to vector<2x1xf32>
    %399 = vector.broadcast %397 : f32 to vector<2x1xf32>
    %400 = arith.select %55, %398, %399 : vector<2x1xi1>, vector<2x1xf32>
    %401 = vector.broadcast %400 : vector<2x1xf32> to vector<2x384xf32>
    %402 = arith.mulf %401, %395 : vector<2x384xf32>
    %403 = arith.addf %394, %402 : vector<2x384xf32>
    %c351_i32 = arith.constant 351 : i32
    %404 = tpu.dynamic_rotate %35 by %c351_i32 dim 1 : vector<2x384xf32>, i32 -> vector<2x384xf32>
    %c39 = arith.constant 39 : index
    %405 = memref.load %arg4[%c39] : memref<98xf32, #tpu.memory_space<smem>>
    %c88 = arith.constant 88 : index
    %406 = memref.load %arg4[%c88] : memref<98xf32, #tpu.memory_space<smem>>
    %407 = vector.broadcast %405 : f32 to vector<2x1xf32>
    %408 = vector.broadcast %406 : f32 to vector<2x1xf32>
    %409 = arith.select %55, %407, %408 : vector<2x1xi1>, vector<2x1xf32>
    %410 = vector.broadcast %409 : vector<2x1xf32> to vector<2x384xf32>
    %411 = arith.mulf %410, %404 : vector<2x384xf32>
    %412 = arith.addf %403, %411 : vector<2x384xf32>
    %c335_i32 = arith.constant 335 : i32
    %413 = tpu.dynamic_rotate %35 by %c335_i32 dim 1 : vector<2x384xf32>, i32 -> vector<2x384xf32>
    %c46 = arith.constant 46 : index
    %414 = memref.load %arg4[%c46] : memref<98xf32, #tpu.memory_space<smem>>
    %c95 = arith.constant 95 : index
    %415 = memref.load %arg4[%c95] : memref<98xf32, #tpu.memory_space<smem>>
    %416 = vector.broadcast %414 : f32 to vector<2x1xf32>
    %417 = vector.broadcast %415 : f32 to vector<2x1xf32>
    %418 = arith.select %55, %416, %417 : vector<2x1xi1>, vector<2x1xf32>
    %419 = vector.broadcast %418 : vector<2x1xf32> to vector<2x384xf32>
    %420 = arith.mulf %419, %413 : vector<2x384xf32>
    %421 = arith.addf %412, %420 : vector<2x384xf32>
    %c1_i32_55 = arith.constant 1 : i32
    %422 = vector.broadcast %c1_i32_55 : i32 to vector<1x384xi32>
    %423 = arith.addi %52, %422 : vector<1x384xi32>
    %c0_i32_56 = arith.constant 0 : i32
    %424 = vector.broadcast %c0_i32_56 : i32 to vector<1x384xi32>
    %425 = arith.cmpi sge, %423, %424 : vector<1x384xi32>
    %c1_i32_57 = arith.constant 1 : i32
    %426 = vector.broadcast %c1_i32_57 : i32 to vector<1x384xi32>
    %427 = arith.addi %52, %426 : vector<1x384xi32>
    %c16_i32_58 = arith.constant 16 : i32
    %428 = vector.broadcast %c16_i32_58 : i32 to vector<1x384xi32>
    %429 = arith.cmpi slt, %427, %428 : vector<1x384xi32>
    %430 = arith.andi %425, %429 : vector<1x384xi1>
    %cst_59 = arith.constant 1.000000e+00 : f32
    %cst_60 = arith.constant 0.000000e+00 : f32
    %431 = vector.broadcast %cst_59 : f32 to vector<1x384xf32>
    %432 = vector.broadcast %cst_60 : f32 to vector<1x384xf32>
    %433 = arith.select %430, %431, %432 : vector<1x384xi1>, vector<1x384xf32>
    %434 = vector.broadcast %433 : vector<1x384xf32> to vector<2x384xf32>
    %435 = arith.mulf %421, %434 : vector<2x384xf32>
    %436 = arith.addf %357, %435 : vector<2x384xf32>
    %cst_61 = arith.constant 0.000000e+00 : f32
    %437 = vector.broadcast %cst_61 : f32 to vector<2x384xf32>
    %c46_i32 = arith.constant 46 : i32
    %438 = tpu.dynamic_rotate %35 by %c46_i32 dim 1 : vector<2x384xf32>, i32 -> vector<2x384xf32>
    %c5 = arith.constant 5 : index
    %439 = memref.load %arg4[%c5] : memref<98xf32, #tpu.memory_space<smem>>
    %c54 = arith.constant 54 : index
    %440 = memref.load %arg4[%c54] : memref<98xf32, #tpu.memory_space<smem>>
    %441 = vector.broadcast %439 : f32 to vector<2x1xf32>
    %442 = vector.broadcast %440 : f32 to vector<2x1xf32>
    %443 = arith.select %55, %441, %442 : vector<2x1xi1>, vector<2x1xf32>
    %444 = vector.broadcast %443 : vector<2x1xf32> to vector<2x384xf32>
    %445 = arith.mulf %444, %438 : vector<2x384xf32>
    %446 = arith.addf %437, %445 : vector<2x384xf32>
    %c30_i32 = arith.constant 30 : i32
    %447 = tpu.dynamic_rotate %35 by %c30_i32 dim 1 : vector<2x384xf32>, i32 -> vector<2x384xf32>
    %c12 = arith.constant 12 : index
    %448 = memref.load %arg4[%c12] : memref<98xf32, #tpu.memory_space<smem>>
    %c61 = arith.constant 61 : index
    %449 = memref.load %arg4[%c61] : memref<98xf32, #tpu.memory_space<smem>>
    %450 = vector.broadcast %448 : f32 to vector<2x1xf32>
    %451 = vector.broadcast %449 : f32 to vector<2x1xf32>
    %452 = arith.select %55, %450, %451 : vector<2x1xi1>, vector<2x1xf32>
    %453 = vector.broadcast %452 : vector<2x1xf32> to vector<2x384xf32>
    %454 = arith.mulf %453, %447 : vector<2x384xf32>
    %455 = arith.addf %446, %454 : vector<2x384xf32>
    %c14_i32 = arith.constant 14 : i32
    %456 = tpu.dynamic_rotate %35 by %c14_i32 dim 1 : vector<2x384xf32>, i32 -> vector<2x384xf32>
    %c19 = arith.constant 19 : index
    %457 = memref.load %arg4[%c19] : memref<98xf32, #tpu.memory_space<smem>>
    %c68 = arith.constant 68 : index
    %458 = memref.load %arg4[%c68] : memref<98xf32, #tpu.memory_space<smem>>
    %459 = vector.broadcast %457 : f32 to vector<2x1xf32>
    %460 = vector.broadcast %458 : f32 to vector<2x1xf32>
    %461 = arith.select %55, %459, %460 : vector<2x1xi1>, vector<2x1xf32>
    %462 = vector.broadcast %461 : vector<2x1xf32> to vector<2x384xf32>
    %463 = arith.mulf %462, %456 : vector<2x384xf32>
    %464 = arith.addf %455, %463 : vector<2x384xf32>
    %c382_i32 = arith.constant 382 : i32
    %465 = tpu.dynamic_rotate %35 by %c382_i32 dim 1 : vector<2x384xf32>, i32 -> vector<2x384xf32>
    %c26 = arith.constant 26 : index
    %466 = memref.load %arg4[%c26] : memref<98xf32, #tpu.memory_space<smem>>
    %c75 = arith.constant 75 : index
    %467 = memref.load %arg4[%c75] : memref<98xf32, #tpu.memory_space<smem>>
    %468 = vector.broadcast %466 : f32 to vector<2x1xf32>
    %469 = vector.broadcast %467 : f32 to vector<2x1xf32>
    %470 = arith.select %55, %468, %469 : vector<2x1xi1>, vector<2x1xf32>
    %471 = vector.broadcast %470 : vector<2x1xf32> to vector<2x384xf32>
    %472 = arith.mulf %471, %465 : vector<2x384xf32>
    %473 = arith.addf %464, %472 : vector<2x384xf32>
    %c366_i32 = arith.constant 366 : i32
    %474 = tpu.dynamic_rotate %35 by %c366_i32 dim 1 : vector<2x384xf32>, i32 -> vector<2x384xf32>
    %c33 = arith.constant 33 : index
    %475 = memref.load %arg4[%c33] : memref<98xf32, #tpu.memory_space<smem>>
    %c82 = arith.constant 82 : index
    %476 = memref.load %arg4[%c82] : memref<98xf32, #tpu.memory_space<smem>>
    %477 = vector.broadcast %475 : f32 to vector<2x1xf32>
    %478 = vector.broadcast %476 : f32 to vector<2x1xf32>
    %479 = arith.select %55, %477, %478 : vector<2x1xi1>, vector<2x1xf32>
    %480 = vector.broadcast %479 : vector<2x1xf32> to vector<2x384xf32>
    %481 = arith.mulf %480, %474 : vector<2x384xf32>
    %482 = arith.addf %473, %481 : vector<2x384xf32>
    %c350_i32 = arith.constant 350 : i32
    %483 = tpu.dynamic_rotate %35 by %c350_i32 dim 1 : vector<2x384xf32>, i32 -> vector<2x384xf32>
    %c40 = arith.constant 40 : index
    %484 = memref.load %arg4[%c40] : memref<98xf32, #tpu.memory_space<smem>>
    %c89 = arith.constant 89 : index
    %485 = memref.load %arg4[%c89] : memref<98xf32, #tpu.memory_space<smem>>
    %486 = vector.broadcast %484 : f32 to vector<2x1xf32>
    %487 = vector.broadcast %485 : f32 to vector<2x1xf32>
    %488 = arith.select %55, %486, %487 : vector<2x1xi1>, vector<2x1xf32>
    %489 = vector.broadcast %488 : vector<2x1xf32> to vector<2x384xf32>
    %490 = arith.mulf %489, %483 : vector<2x384xf32>
    %491 = arith.addf %482, %490 : vector<2x384xf32>
    %c334_i32 = arith.constant 334 : i32
    %492 = tpu.dynamic_rotate %35 by %c334_i32 dim 1 : vector<2x384xf32>, i32 -> vector<2x384xf32>
    %c47 = arith.constant 47 : index
    %493 = memref.load %arg4[%c47] : memref<98xf32, #tpu.memory_space<smem>>
    %c96 = arith.constant 96 : index
    %494 = memref.load %arg4[%c96] : memref<98xf32, #tpu.memory_space<smem>>
    %495 = vector.broadcast %493 : f32 to vector<2x1xf32>
    %496 = vector.broadcast %494 : f32 to vector<2x1xf32>
    %497 = arith.select %55, %495, %496 : vector<2x1xi1>, vector<2x1xf32>
    %498 = vector.broadcast %497 : vector<2x1xf32> to vector<2x384xf32>
    %499 = arith.mulf %498, %492 : vector<2x384xf32>
    %500 = arith.addf %491, %499 : vector<2x384xf32>
    %c2_i32_62 = arith.constant 2 : i32
    %501 = vector.broadcast %c2_i32_62 : i32 to vector<1x384xi32>
    %502 = arith.addi %52, %501 : vector<1x384xi32>
    %c0_i32_63 = arith.constant 0 : i32
    %503 = vector.broadcast %c0_i32_63 : i32 to vector<1x384xi32>
    %504 = arith.cmpi sge, %502, %503 : vector<1x384xi32>
    %c2_i32_64 = arith.constant 2 : i32
    %505 = vector.broadcast %c2_i32_64 : i32 to vector<1x384xi32>
    %506 = arith.addi %52, %505 : vector<1x384xi32>
    %c16_i32_65 = arith.constant 16 : i32
    %507 = vector.broadcast %c16_i32_65 : i32 to vector<1x384xi32>
    %508 = arith.cmpi slt, %506, %507 : vector<1x384xi32>
    %509 = arith.andi %504, %508 : vector<1x384xi1>
    %cst_66 = arith.constant 1.000000e+00 : f32
    %cst_67 = arith.constant 0.000000e+00 : f32
    %510 = vector.broadcast %cst_66 : f32 to vector<1x384xf32>
    %511 = vector.broadcast %cst_67 : f32 to vector<1x384xf32>
    %512 = arith.select %509, %510, %511 : vector<1x384xi1>, vector<1x384xf32>
    %513 = vector.broadcast %512 : vector<1x384xf32> to vector<2x384xf32>
    %514 = arith.mulf %500, %513 : vector<2x384xf32>
    %515 = arith.addf %436, %514 : vector<2x384xf32>
    %cst_68 = arith.constant 0.000000e+00 : f32
    %516 = vector.broadcast %cst_68 : f32 to vector<2x384xf32>
    %c45_i32 = arith.constant 45 : i32
    %517 = tpu.dynamic_rotate %35 by %c45_i32 dim 1 : vector<2x384xf32>, i32 -> vector<2x384xf32>
    %c6 = arith.constant 6 : index
    %518 = memref.load %arg4[%c6] : memref<98xf32, #tpu.memory_space<smem>>
    %c55 = arith.constant 55 : index
    %519 = memref.load %arg4[%c55] : memref<98xf32, #tpu.memory_space<smem>>
    %520 = vector.broadcast %518 : f32 to vector<2x1xf32>
    %521 = vector.broadcast %519 : f32 to vector<2x1xf32>
    %522 = arith.select %55, %520, %521 : vector<2x1xi1>, vector<2x1xf32>
    %523 = vector.broadcast %522 : vector<2x1xf32> to vector<2x384xf32>
    %524 = arith.mulf %523, %517 : vector<2x384xf32>
    %525 = arith.addf %516, %524 : vector<2x384xf32>
    %c29_i32 = arith.constant 29 : i32
    %526 = tpu.dynamic_rotate %35 by %c29_i32 dim 1 : vector<2x384xf32>, i32 -> vector<2x384xf32>
    %c13 = arith.constant 13 : index
    %527 = memref.load %arg4[%c13] : memref<98xf32, #tpu.memory_space<smem>>
    %c62 = arith.constant 62 : index
    %528 = memref.load %arg4[%c62] : memref<98xf32, #tpu.memory_space<smem>>
    %529 = vector.broadcast %527 : f32 to vector<2x1xf32>
    %530 = vector.broadcast %528 : f32 to vector<2x1xf32>
    %531 = arith.select %55, %529, %530 : vector<2x1xi1>, vector<2x1xf32>
    %532 = vector.broadcast %531 : vector<2x1xf32> to vector<2x384xf32>
    %533 = arith.mulf %532, %526 : vector<2x384xf32>
    %534 = arith.addf %525, %533 : vector<2x384xf32>
    %c13_i32 = arith.constant 13 : i32
    %535 = tpu.dynamic_rotate %35 by %c13_i32 dim 1 : vector<2x384xf32>, i32 -> vector<2x384xf32>
    %c20 = arith.constant 20 : index
    %536 = memref.load %arg4[%c20] : memref<98xf32, #tpu.memory_space<smem>>
    %c69 = arith.constant 69 : index
    %537 = memref.load %arg4[%c69] : memref<98xf32, #tpu.memory_space<smem>>
    %538 = vector.broadcast %536 : f32 to vector<2x1xf32>
    %539 = vector.broadcast %537 : f32 to vector<2x1xf32>
    %540 = arith.select %55, %538, %539 : vector<2x1xi1>, vector<2x1xf32>
    %541 = vector.broadcast %540 : vector<2x1xf32> to vector<2x384xf32>
    %542 = arith.mulf %541, %535 : vector<2x384xf32>
    %543 = arith.addf %534, %542 : vector<2x384xf32>
    %c381_i32 = arith.constant 381 : i32
    %544 = tpu.dynamic_rotate %35 by %c381_i32 dim 1 : vector<2x384xf32>, i32 -> vector<2x384xf32>
    %c27 = arith.constant 27 : index
    %545 = memref.load %arg4[%c27] : memref<98xf32, #tpu.memory_space<smem>>
    %c76 = arith.constant 76 : index
    %546 = memref.load %arg4[%c76] : memref<98xf32, #tpu.memory_space<smem>>
    %547 = vector.broadcast %545 : f32 to vector<2x1xf32>
    %548 = vector.broadcast %546 : f32 to vector<2x1xf32>
    %549 = arith.select %55, %547, %548 : vector<2x1xi1>, vector<2x1xf32>
    %550 = vector.broadcast %549 : vector<2x1xf32> to vector<2x384xf32>
    %551 = arith.mulf %550, %544 : vector<2x384xf32>
    %552 = arith.addf %543, %551 : vector<2x384xf32>
    %c365_i32 = arith.constant 365 : i32
    %553 = tpu.dynamic_rotate %35 by %c365_i32 dim 1 : vector<2x384xf32>, i32 -> vector<2x384xf32>
    %c34 = arith.constant 34 : index
    %554 = memref.load %arg4[%c34] : memref<98xf32, #tpu.memory_space<smem>>
    %c83 = arith.constant 83 : index
    %555 = memref.load %arg4[%c83] : memref<98xf32, #tpu.memory_space<smem>>
    %556 = vector.broadcast %554 : f32 to vector<2x1xf32>
    %557 = vector.broadcast %555 : f32 to vector<2x1xf32>
    %558 = arith.select %55, %556, %557 : vector<2x1xi1>, vector<2x1xf32>
    %559 = vector.broadcast %558 : vector<2x1xf32> to vector<2x384xf32>
    %560 = arith.mulf %559, %553 : vector<2x384xf32>
    %561 = arith.addf %552, %560 : vector<2x384xf32>
    %c349_i32 = arith.constant 349 : i32
    %562 = tpu.dynamic_rotate %35 by %c349_i32 dim 1 : vector<2x384xf32>, i32 -> vector<2x384xf32>
    %c41 = arith.constant 41 : index
    %563 = memref.load %arg4[%c41] : memref<98xf32, #tpu.memory_space<smem>>
    %c90 = arith.constant 90 : index
    %564 = memref.load %arg4[%c90] : memref<98xf32, #tpu.memory_space<smem>>
    %565 = vector.broadcast %563 : f32 to vector<2x1xf32>
    %566 = vector.broadcast %564 : f32 to vector<2x1xf32>
    %567 = arith.select %55, %565, %566 : vector<2x1xi1>, vector<2x1xf32>
    %568 = vector.broadcast %567 : vector<2x1xf32> to vector<2x384xf32>
    %569 = arith.mulf %568, %562 : vector<2x384xf32>
    %570 = arith.addf %561, %569 : vector<2x384xf32>
    %c333_i32 = arith.constant 333 : i32
    %571 = tpu.dynamic_rotate %35 by %c333_i32 dim 1 : vector<2x384xf32>, i32 -> vector<2x384xf32>
    %c48 = arith.constant 48 : index
    %572 = memref.load %arg4[%c48] : memref<98xf32, #tpu.memory_space<smem>>
    %c97 = arith.constant 97 : index
    %573 = memref.load %arg4[%c97] : memref<98xf32, #tpu.memory_space<smem>>
    %574 = vector.broadcast %572 : f32 to vector<2x1xf32>
    %575 = vector.broadcast %573 : f32 to vector<2x1xf32>
    %576 = arith.select %55, %574, %575 : vector<2x1xi1>, vector<2x1xf32>
    %577 = vector.broadcast %576 : vector<2x1xf32> to vector<2x384xf32>
    %578 = arith.mulf %577, %571 : vector<2x384xf32>
    %579 = arith.addf %570, %578 : vector<2x384xf32>
    %c3_i32_69 = arith.constant 3 : i32
    %580 = vector.broadcast %c3_i32_69 : i32 to vector<1x384xi32>
    %581 = arith.addi %52, %580 : vector<1x384xi32>
    %c0_i32_70 = arith.constant 0 : i32
    %582 = vector.broadcast %c0_i32_70 : i32 to vector<1x384xi32>
    %583 = arith.cmpi sge, %581, %582 : vector<1x384xi32>
    %c3_i32_71 = arith.constant 3 : i32
    %584 = vector.broadcast %c3_i32_71 : i32 to vector<1x384xi32>
    %585 = arith.addi %52, %584 : vector<1x384xi32>
    %c16_i32_72 = arith.constant 16 : i32
    %586 = vector.broadcast %c16_i32_72 : i32 to vector<1x384xi32>
    %587 = arith.cmpi slt, %585, %586 : vector<1x384xi32>
    %588 = arith.andi %583, %587 : vector<1x384xi1>
    %cst_73 = arith.constant 1.000000e+00 : f32
    %cst_74 = arith.constant 0.000000e+00 : f32
    %589 = vector.broadcast %cst_73 : f32 to vector<1x384xf32>
    %590 = vector.broadcast %cst_74 : f32 to vector<1x384xf32>
    %591 = arith.select %588, %589, %590 : vector<1x384xi1>, vector<1x384xf32>
    %592 = vector.broadcast %591 : vector<1x384xf32> to vector<2x384xf32>
    %593 = arith.mulf %579, %592 : vector<2x384xf32>
    %594 = arith.addf %515, %593 : vector<2x384xf32>
    %595 = vector.extract_strided_slice %594 {offsets = [0, 0], sizes = [1, 256], strides = [1, 1]} : vector<2x384xf32> to vector<1x256xf32>
    %596 = vector.extract_strided_slice %594 {offsets = [1, 0], sizes = [1, 256], strides = [1, 1]} : vector<2x384xf32> to vector<1x256xf32>
    %597 = arith.addf %595, %596 : vector<1x256xf32>
    %c0_75 = arith.constant 0 : index
    %c0_76 = arith.constant 0 : index
    %c0_77 = arith.constant 0 : index
    %598 = vector.load %arg6[%c0_75, %c0_76, %c0_77] : memref<1x32x256xf32, #tpu.memory_space<vmem>>, vector<1x32x256xf32>
    %599 = vector.shape_cast %598 : vector<1x32x256xf32> to vector<32x256xf32>
    %600 = vector.broadcast %597 : vector<1x256xf32> to vector<32x256xf32>
    %601 = arith.mulf %599, %600 : vector<32x256xf32>
    %c0_78 = arith.constant 0 : index
    %c0_79 = arith.constant 0 : index
    %c0_80 = arith.constant 0 : index
    %602 = vector.load %arg5[%c0_78, %c0_79, %c0_80] : memref<1x32x256xf32, #tpu.memory_space<vmem>>, vector<1x32x256xf32>
    %603 = vector.shape_cast %602 : vector<1x32x256xf32> to vector<32x256xf32>
    %604 = vector.shape_cast %601 : vector<32x256xf32> to vector<1x32x256xf32>
    tpu.vector_store %arg5[%c0_78, %c0_79, %c0_80], %604 {strides = array<i32>} : memref<1x32x256xf32, #tpu.memory_space<vmem>>, vector<1x32x256xf32>,
    return
  }
  func.func @transform_0(%arg0: i32) -> (i32, i32, i32) {
    %c0_i32 = arith.constant 0 : i32
    %c0_i32_0 = arith.constant 0 : i32
    %c0_i32_1 = arith.constant 0 : i32
    return %arg0, %c0_i32, %c0_i32_0 : i32, i32, i32
  }
  func.func @transform_1(%arg0: i32) -> (i32, i32) {
    %c0_i32 = arith.constant 0 : i32
    %c0_i32_0 = arith.constant 0 : i32
    %c0_i32_1 = arith.constant 0 : i32
    return %c0_i32, %c0_i32_0 : i32, i32
  }
  func.func @transform_2(%arg0: i32) -> (i32, i32) {
    %c0_i32 = arith.constant 0 : i32
    %c0_i32_0 = arith.constant 0 : i32
    %c0_i32_1 = arith.constant 0 : i32
    return %c0_i32, %c0_i32_0 : i32, i32
  }
  func.func @transform_3(%arg0: i32) -> i32 {
    %c0_i32 = arith.constant 0 : i32
    %c0_i32_0 = arith.constant 0 : i32
    return %c0_i32 : i32
  }
  func.func @transform_4(%arg0: i32) -> (i32, i32, i32) {
    %c0_i32 = arith.constant 0 : i32
    %c0_i32_0 = arith.constant 0 : i32
    %c0_i32_1 = arith.constant 0 : i32
    return %arg0, %c0_i32, %c0_i32_0 : i32, i32, i32
  }
}

</mosaic_0001>

<bundles_post_ra>
// kernel: tpu_custom_call.1
= control target key start
LH: loop header
LB: loop body
LE: loop exit
PB: predicated region body
PF: predicated region fallthrough
CT: control target
= control target key end

     0   :  { %s3805_s0 = inlined_call_operand.hbm [shape: f32[2,32,256], index: 0, kind: input, shape index: {}]   ;;  %s3806_s1 = inlined_call_operand.vmem [shape: f32[32,2], index: 1, kind: input, shape index: {}]   ;;  %s3807_s2 = inlined_call_operand.vmem [shape: f32[2,32], index: 2, kind: input, shape index: {}]   ;;  %s3808_s3 = inlined_call_operand.vmem [shape: f32[98], index: 3, kind: input, shape index: {}]   ;;  %s3809_s4 = inlined_call_operand.hbm [shape: f32[2,32,256], index: 4, kind: output, shape index: {}]  }
   0x1   :  { %3903 = sst [smem:[#allocation47_spill]] %s3805_s0 }
   0x2   :  { %3904 = sst [smem:[#allocation48_spill]] %s3806_s1 }
   0x3   :  { %3905 = sst [smem:[#allocation49_spill]] %s3807_s2 }
   0x4   :  { %3906 = sst [smem:[#allocation50_spill]] %s3808_s3 }
   0x5   :  { %9 = vsyncpa [#allocation5], 0 }
   0x6   :  { %11 = vsyncpa [#allocation5 + $0x1], 0 }
   0x7   :  { %12 = vsyncpa [#allocation7], 0 }
   0x8   :  { %13 = vsyncpa [#allocation6], 0 }
   0x9   :  { %15 = vsyncpa [#allocation6 + $0x1], 0  ;;  %s2225_s15 = smov 0   ;;  %s2227_s16 = smov 0  }
   0xa   :  { %s2229_s17 = smov 0   ;;  %s2231_s18 = smov 0  }
   0xb LB: > { %3907 = sst [smem:[#allocation13_spill]] %s2127_s15  ;;  %s2246_s19 = sadd.s32 4294967295, %s2139_s18   ;;  %s2139_s18 = sphi %s2231_s18, %s4024_s18   ;;  %s2135_s17 = sphi %s2229_s17, %s4027_s17   ;;  %s2131_s16 = sphi %s2227_s16, %s4026_s16   ;;  %s2127_s15 = sphi %s2225_s15, %s4025_s15  }
   0xc   : > { %3908 = sst [smem:[#allocation14_spill]] %s2131_s16  ;;  %s1758_s20 = sadd.s32 4294967294, %s2139_s18  }
   0xd   : > { %3909 = sst [smem:[#allocation15_spill]] %s2135_s17  ;;  %s2250_s21 = sadd.s32 1, %s2139_s18  }
   0xe   : > { %3910 = sst [smem:[#allocation16_spill]] %s2139_s18  ;;  %s28_s22 = sadd.s32 1, %s2135_s17 }
   0xf   : > { %3911 = sst [smem:[#allocation17_spill]] %s2250_s21  ;;  %s25_s23 = ssub.s32 %s2139_s18, %s2250_s21 }
  0x10   : > { %p35_p0 = scmp.ne.s32.totalorder %s2135_s17, %s2131_s16  ;;  %p26_p1 = scmp.eq.s32.totalorder %s25_s23, 0 }
  0x11   : > { %p36_p2 = scmp.eq.s32.totalorder %s2139_s18, 0  ;;  %p41_p3 = scmp.ne.s32.totalorder %s2131_s16, %s2127_s15 }
  0x12   : > { %p3811_p4 = scmp.eq.s32.totalorder %s2246_s19, 0  ;;  %p128_p7 = scmp.eq.s32.totalorder %s2246_s19, 1 }
  0x13   : > { %s2262_s24 = scalar_select %p26_p1, %s2135_s17, %s28_s22  }
  0x14   : > { %p2264_p5 = por %p36_p2, %p35_p0  ;;  %p2270_p6 = por %p3811_p4, %p41_p3 }
  0x15   : > { %3912 = sst [smem:[#allocation18_spill]] %s2262_s24  ;;  %p134_p8 = scmp.eq.s32.totalorder %s1758_s20, 1 }
  0x16   : > { %s3914_s26 = scalar_select %p2270_p6, 1, 0 }
  0x17   : > { %p1759_p9 = scmp.ge.s32.totalorder %s2139_s18, 1  ;;  %p141_p10 = scmp.lt.s32.totalorder %s2139_s18, 3 }
  0x18   : > { %p2277_p11 = por %p128_p7, %p35_p0  ;;  %p2281_p12 = por %p134_p8, %p41_p3 }
  0x19   : > { %p2285_p13 = pnand %p1759_p9, %p141_p10  ;;  %s3919_s3 = sld [smem:[#allocation50_spill]] }
  0x1a   : > { %s3915_s27 = scalar_select %p2277_p11, 1, 0 }
  0x1b   : > { %s3916_s28 = scalar_select %p2281_p12, 1, 0 }
  0x1c   : > { %p1914_p1 = pneg %p2285_p13  ;;  %p1927_p2 = scmp.lt.s32.totalorder %s2139_s18, 2 }
  0x1d   : > { %3917 = sst [smem:[#allocation19_spill]] %s3916_s28  ;;  %s171_s8 = sand.u32 1, %s2135_s17  }
  0x1e   : > { %p2298_p7 = pnand %p1914_p1, %p3811_p4  ;;  %p2305_p3 = pnand %p1927_p2, %p2264_p5 }
  0x1f   : > { %s160_s6 = sshll.u32 %s3919_s3, 4  ;;  %s1762_s10 = sshll.u32 %s171_s8, 6  ;;  %s161_s6 = int_to_ptr.vmem [resolvable:$true] %s160_s6 }
  0x20   : > { %s2024_s11 = scalar_lea.vmem %s161_s6, 16  ;;  %p2026_p9 = pneg %p2298_p7 }
  0x21   : > { %p2025_p8 = scmp.ne.s32.totalorder %s161_s6, %s2024_s11  ;;  %p2032_p12 = scmp.lt.s32.totalorder %s161_s6, %s161_s6 }
  0x22   : > { %p2033_p11 = scmp.lt.s32.totalorder %s2024_s11, %s2024_s11 }
  0x23   : > { %p2027_p10 = pnand %p2026_p9, %p2025_p8 }
  0x24   : > { %p2034_p1 = por %p2033_p11, %p2032_p12 }
  0x25   : > { %p2028_p0 = pneg %p2027_p10 }
  0x27   : > { %p2035_p4 = pnand %p2034_p1, %p2028_p0 }
  0x29   : > { %2038 = shalt.err (!%p2035_p4)
}
  0x2a   : > { %s2141_s12 = smov [#allocation8]   ;;  %s1875_s13 = sshll.u32 %s2139_s18, 10 }
  0x2b   : > { %1917 = dma.vmem_to_smem (!%p2298_p7), %s161_s6, 16, %s2141_s12, [#allocation7]  }
  0x2c   : > { %s175_s14 = scalar_lea.vmem [#allocation4], %s1762_s10  ;;  %s3922_s0 = sld [smem:[#allocation47_spill]] }
  0x2d   : > { %s182_s20 = sshll.u32 %s175_s14, 4  ;;  %s2321_s30 = scalar_lea.sflag [#allocation5], %s171_s8  ;;  %s2319_s20 = int_to_ptr.vmem [resolvable:$true] %s182_s20 }
  0x2e   : > { %p2041_p5 = pneg %p2305_p3 }
  0x32   : > { %s2317_s25 = scalar_lea.hbm %s3922_s0, %s1875_s13  ;;  %s2044_s10 = scalar_lea.hbm %s3922_s0, 2048 }
  0x33   : > { %s2039_s5 = scalar_lea.hbm %s2317_s25, 1024  ;;  %p2045_p0 = scmp.lt.u32.totalorder %s2317_s25, %s3922_s0 }
  0x34   : > { %p2040_p4 = scmp.ne.s32.totalorder %s2317_s25, %s2039_s5  ;;  %p2046_p2 = scmp.lt.u32.totalorder %s2044_s10, %s2039_s5 }
  0x35   : > { %p2048_p8 = scmp.lt.u32.totalorder %s2039_s5, %s2317_s25 }
  0x36   : > { %p2042_p11 = pnand %p2041_p5, %p2040_p4  ;;  %p2047_p7 = por %p2046_p2, %p2045_p0 }
  0x38   : > { %p2043_p12 = pneg %p2042_p11  ;;  %p2049_p9 = por %p2048_p8, %p2047_p7 }
  0x3a   : > { %p2050_p10 = pnand %p2049_p9, %p2043_p12 }
  0x3c   : > { %2053 = shalt.err (!%p2050_p10)
}
  0x3d   : > { %s2054_s8 = scalar_lea.vmem %s2319_s20, 1024  ;;  %s2142_s13 = smov [#allocation4]  }
  0x3e   : > { %p2055_p1 = scmp.ne.s32.totalorder %s2319_s20, %s2054_s8  ;;  %s2059_s14 = sshll.u32 %s2142_s13, 4  ;;  %s2060_s14 = int_to_ptr.vmem [resolvable:$false] %s2059_s14 }
  0x3f   : > { %s2061_s22 = scalar_lea.vmem %s2060_s14, 2048  ;;  %p2062_p6 = scmp.lt.s32.totalorder %s2319_s20, %s2060_s14 }
  0x40   : > { %p2057_p4 = pnand %p2055_p1, %p2041_p5  ;;  %p2063_p0 = scmp.lt.s32.totalorder %s2061_s22, %s2054_s8 }
  0x42   : > { %p2058_p11 = pneg %p2057_p4  ;;  %p2064_p2 = por %p2063_p0, %p2062_p6 }
  0x44   : > { %p2065_p7 = pnand %p2064_p2, %p2058_p11 }
  0x46   : > { %2068 = shalt.err (!%p2065_p7)
}
  0x47   : > { %s2143_s23 = smov 256   ;;  %s2144_s5 = smov 16  }
  0x48   : > { %1921 = dma.hbm_to_vmem [thread:$0]  (!%p2305_p3), %s2317_s25, 1024, %s2319_s20, %s2321_s30, %s2143_s23, %s2143_s23, %s2144_s5  }
  0x49   : > { %194 = sbr.rel (%p2285_p13) target bundleno = 1304 (0x518), region = 36 }
  0x50   : > { %s2352_s6 = sand.u32 1, %s2131_s16   ;;  %p3923_p6 = scmp.ne.s32.totalorder %s3914_s26, 0 }
  0x51   : > { %s3813_s7 = sshll.u32 %s2352_s6, 6  ;;  %s197_s10 = scalar_lea.sflag [#allocation5], %s2352_s6 }
  0x52   : > { %s200_s11 = scalar_lea.vmem [#allocation4], %s3813_s7 }
  0x53   : > { %2114 = dma.done.wait (%p3923_p6), %s197_s10, 1024  }
  0x54   : > { %2116 = vsyncadd (%p3923_p6), %s197_s10, 4294966272  ;;  %p3924_p3 = scmp.eq.s32.totalorder %s2246_s19, 0 }
  0x56   : > { %2118 = dma.done.wait (%p3924_p3), [#allocation7], 16   ;;  %p3925_p13 = pmov %p3924_p3 }
  0x58   : > { %2120 = vsyncadd (%p3925_p13), [#allocation7], 4294967280 }
  0x59   : > { %209 = sfence }
  0x5a   : > { %v2366_v0 = vld [vmem:[%s200_s11 + $0x20] sm:$0xff]  ;;  %v2368_v1 = vld [vmem:[%s200_s11 + $0x28] sm:$0xff]  ;;  %v2376_v5 = vld [vmem:[%s200_s11 + $0x30] sm:$0xff]  ;;  %s3926_s1 = sld [smem:[#allocation48_spill]]  ;;  %v2145_v19 = vmov 0.0|0.0   ;;  %vm2146_vm0 = vmmov 0   ;;  %v270_v24 = vlaneseq }
  0x5b   : > { %v2370_v2 = vld [vmem:[%s200_s11] sm:$0xff]  ;;  %v244_v3 = vadd.f32 %v2368_v1, %v2366_v0  ;;  %v2374_v4 = vld [vmem:[%s200_s11 + $0x8] sm:$0xff]  ;;  %v2378_v6 = vld [vmem:[%s200_s11 + $0x38] sm:$0xff]  ;;  %v260_v15 = vmax.f32 %v2366_v0, %v2368_v1  ;;  %1900 = vmatprep.subr.bf16.mxu0 %v2145_v19  ;;  %v3878_v23 = vmov 0.0   ;;  %vm281_vm1 = vcmask 130112   ;;  %s3927_s2 = sld [smem:[#allocation49_spill]] }
  0x5c   : > { %v238_v7 = vadd.f32 %v2374_v4, %v2370_v2  ;;  %v2382_v8 = vld [vmem:[%s200_s11 + $0x10] sm:$0xff]  ;;  %v2384_v9 = vld [vmem:[%s200_s11 + $0x18] sm:$0xff]  ;;  %v247_v10 = vadd.f32 %v2378_v6, %v2376_v5  ;;  %v254_v13 = vmax.f32 %v2370_v2, %v2374_v4  ;;  %v263_v14 = vmax.f32 %v2376_v5, %v2378_v6  ;;  %1892 = vmatprep.mubr.msk.f32.mxu0 %vm2146_vm0, %v3878_v23  ;;  %s2150_s22 = smov 35   ;;  %s2151_s23 = smov 51  }
  0x5d   : > { %245 = vadd.xlane.f32.xlu1 %v244_v3  ;;  %v241_v11 = vadd.f32 %v2384_v9, %v2382_v8  ;;  %v257_v12 = vmax.f32 %v2382_v8, %v2384_v9  ;;  %610 = vst [vmem:[#allocation3 + $0x4] sm:$0x3] %v3878_v23  ;;  %1895 = vmatprep.subr.mxu1 %v3878_v23  ;;  %v2415_v25 = vand.u32 127, %v270_v24  ;;  %v2419_v28 = vshrl.u32 %v270_v24, 7  ;;  %s2152_s5 = smov 3   ;;  %s2153_s10 = smov 19  }
  0x5e   : > { %239 = vadd.xlane.f32.xlu0 %v238_v7  ;;  %1897 = vmatprep.mubr.msk.f32.mxu1 %vm2146_vm0, %v3878_v23  ;;  %vm288_vm2 = vcmask 195712   ;;  %vm295_vm3 = vcmask 261312   ;;  %vm322_vm4 = vcmask 1040384   ;;  %vm328_vm5 = vcmask 261120   ;;  %s2154_s11 = smov 99   ;;  %s2155_s26 = smov 115  }
  0x5f   : > { %v276_v27 = vadd.s32 4294967288, %v2415_v25  ;;  %v283_v30 = vadd.s32 4294967280, %v2415_v25  ;;  %v274_v33 = vsub.s32 %v2415_v25, %v2419_v28  ;;  %v290_v35 = vadd.s32 4294967272, %v2415_v25  ;;  %s2156_s29 = smov 50   ;;  %s2157_s9 = smov 83  }
  0x60   : > { %v324_v16 = vld [vmem:[%s3926_s1] sm:$0xff]  ;;  %v325_v17 = vld [vmem:[%s3926_s1 + $0x8] sm:$0xff]  ;;  %v326_v20 = vld [vmem:[%s3926_s1 + $0x10] sm:$0xff]  ;;  %vm410_vm6 = vcmask 1041408   ;;  %vm406_vm8 = vcmask 15360   ;;  %vm569_vm9 = vcmp.lt.s32.totalorder %v270_v24, 256 }
  0x61   : > { %248 = vadd.xlane.f32.xlu1 %v247_v10  ;;  %v1901_v18 = vpack.c.bf16 %v325_v17, %v324_v16  ;;  %v327_v21 = vld [vmem:[%s3926_s1 + $0x18] sm:$0xff]  ;;  %v279_v32 = vsub.s32 %v276_v27, %v2419_v28  ;;  %v286_v38 = vsub.s32 %v283_v30, %v2419_v28  ;;  %v293_v43 = vsub.s32 %v290_v35, %v2419_v28  ;;  %v405_v61 = vld [vmem:[%s3927_s2] sm:$0x3]  ;;  %s2158_s20 = smov 18   ;;  %s2159_s25 = smov 34  }
  0x62   : > { %242 = vadd.xlane.f32.xlu0 %v241_v11  ;;  %v1904_v22 = vpack.c.bf16 %v327_v21, %v326_v20  ;;  %1896 = vmatpush3.msk.msra.mxu1 %vm410_vm6, %v405_v61  ;;  %v2434_v17 = vsub.s32 0, %v2419_v28  ;;  %s3814_s30 = smov 114   ;;  %s3816_s12 = smov 2   ;;  %vm666_vm10 = vcmp.lt.s32.totalorder %v2415_v25, 51  ;;  %vm639_vm11 = vcmp.lt.s32.totalorder %v2419_v28, 1 }
  0x63   : > { %1902 = vmatpush3.bf16.msra.mxu0 %v1901_v18  ;;  %s3818_s8 = smov 82   ;;  %s3820_s13 = smov 98   ;;  %vm684_vm12 = vcmp.lt.s32.totalorder %v2415_v25, 35  ;;  %vm702_vm13 = vcmp.lt.s32.totalorder %v2415_v25, 19  ;;  %vm720_vm14 = vcmp.lt.s32.totalorder %v2415_v25, 3  ;;  %vm738_vm15 = vcmp.lt.s32.totalorder %v2415_v25, 115 }
  0x64   : > { %1903 = vmatprep.subr.bf16.mxu0 %v2145_v19  ;;  %3928 = vst [vmem:[#allocation20_spill] sm:$0xff] %v2434_v17  ;;  %s3822_s14 = smov 33   ;;  %s3824_s7 = smov 49   ;;  %vm756_vm0 = vcmp.lt.s32.totalorder %v2415_v25, 99  ;;  %vm878_vm6 = vcmp.lt.s32.totalorder %v2415_v25, 114 }
  0x65   : > { %258 = vmax.xlane.f32.xlu1 %v257_v12  ;;  %s3287_s0 = sld [smem:[#allocation8 + $0x3d]]  ;;  %s3289_s1 = sld [smem:[#allocation8 + $0x13]] }
  0x66   : > { %255 = vmax.xlane.f32.xlu0 %v254_v13  ;;  %s3291_s2 = sld [smem:[#allocation8 + $0x44]]  ;;  %s3297_s3 = sld [smem:[#allocation8 + $0x6]] }
  0x67   : > { %1905 = vmatpush3.bf16.msra.mxu0 %v1904_v22  ;;  %s3299_s24 = sld [smem:[#allocation8 + $0x37]]  ;;  %s3301_s17 = sld [smem:[#allocation8 + $0xd]] }
  0x68   : > { %s3303_s16 = sld [smem:[#allocation8 + $0x3e]]  ;;  %s3305_s21 = sld [smem:[#allocation8 + $0x1a]] }
  0x69   : > { %264 = vmax.xlane.f32.xlu1 %v263_v14  ;;  %s3307_s18 = sld [smem:[#allocation8 + $0x4b]]  ;;  %s3311_s28 = sld [smem:[#allocation8 + $0x14]] }
  0x6a   : > { %261 = vmax.xlane.f32.xlu0 %v260_v15  ;;  %s3313_s15 = sld [smem:[#allocation8 + $0x45]]  ;;  %p4017_p12 = scmp.ne.s32.totalorder %s3915_s27, 0 }
  0xea   : > { %v246_v26 = vpop.xlane.xlu1 %245 }
  0xeb   : > { %v240_v29 = vpop.xlane.xlu0 %239  ;;  %v252_v39 = vmul.f32 0.00390625, %v246_v26 }
  0xec   : > { %v250_v34 = vmul.f32 0.00390625, %v240_v29 }
  0xed   : > { %v287_v49 = vrot.slane %v252_v39, %v286_v38 }
  0xee   : > { %v249_v31 = vpop.xlane.xlu1 %248  ;;  %v275_v42 = vrot.slane %v250_v34, %v274_v33 }
  0xef   : > { %v243_v36 = vpop.xlane.xlu0 %242  ;;  %v253_v44 = vmul.f32 0.00390625, %v249_v31 }
  0xf0   : > { %v251_v37 = vmul.f32 0.00390625, %v243_v36 }
  0xf1   : > { %v294_v51 = vrot.slane %v253_v44, %v293_v43 }
  0xf2   : > { %v280_v40 = vrot.slane %v251_v37, %v279_v32  ;;  %v259_v41 = vpop.xlane.xlu1 %258 }
  0xf3   : > { %v256_v45 = vpop.xlane.xlu0 %255  ;;  %v309_v47 = vrot.slane %v259_v41, %v279_v32 }
  0xf4   : > { %v282_v46 = vsel %vm281_vm1, %v280_v40, %v275_v42  ;;  %v305_v48 = vrot.slane %v256_v45, %v274_v33 }
  0xf5   : > { %v289_v55 = vsel %vm288_vm2, %v287_v49, %v282_v46  ;;  %v2148_v46 = vmov 1966171168  }
  0xf6   : > { %v265_v50 = vpop.xlane.xlu1 %264  ;;  %v310_v56 = vsel %vm281_vm1, %v309_v47, %v305_v48  ;;  %v296_v58 = vsel %vm295_vm3, %v294_v51, %v289_v55  ;;  %v553_v47 = vunpack.c.l.s4 %v2148_v46  ;;  %vm774_vm1 = vcmp.lt.s32.totalorder %v2415_v25, 83 }
  0xf7   : > { %v262_v52 = vpop.xlane.xlu0 %261  ;;  %v319_v53 = vrot.slane %v265_v50, %v293_v43 }
  0xf8   : > { %v314_v54 = vrot.slane %v262_v52, %v286_v38 }
  0xfa   : > { %v315_v57 = vsel %vm288_vm2, %v314_v54, %v310_v56  ;;  %v554_v56 = vunpack.c.0.s8 %v553_v47  ;;  %vm806_vm2 = vcmp.lt.s32.totalorder %v2415_v25, 50 }
  0xfb   : > { %v320_v59 = vsel %vm295_vm3, %v319_v53, %v315_v57  ;;  %vm824_vm3 = vcmp.lt.s32.totalorder %v2415_v25, 34 }
  0xfc   : > { %v323_v60 = vsel %vm322_vm4, %v296_v58, %v320_v59  ;;  %vm842_vm4 = vcmp.lt.s32.totalorder %v2415_v25, 18 }
  0xfd   : > { %1893 = vmatmul.mubr.msk.f32.vlgmr.msra.gmra.mrb[0].mxu0 %vm328_vm5, %v323_v60  ;;  %vm860_vm5 = vcmp.lt.s32.totalorder %v2415_v25, 2 }
 0x1d0   : > { %v398_v62 = vpop.f32.mrb[0].mxu0 }
 0x1d1   : > { %vm402_vm7 = vcmp.ge.f32.partialorder %v398_v62, 0.0  ;;  %v403_v63 = vmul.f32 0.01, %v398_v62  ;;  %v1894_v3 = vpop.f32.mrb[1].mxu0 }
 0x1d3   : > { %v404_v7 = vsel %vm402_vm7, %v398_v62, %v403_v63  ;;  %vm896_vm7 = vcmp.lt.s32.totalorder %v2415_v25, 98 }
 0x1d4   : > { %1898 = vmatmul.mubr.msk.f32.vlgmr.msra.gmra.mrb[0].mxu1 %vm406_vm8, %v404_v7  ;;  %v557_v7 = vsub.s32 %v554_v56, %v2419_v28 }
 0x2a7   : > { %v480_v10 = vpop.f32.mrb[0].mxu1 }
 0x2a8   : > { %v485_v11 = vrot.slane %v480_v10, 1  ;;  %v1899_v12 = vpop.f32.mrb[1].mxu1 }
 0x2aa   : > { %v487_v13 = vadd.f32 %v485_v11, %v480_v10 }
 0x2ac   : > { %v1772_v14 = vmul.f32 -1.442695, %v487_v13 }
 0x2ae   : > { %2020 = vpow2.f32 %v1772_v14 }
 0x2b8   : > { %v2021_v15 = vpop.eup %2020 }
 0x2b9   : > { %v491_v16 = vadd.f32 1.0, %v2021_v15 }
 0x2bb   : > { %2022 = vrcp.f32 %v491_v16  ;;  %v2149_v16 = vmov 1983009808  }
 0x2c5   : > { %v2023_v18 = vpop.eup %2022 }
 0x2c6   : > { %v497_v19 = vrot.slane %v2023_v18, %v2434_v17  ;;  %v643_v18 = vunpack.c.l.s4 %v2149_v16 }
 0x2c8   : > { %503 = vbcast.lane.b32.xlu1 %v497_v19, 264  ;;  %499 = vbcast.lane.b32.xlu0 %v497_v19, 256 }
 0x2cc   : > { %507 = vbcast.lane.b32.xlu1 %v497_v19, 272 }
 0x2d0   : > { %511 = vbcast.lane.b32.xlu1 %v497_v19, 280 }
 0x33a   : > { %v504_v20 = vpop.permute.xlu1 %503  ;;  %v500_v21 = vpop.permute.xlu0 %499 }
 0x33b   : > { %v2438_v22 = vmul.f32 %v504_v20, %v2382_v8  ;;  %v2441_v26 = vmul.f32 %v504_v20, %v2384_v9  ;;  %v2444_v27 = vmul.f32 %v500_v21, %v2370_v2  ;;  %v2447_v29 = vmul.f32 %v500_v21, %v2374_v4 }
 0x33d   : > { %3929 = vst [vmem:[#allocation21_spill] sm:$0xff] %v2438_v22  ;;  %3930 = vst [vmem:[#allocation22_spill] sm:$0xff] %v2441_v26  ;;  %v529_v8 = vadd.f32 %v2438_v22, %v2444_v27  ;;  %v538_v9 = vadd.f32 %v2441_v26, %v2447_v29 }
 0x33e   : > { %3931 = vst [vmem:[#allocation23_spill] sm:$0xff] %v2444_v27  ;;  %3932 = vst [vmem:[#allocation24_spill] sm:$0xff] %v2447_v29  ;;  %v508_v30 = vpop.permute.xlu1 %507 }
 0x33f   : > { %v2450_v31 = vmul.f32 %v508_v30, %v2366_v0  ;;  %v2453_v32 = vmul.f32 %v508_v30, %v2368_v1 }
 0x341   : > { %3933 = vst [vmem:[#allocation25_spill] sm:$0xff] %v2450_v31  ;;  %3934 = vst [vmem:[#allocation26_spill] sm:$0xff] %v2453_v32  ;;  %v530_v2 = vadd.f32 %v529_v8, %v2450_v31  ;;  %v539_v34 = vadd.f32 %v538_v9, %v2453_v32  ;;  %v572_v1 = vmax.f32 %v2444_v27, %v2450_v31  ;;  %v644_v8 = vunpack.c.0.s8 %v643_v18 }
 0x342   : > { %v512_v33 = vpop.permute.xlu1 %511  ;;  %v581_v35 = vmax.f32 %v2447_v29, %v2453_v32 }
 0x343   : > { %v2462_v4 = vmul.f32 %v512_v33, %v2376_v5  ;;  %v2465_v0 = vmul.f32 %v512_v33, %v2378_v6  ;;  %v647_v9 = vsub.s32 %v644_v8, %v2419_v28 }
 0x345   : > { %3935 = vst [vmem:[#allocation27_spill] sm:$0xff] %v2462_v4  ;;  %3936 = vst [vmem:[#allocation28_spill] sm:$0xff] %v2465_v0  ;;  %v531_v36 = vadd.f32 %v530_v2, %v2462_v4  ;;  %v540_v37 = vadd.f32 %v539_v34, %v2465_v0  ;;  %v573_v38 = vmax.f32 %v2438_v22, %v2462_v4 }
 0x346   : > { %v582_v5 = vmax.f32 %v2441_v26, %v2465_v0 }
 0x347   : > { %v532_v39 = vrot.slane %v531_v36, 4  ;;  %v541_v40 = vrot.slane %v540_v37, 4  ;;  %v574_v6 = vmax.f32 %v572_v1, %v573_v38 }
 0x348   : > { %v583_v41 = vmax.f32 %v581_v35, %v582_v5 }
 0x349   : > { %v533_v42 = vadd.f32 %v532_v39, %v531_v36  ;;  %v542_v43 = vadd.f32 %v541_v40, %v540_v37  ;;  %v575_v44 = vrot.slane %v574_v6, 4 }
 0x34a   : > { %v584_v45 = vrot.slane %v583_v41, 4 }
 0x34b   : > { %v534_v48 = vrot.slane %v533_v42, 2  ;;  %v543_v49 = vrot.slane %v542_v43, 2  ;;  %v576_v50 = vmax.f32 %v574_v6, %v575_v44 }
 0x34c   : > { %v585_v51 = vmax.f32 %v583_v41, %v584_v45 }
 0x34d   : > { %v535_v52 = vadd.f32 %v534_v48, %v533_v42  ;;  %v544_v53 = vadd.f32 %v543_v49, %v542_v43  ;;  %v577_v54 = vrot.slane %v576_v50, 2 }
 0x34e   : > { %v586_v55 = vrot.slane %v585_v51, 2 }
 0x34f   : > { %v536_v57 = vrot.slane %v535_v52, 1  ;;  %v545_v58 = vrot.slane %v544_v53, 1  ;;  %v578_v59 = vmax.f32 %v576_v50, %v577_v54 }
 0x350   : > { %v587_v60 = vmax.f32 %v585_v51, %v586_v55 }
 0x351   : > { %v537_v61 = vadd.f32 %v536_v57, %v535_v52  ;;  %v546_v62 = vadd.f32 %v545_v58, %v544_v53  ;;  %v579_v63 = vrot.slane %v578_v59, 1 }
 0x352   : > { %v588_v3 = vrot.slane %v587_v60, 1 }
 0x353   : > { %v547_v10 = vmul.f32 0.03125, %v537_v61  ;;  %v548_v11 = vmul.f32 0.03125, %v546_v62  ;;  %v580_v12 = vmax.f32 %v578_v59, %v579_v63 }
 0x354   : > { %v589_v13 = vmax.f32 %v587_v60, %v588_v3 }
 0x355   : > { %v551_v14 = vcombine.low %v547_v10, %v548_v11 }
 0x356   : > { %v592_v15 = vcombine.low %v580_v12, %v589_v13 }
 0x357   : > { %v558_v19 = vrot.slane %v551_v14, %v557_v7 }
 0x358   : > { %v599_v20 = vrot.slane %v592_v15, %v557_v7 }
 0x359   : > { %v565_v21 = vrot.slane %v558_v19, %v557_v7 }
 0x35a   : > { %v606_v30 = vrot.slane %v599_v20, %v557_v7 }
 0x35b   : > { %571 = vst.msk [vmem:[#allocation3] ss:$2 sm:$0x3] %vm569_vm9, %v565_v21 }
 0x35c   : > { %609 = vst.msk [vmem:[#allocation3 + $0x1] ss:$2 sm:$0x3] %vm569_vm9, %v606_v30  ;;  %vm914_vm9 = vcmp.lt.s32.totalorder %v2415_v25, 82 }
 0x363   : > { %v611_v33 = vld [vmem:[#allocation3] sm:$0x3f] }
 0x364   : > { %v641_v2 = vcombine.high %v611_v33, %v611_v33  ;;  %v2480_v34 = vrot.slane %v611_v33, %v647_v9 }
 0x366   : > { %v2482_v1 = vrot.slane %v641_v2, %v647_v9  ;;  %678 = vrot.lane.b32.xlu1 %v2480_v34, %s2150_s22  ;;  %660 = vrot.lane.b32.xlu0 %v2480_v34, %s2151_s23  ;;  %v2582_v24 = vcombine.high %v2480_v34, %v2480_v34 }
 0x36a   : > { %714 = vrot.lane.b32.xlu1 %v2480_v34, %s2152_s5  ;;  %696 = vrot.lane.b32.xlu0 %v2480_v34, %s2153_s10 }
 0x36e   : > { %750 = vrot.lane.b32.xlu1 %v2480_v34, %s2154_s11  ;;  %732 = vrot.lane.b32.xlu0 %v2480_v34, %s2155_s26 }
 0x372   : > { %800 = vrot.lane.b32.xlu1 %v2480_v34, %s2156_s29  ;;  %768 = vrot.lane.b32.xlu0 %v2480_v34, %s2157_s9 }
 0x376   : > { %836 = vrot.lane.b32.xlu1 %v2480_v34, %s2158_s20  ;;  %818 = vrot.lane.b32.xlu0 %v2480_v34, %s2159_s25 }
 0x37a   : > { %872 = vrot.lane.b32.xlu1 %v2480_v34, %s3814_s30  ;;  %854 = vrot.lane.b32.xlu0 %v2480_v34, %s3816_s12  ;;  %s3826_s30 = smov 1   ;;  %s3828_s12 = smov 17  }
 0x37e   : > { %908 = vrot.lane.b32.xlu1 %v2480_v34, %s3818_s8  ;;  %890 = vrot.lane.b32.xlu0 %v2480_v34, %s3820_s13  ;;  %s3830_s8 = smov 97   ;;  %s3832_s13 = smov 113  }
 0x382   : > { %958 = vrot.lane.b32.xlu1 %v2480_v34, %s3822_s14  ;;  %940 = vrot.lane.b32.xlu0 %v2480_v34, %s3824_s7  ;;  %s3834_s14 = smov 48   ;;  %s3836_s7 = smov 81  }
 0x386   : > { %994 = vrot.lane.b32.xlu1 %v2480_v34, %s3826_s30  ;;  %976 = vrot.lane.b32.xlu0 %v2480_v34, %s3828_s12  ;;  %s3838_s30 = smov 16   ;;  %s3840_s12 = smov 32  }
 0x38a   : > { %1030 = vrot.lane.b32.xlu1 %v2480_v34, %s3830_s8  ;;  %1012 = vrot.lane.b32.xlu0 %v2480_v34, %s3832_s13  ;;  %s3842_s8 = smov 96   ;;  %s3844_s13 = smov 112  }
 0x38e   : > { %1080 = vrot.lane.b32.xlu1 %v2480_v34, %s3834_s14  ;;  %1048 = vrot.lane.b32.xlu0 %v2480_v34, %s3836_s7  ;;  %s3846_s14 = smov 47   ;;  %s3848_s7 = smov 80  }
 0x392   : > { %1116 = vrot.lane.b32.xlu1 %v2480_v34, %s3838_s30  ;;  %1098 = vrot.lane.b32.xlu0 %v2480_v34, %s3840_s12  ;;  %s3850_s30 = smov 15   ;;  %s3852_s12 = smov 31  }
 0x396   : > { %1161 = vrot.lane.b32.xlu1 %v2480_v34, %s3842_s8  ;;  %1143 = vrot.lane.b32.xlu0 %v2480_v34, %s3844_s13  ;;  %s3854_s8 = smov 111   ;;  %s3856_s13 = smov 127  }
 0x39a   : > { %1199 = vrot.lane.b32.xlu1 %v2480_v34, %s3846_s14  ;;  %1179 = vrot.lane.b32.xlu0 %v2480_v34, %s3848_s7  ;;  %s3858_s14 = smov 79   ;;  %s3860_s7 = smov 95  }
 0x39e   : > { %1235 = vrot.lane.b32.xlu1 %v2480_v34, %s3850_s30  ;;  %1217 = vrot.lane.b32.xlu0 %v2480_v34, %s3852_s12  ;;  %s3862_s30 = smov 30   ;;  %s3864_s12 = smov 46  }
 0x3a2   : > { %1271 = vrot.lane.b32.xlu1 %v2480_v34, %s3854_s8  ;;  %1253 = vrot.lane.b32.xlu0 %v2480_v34, %s3856_s13  ;;  %s3866_s8 = smov 45   ;;  %s3868_s13 = smov 14  }
 0x3a6   : > { %1307 = vrot.lane.b32.xlu1 %v2480_v34, %s3858_s14  ;;  %1289 = vrot.lane.b32.xlu0 %v2480_v34, %s3860_s7  ;;  %s3870_s14 = smov 126   ;;  %s3872_s7 = smov 29  }
 0x3aa   : > { %1357 = vrot.lane.b32.xlu1 %v2480_v34, %s3862_s30  ;;  %1339 = vrot.lane.b32.xlu0 %v2480_v34, %s3864_s12  ;;  %s3874_s30 = smov 110   ;;  %s3876_s12 = smov 13  }
 0x3ae   : > { %1479 = vrot.lane.b32.xlu1 %v2480_v34, %s3866_s8  ;;  %1375 = vrot.lane.b32.xlu0 %v2480_v34, %s3868_s13  ;;  %s2192_s8 = smov 94   ;;  %s2193_s13 = smov 125  }
 0x3b2   : > { %1393 = vrot.lane.b32.xlu1 %v2480_v34, %s3870_s14  ;;  %1497 = vrot.lane.b32.xlu0 %v2480_v34, %s3872_s7  ;;  %s2194_s14 = smov 78   ;;  %s2195_s7 = smov 109  }
 0x3b6   : > { %1411 = vrot.lane.b32.xlu1 %v2480_v34, %s3874_s30  ;;  %1515 = vrot.lane.b32.xlu0 %v2480_v34, %s3876_s12  ;;  %s3890_s30 = smov 77   ;;  %s2197_s12 = smov 93  }
 0x3ba   : > { %1429 = vrot.lane.b32.xlu1 %v2480_v34, %s2192_s8  ;;  %1533 = vrot.lane.b32.xlu0 %v2480_v34, %s2193_s13 }
 0x3be   : > { %1447 = vrot.lane.b32.xlu1 %v2480_v34, %s2194_s14  ;;  %1551 = vrot.lane.b32.xlu0 %v2480_v34, %s2195_s7 }
 0x3c2   : > { %1587 = vrot.lane.b32.xlu1 %v2480_v34, %s3890_s30  ;;  %1569 = vrot.lane.b32.xlu0 %v2480_v34, %s2197_s12  ;;  %s3975_s30 = smov 45  }
 0x3c6   : > { %662 = vrot.lane.b32.xlu1 %v2582_v24, %s2151_s23  ;;  %664 = vrot.lane.b32.xlu0 %v2482_v1, %s2151_s23  ;;  %s3938_s23 = smov 114  }
 0x3ca   : > { %682 = vrot.lane.b32.xlu1 %v2482_v1, %s2150_s22  ;;  %680 = vrot.lane.b32.xlu0 %v2582_v24, %s2150_s22  ;;  %s3937_s22 = smov 2  }
 0x3ce   : > { %698 = vrot.lane.b32.xlu1 %v2582_v24, %s2153_s10  ;;  %700 = vrot.lane.b32.xlu0 %v2482_v1, %s2153_s10  ;;  %s3940_s10 = smov 82  }
 0x3d2   : > { %718 = vrot.lane.b32.xlu1 %v2482_v1, %s2152_s5  ;;  %716 = vrot.lane.b32.xlu0 %v2582_v24, %s2152_s5  ;;  %s3939_s5 = smov 98  }
 0x3d6   : > { %734 = vrot.lane.b32.xlu1 %v2582_v24, %s2155_s26  ;;  %736 = vrot.lane.b32.xlu0 %v2482_v1, %s2155_s26  ;;  %s3942_s26 = smov 33  }
 0x3d8   : > { %v2604_v35 = vpop.permute.xlu1 %678  ;;  %v2606_v36 = vpop.permute.xlu0 %660 }
 0x3da   : > { %754 = vrot.lane.b32.xlu1 %v2482_v1, %s2154_s11  ;;  %752 = vrot.lane.b32.xlu0 %v2582_v24, %s2154_s11  ;;  %s3941_s11 = smov 49  }
 0x3dc   : > { %v2612_v37 = vpop.permute.xlu1 %714  ;;  %v2614_v38 = vpop.permute.xlu0 %696 }
 0x3de   : > { %770 = vrot.lane.b32.xlu1 %v2582_v24, %s2157_s9  ;;  %772 = vrot.lane.b32.xlu0 %v2482_v1, %s2157_s9  ;;  %s3944_s9 = smov 1  }
 0x3e0   : > { %v2620_v5 = vpop.permute.xlu1 %750  ;;  %v2622_v39 = vpop.permute.xlu0 %732 }
 0x3e2   : > { %804 = vrot.lane.b32.xlu1 %v2482_v1, %s2156_s29  ;;  %802 = vrot.lane.b32.xlu0 %v2582_v24, %s2156_s29  ;;  %s3943_s29 = smov 17  }
 0x3e4   : > { %v2628_v40 = vpop.permute.xlu1 %800  ;;  %v2630_v6 = vpop.permute.xlu0 %768 }
 0x3e6   : > { %820 = vrot.lane.b32.xlu1 %v2582_v24, %s2159_s25  ;;  %822 = vrot.lane.b32.xlu0 %v2482_v1, %s2159_s25  ;;  %s3946_s25 = smov 97  }
 0x3e8   : > { %v2636_v41 = vpop.permute.xlu1 %836  ;;  %v2638_v42 = vpop.permute.xlu0 %818 }
 0x3ea   : > { %840 = vrot.lane.b32.xlu1 %v2482_v1, %s2158_s20  ;;  %838 = vrot.lane.b32.xlu0 %v2582_v24, %s2158_s20  ;;  %s3945_s20 = smov 113  }
 0x3ec   : > { %v2644_v43 = vpop.permute.xlu1 %872  ;;  %v2646_v44 = vpop.permute.xlu0 %854 }
 0x3ee   : > { %856 = vrot.lane.b32.xlu1 %v2582_v24, %s3937_s22  ;;  %858 = vrot.lane.b32.xlu0 %v2482_v1, %s3937_s22  ;;  %s3947_s22 = smov 81  }
 0x3f0   : > { %v2652_v45 = vpop.permute.xlu1 %908  ;;  %v2654_v46 = vpop.permute.xlu0 %890 }
 0x3f2   : > { %876 = vrot.lane.b32.xlu1 %v2482_v1, %s3938_s23  ;;  %874 = vrot.lane.b32.xlu0 %v2582_v24, %s3938_s23  ;;  %s3949_s23 = smov 48  }
 0x3f4   : > { %v2660_v47 = vpop.permute.xlu1 %958  ;;  %v2662_v48 = vpop.permute.xlu0 %940 }
 0x3f6   : > { %892 = vrot.lane.b32.xlu1 %v2582_v24, %s3939_s5  ;;  %894 = vrot.lane.b32.xlu0 %v2482_v1, %s3939_s5  ;;  %s3950_s5 = smov 32  }
 0x3f8   : > { %v2668_v49 = vpop.permute.xlu1 %994  ;;  %v2670_v50 = vpop.permute.xlu0 %976 }
 0x3fa   : > { %912 = vrot.lane.b32.xlu1 %v2482_v1, %s3940_s10  ;;  %910 = vrot.lane.b32.xlu0 %v2582_v24, %s3940_s10  ;;  %s3952_s10 = smov 16  }
 0x3fc   : > { %v2676_v51 = vpop.permute.xlu1 %1030  ;;  %v2678_v52 = vpop.permute.xlu0 %1012 }
 0x3fe   : > { %942 = vrot.lane.b32.xlu1 %v2582_v24, %s3941_s11  ;;  %944 = vrot.lane.b32.xlu0 %v2482_v1, %s3941_s11  ;;  %s3955_s11 = smov 112  }
 0x400   : > { %v2684_v53 = vpop.permute.xlu1 %1080  ;;  %v2686_v54 = vpop.permute.xlu0 %1048 }
 0x402   : > { %962 = vrot.lane.b32.xlu1 %v2482_v1, %s3942_s26  ;;  %960 = vrot.lane.b32.xlu0 %v2582_v24, %s3942_s26  ;;  %s3958_s26 = smov 96  }
 0x404   : > { %v2692_v55 = vpop.permute.xlu1 %1116  ;;  %v2694_v56 = vpop.permute.xlu0 %1098 }
 0x406   : > { %978 = vrot.lane.b32.xlu1 %v2582_v24, %s3943_s29  ;;  %980 = vrot.lane.b32.xlu0 %v2482_v1, %s3943_s29  ;;  %s3961_s29 = smov 80  }
 0x408   : > { %v2700_v57 = vpop.permute.xlu1 %1161  ;;  %v2702_v58 = vpop.permute.xlu0 %1143 }
 0x40a   : > { %998 = vrot.lane.b32.xlu1 %v2482_v1, %s3944_s9  ;;  %996 = vrot.lane.b32.xlu0 %v2582_v24, %s3944_s9  ;;  %s669_s9 = sld [smem:[#allocation8]] }
 0x40c   : > { %v2708_v59 = vpop.permute.xlu1 %1199  ;;  %v2710_v60 = vpop.permute.xlu0 %1179 }
 0x40e   : > { %1014 = vrot.lane.b32.xlu1 %v2582_v24, %s3945_s20  ;;  %1016 = vrot.lane.b32.xlu0 %v2482_v1, %s3945_s20  ;;  %s1773_s20 = sld [smem:[#allocation8 + $0x31]] }
 0x410   : > { %v2716_v61 = vpop.permute.xlu1 %1235  ;;  %v2718_v62 = vpop.permute.xlu0 %1217  ;;  %v671_v2 = vstv %s669_s9  ;;  %s2819_s9 = sld [smem:[#allocation8 + $0x1c]] }
 0x412   : > { %1034 = vrot.lane.b32.xlu1 %v2482_v1, %s3946_s25  ;;  %1032 = vrot.lane.b32.xlu0 %v2582_v24, %s3946_s25  ;;  %s1774_s25 = sld [smem:[#allocation8 + $0x7]] }
 0x414   : > { %v2724_v63 = vpop.permute.xlu1 %1271  ;;  %v2726_v3 = vpop.permute.xlu0 %1253  ;;  %v672_v23 = vstv %s1773_s20  ;;  %s2821_s20 = sld [smem:[#allocation8 + $0x4d]] }
 0x415   : > { %v673_v26 = vsel %vm639_vm11, %v671_v2, %v672_v23 }
 0x416   : > { %1050 = vrot.lane.b32.xlu1 %v2582_v24, %s3947_s22  ;;  %1052 = vrot.lane.b32.xlu0 %v2482_v1, %s3947_s22  ;;  %s1775_s22 = sld [smem:[#allocation8 + $0x38]] }
 0x418   : > { %v2732_v7 = vpop.permute.xlu1 %1307  ;;  %v2734_v10 = vpop.permute.xlu0 %1289  ;;  %v689_v32 = vstv %s1774_s25  ;;  %s3969_s25 = smov 127  }
 0x419   : > { %3948 = vst [vmem:[#allocation29_spill] sm:$0xff] %v2732_v7 }
 0x41a   : > { %1084 = vrot.lane.b32.xlu1 %v2482_v1, %s3949_s23  ;;  %1082 = vrot.lane.b32.xlu0 %v2582_v24, %s3949_s23  ;;  %s3964_s23 = smov 47  }
 0x41c   : > { %v2740_v11 = vpop.permute.xlu1 %1357  ;;  %v2742_v12 = vpop.permute.xlu0 %1339  ;;  %v690_v31 = vstv %s1775_s22  ;;  %s2834_s22 = sld [smem:[#allocation8 + $0x23]] }
 0x41d   : > { %v691_v27 = vsel %vm639_vm11, %v689_v32, %v690_v31 }
 0x41e   : > { %1100 = vrot.lane.b32.xlu1 %v2582_v24, %s3950_s5  ;;  %1102 = vrot.lane.b32.xlu0 %v2482_v1, %s3950_s5  ;;  %s2792_s5 = sld [smem:[#allocation8 + $0xe]] }
 0x420   : > { %v2748_v13 = vpop.permute.xlu1 %1479  ;;  %v2750_v14 = vpop.permute.xlu0 %1375 }
 0x421   : > { %3951 = vst [vmem:[#allocation30_spill] sm:$0xff] %v2748_v13 }
 0x422   : > { %1120 = vrot.lane.b32.xlu1 %v2482_v1, %s3952_s10  ;;  %1118 = vrot.lane.b32.xlu0 %v2582_v24, %s3952_s10  ;;  %s3323_s10 = sld [smem:[#allocation8 + $0x21]] }
 0x424   : > { %v2756_v15 = vpop.permute.xlu1 %1393  ;;  %v2758_v16 = vpop.permute.xlu0 %1497 }
 0x425   : > { %3953 = vst [vmem:[#allocation31_spill] sm:$0xff] %v2756_v15  ;;  %3954 = vst [vmem:[#allocation32_spill] sm:$0xff] %v2758_v16 }
 0x426   : > { %1145 = vrot.lane.b32.xlu1 %v2582_v24, %s3955_s11  ;;  %1147 = vrot.lane.b32.xlu0 %v2482_v1, %s3955_s11  ;;  %s2794_s11 = sld [smem:[#allocation8 + $0x3f]] }
 0x428   : > { %v2764_v18 = vpop.permute.xlu1 %1411  ;;  %v2766_v19 = vpop.permute.xlu0 %1515 }
 0x429   : > { %3956 = vst [vmem:[#allocation33_spill] sm:$0xff] %v2764_v18  ;;  %3957 = vst [vmem:[#allocation34_spill] sm:$0xff] %v2766_v19 }
 0x42a   : > { %1165 = vrot.lane.b32.xlu1 %v2482_v1, %s3958_s26  ;;  %1163 = vrot.lane.b32.xlu0 %v2582_v24, %s3958_s26  ;;  %s3967_s26 = smov 31  }
 0x42c   : > { %v2772_v20 = vpop.permute.xlu1 %1429  ;;  %v2774_v21 = vpop.permute.xlu0 %1533 }
 0x42d   : > { %3959 = vst [vmem:[#allocation35_spill] sm:$0xff] %v2772_v20  ;;  %3960 = vst [vmem:[#allocation36_spill] sm:$0xff] %v2774_v21 }
 0x42e   : > { %1181 = vrot.lane.b32.xlu1 %v2582_v24, %s3961_s29  ;;  %1183 = vrot.lane.b32.xlu0 %v2482_v1, %s3961_s29  ;;  %s2801_s29 = sld [smem:[#allocation8 + $0x15]] }
 0x430   : > { %v2780_v30 = vpop.permute.xlu1 %1447  ;;  %v2782_v8 = vpop.permute.xlu0 %1551 }
 0x431   : > { %3962 = vst [vmem:[#allocation37_spill] sm:$0xff] %v2780_v30  ;;  %3963 = vst [vmem:[#allocation38_spill] sm:$0xff] %v2782_v8  ;;  %v708_v30 = vstv %s2794_s11  ;;  %s3970_s11 = smov 111  }
 0x432   : > { %1203 = vrot.lane.b32.xlu1 %v2482_v1, %s3964_s23  ;;  %1201 = vrot.lane.b32.xlu0 %v2582_v24, %s3964_s23  ;;  %s2803_s23 = sld [smem:[#allocation8 + $0x46]] }
 0x434   : > { %v2788_v9 = vpop.permute.xlu1 %1587  ;;  %v2790_v33 = vpop.permute.xlu0 %1569  ;;  %v725_v20 = vstv %s2801_s29  ;;  %s2849_s29 = sld [smem:[#allocation8 + $0x2a]] }
 0x435   : > { %3965 = vst [vmem:[#allocation39_spill] sm:$0xff] %v2788_v9  ;;  %3966 = vst [vmem:[#allocation40_spill] sm:$0xff] %v2790_v33  ;;  %v707_v33 = vstv %s2792_s5  ;;  %s2836_s5 = sld [smem:[#allocation8 + $0x54]] }
 0x436   : > { %1219 = vrot.lane.b32.xlu1 %v2582_v24, %s3967_s26  ;;  %1221 = vrot.lane.b32.xlu0 %v2482_v1, %s3967_s26  ;;  %s3968_s26 = smov 15   ;;  %v709_v31 = vsel %vm639_vm11, %v707_v33, %v708_v30 }
 0x438   : > { %v663_v0 = vpop.permute.xlu1 %662  ;;  %v665_v4 = vpop.permute.xlu0 %664 }
 0x439   : > { %v667_v22 = vsel %vm666_vm10, %v2606_v36, %v663_v0  ;;  %v668_v29 = vsel %vm666_vm10, %v665_v4, %v2606_v36 }
 0x43a   : > { %1239 = vrot.lane.b32.xlu1 %v2482_v1, %s3968_s26  ;;  %1237 = vrot.lane.b32.xlu0 %v2582_v24, %s3968_s26  ;;  %v675_v23 = vmul.f32 %v673_v26, %v667_v22  ;;  %v674_v8 = vmul.f32 %v673_v26, %v668_v29  ;;  %v726_v26 = vstv %s2803_s23  ;;  %s2851_s23 = sld [smem:[#allocation8 + $0x5b]]  ;;  %s3971_s26 = smov 95  }
 0x43b   : > { %v727_v30 = vsel %vm639_vm11, %v725_v20, %v726_v26 }
 0x43c   : > { %v683_v17 = vpop.permute.xlu1 %682  ;;  %v681_v9 = vpop.permute.xlu0 %680 }
 0x43d   : > { %v686_v0 = vsel %vm684_vm12, %v683_v17, %v2604_v35  ;;  %v685_v2 = vsel %vm684_vm12, %v2604_v35, %v681_v9 }
 0x43e   : > { %v692_v4 = vmul.f32 %v691_v27, %v686_v0  ;;  %v693_v36 = vmul.f32 %v691_v27, %v685_v2  ;;  %1255 = vrot.lane.b32.xlu1 %v2582_v24, %s3969_s25  ;;  %1257 = vrot.lane.b32.xlu0 %v2482_v1, %s3969_s25  ;;  %s2874_s25 = sld [smem:[#allocation8 + $0x32]] }
 0x440   : > { %v694_v32 = vadd.f32 %v692_v4, %v674_v8  ;;  %v695_v22 = vadd.f32 %v693_v36, %v675_v23  ;;  %v699_v21 = vpop.permute.xlu1 %698  ;;  %v701_v17 = vpop.permute.xlu0 %700 }
 0x441   : > { %v703_v27 = vsel %vm702_vm13, %v2614_v38, %v699_v21  ;;  %v704_v29 = vsel %vm702_vm13, %v701_v17, %v2614_v38  ;;  %v743_v21 = vstv %s2819_s9  ;;  %v744_v38 = vstv %s2821_s20  ;;  %s3972_s9 = smov 46   ;;  %s2872_s20 = sld [smem:[#allocation8 + $0x1]] }
 0x442   : > { %v711_v35 = vmul.f32 %v709_v31, %v703_v27  ;;  %v710_v9 = vmul.f32 %v709_v31, %v704_v29  ;;  %1275 = vrot.lane.b32.xlu1 %v2482_v1, %s3970_s11  ;;  %1273 = vrot.lane.b32.xlu0 %v2582_v24, %s3970_s11  ;;  %v745_v20 = vsel %vm639_vm11, %v743_v21, %v744_v38  ;;  %v761_v27 = vstv %s2834_s22  ;;  %s2878_s22 = sld [smem:[#allocation8 + $0x8]]  ;;  %s3973_s11 = smov 30  }
 0x443   : > { %v779_v21 = vstv %s2849_s29  ;;  %v780_v38 = vstv %s2851_s23  ;;  %s2890_s29 = sld [smem:[#allocation8 + $0xf]]  ;;  %s2892_s23 = sld [smem:[#allocation8 + $0x40]] }
 0x444   : > { %v713_v8 = vadd.f32 %v711_v35, %v695_v22  ;;  %v712_v33 = vadd.f32 %v710_v9, %v694_v32  ;;  %v719_v23 = vpop.permute.xlu1 %718  ;;  %v717_v0 = vpop.permute.xlu0 %716 }
 0x445   : > { %v722_v2 = vsel %vm720_vm14, %v719_v23, %v2612_v37  ;;  %v721_v4 = vsel %vm720_vm14, %v2612_v37, %v717_v0  ;;  %v762_v37 = vstv %s2836_s5  ;;  %s2880_s5 = sld [smem:[#allocation8 + $0x39]]  ;;  %vm946_vm14 = vcmp.lt.s32.totalorder %v2415_v25, 49 }
 0x446   : > { %v728_v36 = vmul.f32 %v727_v30, %v722_v2  ;;  %v729_v31 = vmul.f32 %v727_v30, %v721_v4  ;;  %1291 = vrot.lane.b32.xlu1 %v2582_v24, %s3971_s26  ;;  %1293 = vrot.lane.b32.xlu0 %v2482_v1, %s3971_s26  ;;  %s3974_s26 = smov 14  }
 0x448   : > { %v730_v32 = vadd.f32 %v728_v36, %v712_v33  ;;  %v731_v22 = vadd.f32 %v729_v31, %v713_v8  ;;  %v735_v17 = vpop.permute.xlu1 %734  ;;  %v737_v26 = vpop.permute.xlu0 %736  ;;  %v763_v8 = vsel %vm639_vm11, %v761_v27, %v762_v37 }
 0x449   : > { %v740_v29 = vsel %vm738_vm15, %v2622_v39, %v735_v17  ;;  %v739_v35 = vsel %vm738_vm15, %v735_v17, %v737_v26  ;;  %vm964_vm15 = vcmp.lt.s32.totalorder %v2415_v25, 33 }
 0x44a   : > { %v746_v9 = vmul.f32 %v745_v20, %v740_v29  ;;  %v747_v30 = vmul.f32 %v745_v20, %v739_v35  ;;  %1341 = vrot.lane.b32.xlu1 %v2582_v24, %s3972_s9  ;;  %1343 = vrot.lane.b32.xlu0 %v2482_v1, %s3972_s9  ;;  %v781_v20 = vsel %vm639_vm11, %v779_v21, %v780_v38  ;;  %v811_v35 = vstv %s2872_s20  ;;  %s2908_s9 = sld [smem:[#allocation8 + $0x16]]  ;;  %s2925_s20 = sld [smem:[#allocation8 + $0x1d]] }
 0x44c   : > { %v748_v33 = vadd.f32 %v746_v9, %v730_v32  ;;  %v749_v39 = vadd.f32 %v747_v30, %v731_v22  ;;  %v755_v23 = vpop.permute.xlu1 %754  ;;  %v753_v0 = vpop.permute.xlu0 %752  ;;  %v812_v9 = vstv %s2874_s25  ;;  %s2927_s25 = sld [smem:[#allocation8 + $0x4e]] }
 0x44d   : > { %v757_v2 = vsel %vm756_vm0, %v753_v0, %v755_v23  ;;  %v758_v4 = vsel %vm756_vm0, %v2620_v5, %v753_v0  ;;  %v830_v23 = vstv %s2880_s5  ;;  %v813_v0 = vsel %vm639_vm11, %v811_v35, %v812_v9  ;;  %s2942_s5 = sld [smem:[#allocation8 + $0x55]] }
 0x44e   : > { %v764_v36 = vmul.f32 %v763_v8, %v758_v4  ;;  %v765_v31 = vmul.f32 %v763_v8, %v757_v2  ;;  %1361 = vrot.lane.b32.xlu1 %v2482_v1, %s3973_s11  ;;  %1359 = vrot.lane.b32.xlu0 %v2582_v24, %s3973_s11  ;;  %s2910_s11 = sld [smem:[#allocation8 + $0x47]]  ;;  %vm982_vm0 = vcmp.lt.s32.totalorder %v2415_v25, 17 }
 0x450   : > { %v766_v32 = vadd.f32 %v764_v36, %v748_v33  ;;  %v767_v22 = vadd.f32 %v765_v31, %v749_v39  ;;  %v771_v17 = vpop.permute.xlu1 %770  ;;  %v773_v26 = vpop.permute.xlu0 %772  ;;  %v829_v39 = vstv %s2878_s22  ;;  %v847_v31 = vstv %s2890_s29  ;;  %s2940_s22 = sld [smem:[#allocation8 + $0x24]]  ;;  %s3977_s29 = smov 126  }
 0x451   : > { %v776_v5 = vsel %vm774_vm1, %v2630_v6, %v771_v17  ;;  %v775_v27 = vsel %vm774_vm1, %v771_v17, %v773_v26  ;;  %v831_v2 = vsel %vm639_vm11, %v829_v39, %v830_v23  ;;  %v612_v23 = vadd.s32 128, %v2415_v25 }
 0x452   : > { %v782_v37 = vmul.f32 %v781_v20, %v776_v5  ;;  %v783_v29 = vmul.f32 %v781_v20, %v775_v27  ;;  %1377 = vrot.lane.b32.xlu1 %v2582_v24, %s3974_s26  ;;  %1379 = vrot.lane.b32.xlu0 %v2482_v1, %s3974_s26  ;;  %v848_v20 = vstv %s2892_s23  ;;  %s2960_s23 = sld [smem:[#allocation8 + $0x2b]]  ;;  %s2962_s26 = sld [smem:[#allocation8 + $0x5c]]  ;;  %vm1000_vm1 = vcmp.lt.s32.totalorder %v2415_v25, 1 }
 0x453   : > { %v849_v27 = vsel %vm639_vm11, %v847_v31, %v848_v20  ;;  %v884_v20 = vstv %s2927_s25  ;;  %s2994_s25 = sld [smem:[#allocation8 + $0x33]] }
 0x454   : > { %v2902_v30 = vadd.f32 %v782_v37, %v766_v32  ;;  %v2904_v8 = vadd.f32 %v783_v29, %v767_v22  ;;  %v805_v33 = vpop.permute.xlu1 %804  ;;  %v803_v6 = vpop.permute.xlu0 %802 }
 0x455   : > { %v808_v21 = vsel %vm806_vm2, %v805_v33, %v2628_v40  ;;  %v807_v38 = vsel %vm806_vm2, %v2628_v40, %v803_v6  ;;  %v866_v33 = vstv %s2910_s11  ;;  %s3979_s11 = smov 110   ;;  %vm1018_vm2 = vcmp.lt.s32.totalorder %v2415_v25, 113 }
 0x456   : > { %1483 = vrot.lane.b32.xlu1 %v2482_v1, %s3975_s30  ;;  %1481 = vrot.lane.b32.xlu0 %v2582_v24, %s3975_s30  ;;  %v814_v22 = vmul.f32 %v813_v0, %v808_v21  ;;  %v815_v17 = vmul.f32 %v813_v0, %v807_v38  ;;  %s3976_s30 = smov 29  }
 0x458   : > { %v821_v4 = vpop.permute.xlu1 %820  ;;  %v823_v36 = vpop.permute.xlu0 %822 }
 0x459   : > { %v825_v32 = vsel %vm824_vm3, %v2638_v42, %v821_v4  ;;  %v826_v40 = vsel %vm824_vm3, %v823_v36, %v2638_v42  ;;  %v865_v42 = vstv %s2908_s9  ;;  %s3978_s9 = smov 13   ;;  %vm1036_vm3 = vcmp.lt.s32.totalorder %v2415_v25, 97 }
 0x45a   : > { %v833_v26 = vmul.f32 %v831_v2, %v825_v32  ;;  %v832_v5 = vmul.f32 %v831_v2, %v826_v40  ;;  %1499 = vrot.lane.b32.xlu1 %v2582_v24, %s3976_s30  ;;  %1501 = vrot.lane.b32.xlu0 %v2482_v1, %s3976_s30  ;;  %v867_v38 = vsel %vm639_vm11, %v865_v42, %v866_v33  ;;  %v2965_v32 = vand.u32 15, %v2415_v25  ;;  %s2998_s30 = sld [smem:[#allocation8 + $0x9]] }
 0x45b   : > { %v902_v42 = vstv %s2942_s5  ;;  %s3014_s5 = sld [smem:[#allocation8 + $0x10]] }
 0x45c   : > { %v835_v37 = vadd.f32 %v833_v26, %v815_v17  ;;  %v834_v29 = vadd.f32 %v832_v5, %v814_v22  ;;  %v841_v35 = vpop.permute.xlu1 %840  ;;  %v839_v9 = vpop.permute.xlu0 %838  ;;  %v2969_v17 = vand.u32 15, %v612_v23  ;;  %v786_v33 = vadd.s32 4294967293, %v2965_v32 }
 0x45d   : > { %v844_v6 = vsel %vm842_vm4, %v841_v35, %v2636_v41  ;;  %v843_v39 = vsel %vm842_vm4, %v2636_v41, %v839_v9  ;;  %v883_v41 = vstv %s2925_s20  ;;  %s2992_s20 = sld [smem:[#allocation8 + $0x2]]  ;;  %vm1054_vm4 = vcmp.lt.s32.totalorder %v2415_v25, 81 }
 0x45e   : > { %v850_v0 = vmul.f32 %v849_v27, %v844_v6  ;;  %v851_v21 = vmul.f32 %v849_v27, %v843_v39  ;;  %1397 = vrot.lane.b32.xlu1 %v2482_v1, %s3977_s29  ;;  %1395 = vrot.lane.b32.xlu0 %v2582_v24, %s3977_s29  ;;  %v885_v27 = vsel %vm639_vm11, %v883_v41, %v884_v20  ;;  %v787_v23 = vadd.s32 4294967293, %v2969_v17  ;;  %s3016_s29 = sld [smem:[#allocation8 + $0x41]] }
 0x45f   : > { %v919_v20 = vstv %s2960_s23  ;;  %vm788_vm8 = vcmp.ge.s32.totalorder %v786_v33, 0  ;;  %s3033_s23 = sld [smem:[#allocation8 + $0x17]] }
 0x460   : > { %v852_v2 = vadd.f32 %v850_v0, %v834_v29  ;;  %v853_v4 = vadd.f32 %v851_v21, %v835_v37  ;;  %v857_v36 = vpop.permute.xlu1 %856  ;;  %v859_v31 = vpop.permute.xlu0 %858  ;;  %vm789_vm10 = vcmp.ge.s32.totalorder %v787_v23, 0 }
 0x461   : > { %v861_v40 = vsel %vm860_vm5, %v2646_v44, %v857_v36  ;;  %v862_v22 = vsel %vm860_vm5, %v859_v31, %v2646_v44  ;;  %v901_v44 = vstv %s2940_s22  ;;  %s3000_s22 = sld [smem:[#allocation8 + $0x3a]] }
 0x462   : > { %v869_v26 = vmul.f32 %v867_v38, %v861_v40  ;;  %v868_v5 = vmul.f32 %v867_v38, %v862_v22  ;;  %1517 = vrot.lane.b32.xlu1 %v2582_v24, %s3978_s9  ;;  %1519 = vrot.lane.b32.xlu0 %v2482_v1, %s3978_s9  ;;  %v903_v38 = vsel %vm639_vm11, %v901_v44, %v902_v42  ;;  %v920_v40 = vstv %s2962_s26  ;;  %s3035_s26 = sld [smem:[#allocation8 + $0x48]]  ;;  %s3060_s9 = sld [smem:[#allocation8 + $0x1e]] }
 0x463   : > { %v3980_v44 = vmov 0.0   ;;  %v951_v33 = vstv %s2992_s20  ;;  %s3081_s20 = sld [smem:[#allocation8 + $0x56]] }
 0x464   : > { %v871_v37 = vadd.f32 %v869_v26, %v853_v4  ;;  %v870_v29 = vadd.f32 %v868_v5, %v852_v2  ;;  %v877_v35 = vpop.permute.xlu1 %876  ;;  %v875_v9 = vpop.permute.xlu0 %874  ;;  %v926_v2 = vadd.s32 4294967294, %v2965_v32  ;;  %v794_v42 = vsel %vm788_vm8, 1.0, %v3980_v44 }
 0x465   : > { %v879_v6 = vsel %vm878_vm6, %v875_v9, %v877_v35  ;;  %v880_v39 = vsel %vm878_vm6, %v2644_v43, %v875_v9  ;;  %v927_v43 = vadd.s32 4294967294, %v2969_v17  ;;  %v795_v23 = vsel %vm789_vm10, 1.0, %v3980_v44 }
 0x466   : > { %v886_v0 = vmul.f32 %v885_v27, %v880_v39  ;;  %v887_v21 = vmul.f32 %v885_v27, %v879_v6  ;;  %1415 = vrot.lane.b32.xlu1 %v2482_v1, %s3979_s11  ;;  %1413 = vrot.lane.b32.xlu0 %v2582_v24, %s3979_s11  ;;  %vm928_vm12 = vcmp.ge.s32.totalorder %v926_v2, 0  ;;  %s3062_s11 = sld [smem:[#allocation8 + $0x4f]]  ;;  %vm1104_vm8 = vcmp.lt.s32.totalorder %v2415_v25, 32 }
 0x467   : > { %vm929_vm13 = vcmp.ge.s32.totalorder %v927_v43, 0  ;;  %v952_v43 = vstv %s2994_s25  ;;  %s3100_s25 = sld [smem:[#allocation8 + $0x5d]]  ;;  %vm1149_vm10 = vcmp.lt.s32.totalorder %v2415_v25, 112 }
 0x468   : > { %v888_v4 = vadd.f32 %v886_v0, %v870_v29  ;;  %v889_v36 = vadd.f32 %v887_v21, %v871_v37  ;;  %v893_v31 = vpop.permute.xlu1 %892  ;;  %v895_v41 = vpop.permute.xlu0 %894  ;;  %v921_v37 = vsel %vm639_vm11, %v919_v20, %v920_v40  ;;  %v934_v0 = vsel %vm928_vm12, 1.0, %v3980_v44 }
 0x469   : > { %v898_v22 = vsel %vm896_vm7, %v2654_v46, %v893_v31  ;;  %v897_v26 = vsel %vm896_vm7, %v893_v31, %v895_v41  ;;  %v935_v2 = vsel %vm929_vm13, 1.0, %v3980_v44  ;;  %v969_v41 = vstv %s2998_s30  ;;  %s3125_s30 = sld [smem:[#allocation8 + $0x34]] }
 0x46a   : > { %v904_v5 = vmul.f32 %v903_v38, %v898_v22  ;;  %v905_v27 = vmul.f32 %v903_v38, %v897_v26  ;;  %1535 = vrot.lane.b32.xlu1 %v2582_v24, %s2193_s13  ;;  %1537 = vrot.lane.b32.xlu0 %v2482_v1, %s2193_s13  ;;  %s3981_s13 = smov 79   ;;  %v970_v20 = vstv %s3000_s22  ;;  %v796_v40 = vmul.f32 %v794_v42, %v2902_v30  ;;  %s3129_s22 = sld [smem:[#allocation8 + $0xa]] }
 0x46b   : > { %v797_v22 = vmul.f32 %v795_v23, %v2904_v8  ;;  %v971_v30 = vsel %vm639_vm11, %v969_v41, %v970_v20  ;;  %v987_v42 = vstv %s3014_s5  ;;  %s3131_s5 = sld [smem:[#allocation8 + $0x3b]]  ;;  %vm1086_vm7 = vcmp.lt.s32.totalorder %v2415_v25, 48 }
 0x46c   : > { %v906_v46 = vadd.f32 %v904_v5, %v888_v4  ;;  %v907_v29 = vadd.f32 %v905_v27, %v889_v36  ;;  %v913_v35 = vpop.permute.xlu1 %912  ;;  %v911_v9 = vpop.permute.xlu0 %910  ;;  %v953_v27 = vsel %vm639_vm11, %v951_v33, %v952_v43  ;;  %vm1167_vm12 = vcmp.lt.s32.totalorder %v2415_v25, 96 }
 0x46d   : > { %v915_v6 = vsel %vm914_vm9, %v911_v9, %v913_v35  ;;  %v916_v39 = vsel %vm914_vm9, %v2652_v45, %v911_v9  ;;  %vm1122_vm9 = vcmp.lt.s32.totalorder %v2415_v25, 16  ;;  %vm1185_vm13 = vcmp.lt.s32.totalorder %v2415_v25, 80 }
 0x46e   : > { %v922_v21 = vmul.f32 %v921_v37, %v916_v39  ;;  %v923_v38 = vmul.f32 %v921_v37, %v915_v6  ;;  %1309 = vrot.lane.b32.xlu1 %v2582_v24, %s3981_s13  ;;  %1311 = vrot.lane.b32.xlu0 %v2482_v1, %s3981_s13  ;;  %v988_v6 = vstv %s3016_s29  ;;  %s3138_s29 = sld [smem:[#allocation8 + $0x18]]  ;;  %s3141_s13 = sld [smem:[#allocation8 + $0x49]] }
 0x470   : > { %v924_v45 = vadd.f32 %v922_v21, %v906_v46  ;;  %v925_v4 = vadd.f32 %v923_v38, %v907_v29  ;;  %v943_v36 = vpop.permute.xlu1 %942  ;;  %v945_v31 = vpop.permute.xlu0 %944 }
 0x471   : > { %v947_v37 = vsel %vm946_vm14, %v2662_v48, %v943_v36  ;;  %v948_v46 = vsel %vm946_vm14, %v945_v31, %v2662_v48  ;;  %v1006_v36 = vstv %s3035_s26  ;;  %s3147_s26 = sld [smem:[#allocation8 + $0x42]]  ;;  %vm1223_vm14 = vcmp.lt.s32.totalorder %v2415_v25, 31 }
 0x472   : > { %v936_v26 = vmul.f32 %v934_v0, %v924_v45  ;;  %v937_v5 = vmul.f32 %v935_v2, %v925_v4  ;;  %1433 = vrot.lane.b32.xlu1 %v2482_v1, %s2192_s8  ;;  %1431 = vrot.lane.b32.xlu0 %v2582_v24, %s2192_s8  ;;  %v955_v23 = vmul.f32 %v953_v27, %v947_v37  ;;  %s3079_s8 = sld [smem:[#allocation8 + $0x25]] }
 0x473   : > { %v954_v0 = vmul.f32 %v953_v27, %v948_v46  ;;  %v989_v2 = vsel %vm639_vm11, %v987_v42, %v988_v6  ;;  %v1024_v46 = vstv %s3062_s11  ;;  %s3159_s11 = sld [smem:[#allocation8 + $0x50]] }
 0x474   : > { %v3054_v8 = vadd.f32 %v936_v26, %v796_v40  ;;  %v3056_v29 = vadd.f32 %v937_v5, %v797_v22  ;;  %v963_v35 = vpop.permute.xlu1 %962  ;;  %v961_v9 = vpop.permute.xlu0 %960 }
 0x475   : > { %v966_v48 = vsel %vm964_vm15, %v963_v35, %v2660_v47  ;;  %v965_v39 = vsel %vm964_vm15, %v2660_v47, %v961_v9  ;;  %v1005_v47 = vstv %s3033_s23  ;;  %s3145_s23 = sld [smem:[#allocation8 + $0x11]]  ;;  %vm1205_vm15 = vcmp.lt.s32.totalorder %v2415_v25, 47 }
 0x476   : > { %v972_v21 = vmul.f32 %v971_v30, %v966_v48  ;;  %v973_v38 = vmul.f32 %v971_v30, %v965_v39  ;;  %1553 = vrot.lane.b32.xlu1 %v2582_v24, %s2195_s7  ;;  %1555 = vrot.lane.b32.xlu0 %v2482_v1, %s2195_s7  ;;  %v1007_v22 = vsel %vm639_vm11, %v1005_v47, %v1006_v36  ;;  %s3096_s7 = sld [smem:[#allocation8 + $0x2c]]  ;;  %v1066_v47 = vadd.s32 4294967295, %v2965_v32 }
 0x478   : > { %v974_v33 = vadd.f32 %v972_v21, %v954_v0  ;;  %v975_v43 = vadd.f32 %v973_v38, %v955_v23  ;;  %v979_v45 = vpop.permute.xlu1 %978  ;;  %v981_v4 = vpop.permute.xlu0 %980  ;;  %v1041_v21 = vstv %s3079_s8  ;;  %vm1068_vm5 = vcmp.ge.s32.totalorder %v1066_v47, 0  ;;  %s3176_s8 = sld [smem:[#allocation8 + $0x26]] }
 0x479   : > { %v983_v31 = vsel %vm982_vm0, %v2670_v50, %v979_v45  ;;  %v984_v41 = vsel %vm982_vm0, %v981_v4, %v2670_v50  ;;  %v1023_v50 = vstv %s3060_s9  ;;  %s3157_s9 = sld [smem:[#allocation8 + $0x1f]]  ;;  %vm1241_vm0 = vcmp.lt.s32.totalorder %v2415_v25, 15 }
 0x47a   : > { %v991_v20 = vmul.f32 %v989_v2, %v983_v31  ;;  %v990_v40 = vmul.f32 %v989_v2, %v984_v41  ;;  %1451 = vrot.lane.b32.xlu1 %v2482_v1, %s2194_s14  ;;  %1449 = vrot.lane.b32.xlu0 %v2582_v24, %s2194_s14  ;;  %v1025_v6 = vsel %vm639_vm11, %v1023_v50, %v1024_v46  ;;  %s3982_s14 = smov 77  }
 0x47c   : > { %v993_v26 = vadd.f32 %v991_v20, %v975_v43  ;;  %v992_v5 = vadd.f32 %v990_v40, %v974_v33  ;;  %v999_v27 = vpop.permute.xlu1 %998  ;;  %v997_v37 = vpop.permute.xlu0 %996  ;;  %v1059_v4 = vstv %s3096_s7  ;;  %v1067_v20 = vadd.s32 4294967295, %v2969_v17  ;;  %s3195_s7 = sld [smem:[#allocation8 + $0x2d]] }
 0x47d   : > { %v1002_v30 = vsel %vm1000_vm1, %v999_v27, %v2668_v49  ;;  %v1001_v35 = vsel %vm1000_vm1, %v2668_v49, %v997_v37  ;;  %v1042_v49 = vstv %s3081_s20  ;;  %s3178_s20 = sld [smem:[#allocation8 + $0x57]]  ;;  %vm1259_vm1 = vcmp.lt.s32.totalorder %v2415_v25, 127 }
 0x47e   : > { %v1008_v9 = vmul.f32 %v1007_v22, %v1002_v30  ;;  %v1009_v42 = vmul.f32 %v1007_v22, %v1001_v35  ;;  %1571 = vrot.lane.b32.xlu1 %v2582_v24, %s2197_s12  ;;  %1573 = vrot.lane.b32.xlu0 %v2482_v1, %s2197_s12  ;;  %v1043_v45 = vsel %vm639_vm11, %v1041_v21, %v1042_v49  ;;  %s3123_s12 = sld [smem:[#allocation8 + $0x3]]  ;;  %vm1069_vm6 = vcmp.ge.s32.totalorder %v1067_v20, 0 }
 0x47f   : > { %v1127_v20 = vstv %s3145_s23  ;;  %s3267_s23 = sld [smem:[#allocation8 + $0x4a]] }
 0x480   : > { %v1010_v48 = vadd.f32 %v1008_v9, %v992_v5  ;;  %v1011_v39 = vadd.f32 %v1009_v42, %v993_v26  ;;  %v1015_v23 = vpop.permute.xlu1 %1014  ;;  %v1017_v0 = vpop.permute.xlu0 %1016  ;;  %v1074_v9 = vsel %vm1068_vm5, 1.0, %v3980_v44  ;;  %vm1363_vm5 = vcmp.lt.s32.totalorder %v2415_v25, 30 }
 0x481   : > { %v1020_v38 = vsel %vm1018_vm2, %v2678_v52, %v1015_v23  ;;  %v1019_v2 = vsel %vm1018_vm2, %v1015_v23, %v1017_v0  ;;  %v1092_v23 = vstv %s3125_s30  ;;  %s3253_s30 = sld [smem:[#allocation8 + $0xb]]  ;;  %vm1277_vm2 = vcmp.lt.s32.totalorder %v2415_v25, 111 }
 0x482   : > { %v1026_v33 = vmul.f32 %v1025_v6, %v1020_v38  ;;  %v1027_v43 = vmul.f32 %v1025_v6, %v1019_v2  ;;  %1591 = vrot.lane.b32.xlu1 %v2482_v1, %s3982_s14  ;;  %1589 = vrot.lane.b32.xlu0 %v2582_v24, %s3982_s14  ;;  %v1060_v1 = vstv %s3100_s25  ;;  %v1109_v2 = vstv %s3129_s22  ;;  %s3197_s25 = sld [smem:[#allocation8 + $0x5e]]  ;;  %s3249_s14 = sld [smem:[#allocation8 + $0x4]] }
 0x483   : > { %v1061_v27 = vsel %vm639_vm11, %v1059_v4, %v1060_v1  ;;  %v1137_v4 = vstv %s3141_s13  ;;  %s3255_s22 = sld [smem:[#allocation8 + $0x3c]]  ;;  %s3265_s13 = sld [smem:[#allocation8 + $0x19]] }
 0x484   : > { %v1028_v52 = vadd.f32 %v1026_v33, %v1010_v48  ;;  %v1029_v36 = vadd.f32 %v1027_v43, %v1011_v39  ;;  %v1035_v31 = vpop.permute.xlu1 %1034  ;;  %v1033_v41 = vpop.permute.xlu0 %1032  ;;  %v1075_v48 = vsel %vm1069_vm6, 1.0, %v3980_v44  ;;  %v1091_v39 = vstv %s3123_s12  ;;  %s3251_s12 = sld [smem:[#allocation8 + $0x35]] }
 0x485   : > { %v1037_v40 = vsel %vm1036_vm3, %v1033_v41, %v1035_v31  ;;  %v1038_v22 = vsel %vm1036_vm3, %v2676_v51, %v1033_v41  ;;  %v1136_v33 = vstv %s3138_s29  ;;  %v1093_v47 = vsel %vm639_vm11, %v1091_v39, %v1092_v23  ;;  %s3263_s29 = sld [smem:[#allocation8 + $0x43]] }
 0x486   : > { %v1044_v26 = vmul.f32 %v1043_v45, %v1038_v22  ;;  %v1045_v5 = vmul.f32 %v1043_v45, %v1037_v40  ;;  %v1128_v40 = vstv %s3147_s26  ;;  %s3269_s26 = sld [smem:[#allocation8 + $0x20]]  ;;  %vm1295_vm6 = vcmp.lt.s32.totalorder %v2415_v25, 95 }
 0x488   : > { %v1046_v37 = vadd.f32 %v1044_v26, %v1028_v52  ;;  %v1047_v50 = vadd.f32 %v1045_v5, %v1029_v36  ;;  %v1051_v46 = vpop.permute.xlu1 %1050  ;;  %v1053_v30 = vpop.permute.xlu0 %1052 }
 0x489   : > { %v1056_v51 = vsel %vm1054_vm4, %v2686_v54, %v1051_v46  ;;  %v1055_v35 = vsel %vm1054_vm4, %v1051_v46, %v1053_v30  ;;  %v1110_v54 = vstv %s3131_s5  ;;  %v1129_v30 = vsel %vm639_vm11, %v1127_v20, %v1128_v40  ;;  %s3261_s5 = sld [smem:[#allocation8 + $0x12]] }
 0x48a   : > { %v1062_v42 = vmul.f32 %v1061_v27, %v1056_v51  ;;  %v1063_v6 = vmul.f32 %v1061_v27, %v1055_v35  ;;  %v1111_v31 = vsel %vm639_vm11, %v1109_v2, %v1110_v54  ;;  %v1190_v40 = vstv %s3195_s7  ;;  %s3283_s7 = sld [smem:[#allocation8 + $0x36]] }
 0x48c   : > { %v1064_v0 = vadd.f32 %v1062_v42, %v1046_v37  ;;  %v1065_v21 = vadd.f32 %v1063_v6, %v1047_v50  ;;  %v1085_v49 = vpop.permute.xlu1 %1084  ;;  %v1083_v38 = vpop.permute.xlu0 %1082  ;;  %v1154_v42 = vstv %s3157_s9  ;;  %v1155_v6 = vstv %s3159_s11  ;;  %s3271_s9 = sld [smem:[#allocation8 + $0x51]]  ;;  %s3273_s11 = sld [smem:[#allocation8 + $0x27]] }
 0x48d   : > { %v1088_v52 = vsel %vm1086_vm7, %v1085_v49, %v2684_v53  ;;  %v1087_v36 = vsel %vm1086_vm7, %v2684_v53, %v1083_v38  ;;  %vm1345_vm7 = vcmp.lt.s32.totalorder %v2415_v25, 46 }
 0x48e   : > { %v1076_v43 = vmul.f32 %v1074_v9, %v1064_v0  ;;  %v1077_v45 = vmul.f32 %v1075_v48, %v1065_v21  ;;  %v1094_v27 = vmul.f32 %v1093_v47, %v1088_v52  ;;  %v1095_v37 = vmul.f32 %v1093_v47, %v1087_v36 }
 0x48f   : > { %v1156_v21 = vsel %vm639_vm11, %v1154_v42, %v1155_v6 }
 0x490   : > { %v1101_v41 = vpop.permute.xlu1 %1100  ;;  %v1103_v1 = vpop.permute.xlu0 %1102  ;;  %v3181_v22 = vadd.f32 %v1076_v43, %v3054_v8  ;;  %v3184_v26 = vadd.f32 %v1077_v45, %v3056_v29  ;;  %v1138_v8 = vsel %vm639_vm11, %v1136_v33, %v1137_v4  ;;  %v1172_v43 = vstv %s3176_s8  ;;  %s3275_s8 = sld [smem:[#allocation8 + $0x58]] }
 0x491   : > { %v1105_v53 = vsel %vm1104_vm8, %v2694_v56, %v1101_v41  ;;  %v1106_v5 = vsel %vm1104_vm8, %v1103_v1, %v2694_v56  ;;  %v1139_v0 = vmul.f32 %v1138_v8, %v2480_v34  ;;  %v1140_v49 = vmul.f32 %v1138_v8, %v2582_v24 }
 0x492   : > { %v1113_v50 = vmul.f32 %v1111_v31, %v1105_v53  ;;  %v1112_v46 = vmul.f32 %v1111_v31, %v1106_v5  ;;  %v1173_v45 = vstv %s3178_s20  ;;  %v1191_v53 = vstv %s3197_s25  ;;  %s3281_s20 = sld [smem:[#allocation8 + $0x5]]  ;;  %s3285_s25 = sld [smem:[#allocation8 + $0xc]] }
 0x493   : > { %v1174_v24 = vsel %vm639_vm11, %v1172_v43, %v1173_v45  ;;  %vm1381_vm8 = vcmp.lt.s32.totalorder %v2415_v25, 14 }
 0x494   : > { %v1115_v51 = vadd.f32 %v1113_v50, %v1095_v37  ;;  %v1114_v35 = vadd.f32 %v1112_v46, %v1094_v27  ;;  %v1121_v29 = vpop.permute.xlu1 %1120  ;;  %v1119_v9 = vpop.permute.xlu0 %1118  ;;  %v1192_v50 = vsel %vm639_vm11, %v1190_v40, %v1191_v53  ;;  %v1265_v40 = vstv %s3267_s23  ;;  %s3388_s23 = sld [smem:[#allocation8 + $0x22]] }
 0x495   : > { %v1124_v56 = vsel %vm1122_vm9, %v1121_v29, %v2692_v55  ;;  %v1123_v48 = vsel %vm1122_vm9, %v2692_v55, %v1119_v9  ;;  %v1282_v53 = vstv %s3269_s26  ;;  %vm1313_vm9 = vcmp.lt.s32.totalorder %v2415_v25, 79 }
 0x496   : > { %v1130_v39 = vmul.f32 %v1129_v30, %v1124_v56  ;;  %v1131_v23 = vmul.f32 %v1129_v30, %v1123_v48 }
 0x498   : > { %v1132_v38 = vadd.f32 %v1130_v39, %v1114_v35  ;;  %v1133_v2 = vadd.f32 %v1131_v23, %v1115_v51  ;;  %v1146_v54 = vpop.permute.xlu1 %1145  ;;  %v1148_v33 = vpop.permute.xlu0 %1147 }
 0x499   : > { %v1151_v55 = vsel %vm1149_vm10, %v2702_v58, %v1146_v54  ;;  %v1150_v4 = vsel %vm1149_vm10, %v1146_v54, %v1148_v33 }
 0x49a   : > { %v1141_v47 = vadd.f32 %v1139_v0, %v1132_v38  ;;  %v1157_v34 = vmul.f32 %v1156_v21, %v1151_v55  ;;  %v1142_v52 = vadd.f32 %v1140_v49, %v1133_v2  ;;  %v1158_v36 = vmul.f32 %v1156_v21, %v1150_v4 }
 0x49c   : > { %v1159_v31 = vadd.f32 %v1157_v34, %v1141_v47  ;;  %v1160_v41 = vadd.f32 %v1158_v36, %v1142_v52  ;;  %v1166_v1 = vpop.permute.xlu1 %1165  ;;  %v1164_v20 = vpop.permute.xlu0 %1163  ;;  %v1210_v47 = vstv %s3249_s14  ;;  %v1211_v34 = vstv %s3251_s12  ;;  %s3325_s14 = sld [smem:[#allocation8 + $0x52]]  ;;  %s3331_s12 = sld [smem:[#allocation8 + $0x1b]] }
 0x49d   : > { %v1168_v5 = vsel %vm1167_vm12, %v1164_v20, %v1166_v1  ;;  %v1169_v27 = vsel %vm1167_vm12, %v2700_v57, %v1164_v20  ;;  %v1228_v52 = vstv %s3253_s30  ;;  %v1229_v36 = vstv %s3255_s22  ;;  %s3333_s30 = sld [smem:[#allocation8 + $0x4c]]  ;;  %s3339_s22 = sld [smem:[#allocation8 + $0x2e]] }
 0x49e   : > { %v1175_v58 = vmul.f32 %v1174_v24, %v1169_v27  ;;  %v1176_v37 = vmul.f32 %v1174_v24, %v1168_v5  ;;  %v1246_v24 = vstv %s3261_s5  ;;  %v1264_v20 = vstv %s3265_s13  ;;  %s3341_s5 = sld [smem:[#allocation8 + $0x5f]]  ;;  %s3386_s13 = sld [smem:[#allocation8 + $0x59]] }
 0x49f   : > { %v1283_v5 = vstv %s3271_s9  ;;  %v1300_v27 = vstv %s3273_s11  ;;  %vm1485_vm12 = vcmp.lt.s32.totalorder %v2415_v25, 45  ;;  %s1660_s9 = scalar_lea.sflag [#allocation6], %s2352_s6 }
 0x4a0   : > { %v1177_v46 = vadd.f32 %v1175_v58, %v1159_v31  ;;  %v1178_v30 = vadd.f32 %v1176_v37, %v1160_v41  ;;  %v1182_v8 = vpop.permute.xlu1 %1181  ;;  %v1184_v51 = vpop.permute.xlu0 %1183  ;;  %v1247_v31 = vstv %s3263_s29  ;;  %v1301_v58 = vstv %s3275_s8  ;;  %s3380_s29 = sld [smem:[#allocation8 + $0x28]]  ;;  %s2198_s8 = smov [#allocation9]  }
 0x4a1   : > { %v1187_v35 = vsel %vm1185_vm13, %v2710_v60, %v1182_v8  ;;  %v1186_v29 = vsel %vm1185_vm13, %v1182_v8, %v1184_v51  ;;  %v1350_v37 = vstv %s3281_s20  ;;  %v3356_v8 = vsel %vm639_vm11, %v1246_v24, %v1247_v31  ;;  %s2073_s20 = sshll.u32 %s2198_s8, 4  ;;  %s2074_s20 = int_to_ptr.vmem [resolvable:$false] %s2073_s20 }
 0x4a2   : > { %v1193_v9 = vmul.f32 %v1192_v50, %v1187_v35  ;;  %v1194_v42 = vmul.f32 %v1192_v50, %v1186_v29  ;;  %v1351_v50 = vstv %s3283_s7  ;;  %v3360_v51 = vsel %vm639_vm11, %v1264_v20, %v1265_v40  ;;  %s2075_s7 = scalar_lea.vmem %s2074_s20, 2048 }
 0x4a3   : > { %v3364_v35 = vsel %vm639_vm11, %v1282_v53, %v1283_v5  ;;  %v1326_v24 = vadd.s32 1, %v2969_v17  ;;  %v1490_v31 = vstv %s3297_s3  ;;  %v1491_v20 = vstv %s3299_s24  ;;  %s3479_s3 = sld [smem:[#allocation8 + $0x29]] }
 0x4a4   : > { %v1195_v6 = vadd.f32 %v1193_v9, %v1177_v46  ;;  %v1196_v56 = vadd.f32 %v1194_v42, %v1178_v30  ;;  %v3223_v48 = vpop.permute.xlu1 %1203  ;;  %v3225_v57 = vpop.permute.xlu0 %1201  ;;  %v3345_v46 = vsel %vm639_vm11, %v1210_v47, %v1211_v34  ;;  %v3350_v30 = vsel %vm639_vm11, %v1228_v52, %v1229_v36 }
 0x4a5   : > { %v3370_v9 = vsel %vm639_vm11, %v1300_v27, %v1301_v58  ;;  %v3374_v42 = vsel %vm639_vm11, %v1350_v37, %v1351_v50  ;;  %v1386_v34 = vstv %s3289_s1  ;;  %v1387_v52 = vstv %s3291_s2  ;;  %s3410_s1 = sld [smem:[#allocation8 + $0x2f]]  ;;  %s3412_s2 = sld [smem:[#allocation8 + $0x60]] }
 0x4a6   : > { %v3228_v39 = vadd.f32 %v1195_v6, %v3181_v22  ;;  %v3231_v23 = vadd.f32 %v1196_v56, %v3184_v26  ;;  %v1368_v6 = vstv %s3285_s25  ;;  %v1369_v56 = vstv %s3287_s0  ;;  %s3395_s0 = sld [smem:[#allocation8 + $0x53]] }
 0x4a7   : > { %v1325_v36 = vadd.s32 1, %v2965_v32  ;;  %v1508_v40 = vstv %s3301_s17  ;;  %v1509_v53 = vstv %s3303_s16  ;;  %v1404_v27 = vstv %s3305_s21  ;;  %s3542_s16 = sld [smem:[#allocation8 + $0x30]]  ;;  %s3625_s17 = sld [smem:[#allocation8 + $0x61]] }
 0x4a8   : > { %3983 = vst [vmem:[#allocation41_spill] sm:$0xff] %v3228_v39  ;;  %3984 = vst [vmem:[#allocation42_spill] sm:$0xff] %v3231_v23  ;;  %v3233_v0 = vpop.permute.xlu1 %1219  ;;  %v3235_v21 = vpop.permute.xlu0 %1221  ;;  %v1405_v58 = vstv %s3307_s18  ;;  %v1526_v37 = vstv %s3311_s28  ;;  %v1527_v50 = vstv %s3313_s15  ;;  %v1422_v39 = vstv %s3323_s10  ;;  %s3512_s15 = sld [smem:[#allocation8 + $0x5a]]  ;;  %s1876_s18 = sshll.u32 %s2246_s19, 10 }
 0x4a9   : > { %v1423_v19 = vstv %s3325_s14  ;;  %v1545_v18 = vstv %s3333_s30  ;;  %v1318_v15 = vstv %s3339_s22  ;;  %v1319_v16 = vstv %s3341_s5  ;;  %s4008_s21 = sshll.u32 %s2352_s6, 6  ;;  %s3754_s19 = scalar_lea.hbm %s3809_s4, %s1876_s18 }
 0x4aa   : > { %vm1329_vm3 = vcmp.lt.s32.totalorder %v1325_v36, 16  ;;  %vm1330_vm4 = vcmp.lt.s32.totalorder %v1326_v24, 16  ;;  %v3427_v13 = vsel %vm639_vm11, %v1490_v31, %v1491_v20  ;;  %v1225_v31 = vsel %vm1223_vm14, %v3235_v21, %v2718_v62  ;;  %s229_s24 = scalar_lea.vmem [#allocation9], %s4008_s21 }
 0x4ab   : > { %v1224_v21 = vsel %vm1223_vm14, %v2718_v62, %v3233_v0  ;;  %v1465_v62 = vadd.s32 2, %v2965_v32  ;;  %v1206_v0 = vsel %vm1205_vm15, %v2708_v59, %v3225_v57  ;;  %v1231_v24 = vmul.f32 %v3350_v30, %v1225_v31  ;;  %s1673_s28 = sshll.u32 %s229_s24, 4  ;;  %s3760_s28 = int_to_ptr.vmem [resolvable:$true] %s1673_s28 }
 0x4ac   : > { %v3237_v60 = vpop.permute.xlu1 %1239  ;;  %v3239_v49 = vpop.permute.xlu0 %1237  ;;  %v1563_v36 = vstv %s3395_s0  ;;  %v1459_v57 = vstv %s3412_s2  ;;  %vm1503_vm14 = vcmp.lt.s32.totalorder %v2415_v25, 29  ;;  %s2069_s11 = scalar_lea.vmem %s3760_s28, 1024  ;;  %p2076_p10 = scmp.lt.s32.totalorder %s3760_s28, %s2074_s20 }
 0x4ad   : > { %vm1469_vm10 = vcmp.lt.s32.totalorder %v1465_v62, 16  ;;  %p2070_p5 = scmp.ne.s32.totalorder %s3760_s28, %s2069_s11  ;;  %p2077_p1 = scmp.lt.s32.totalorder %s2075_s7, %s2069_s11 }
 0x4af   : > { %p2071_p8 = pnand %p2070_p5, %p4017_p12  ;;  %p2078_p4 = por %p2077_p1, %p2076_p10 }
 0x4b0   : > { %v3241_v38 = vpop.permute.xlu1 %1255  ;;  %v3243_v2 = vpop.permute.xlu0 %1257 }
 0x4b1   : > { %p2072_p9 = pneg %p2071_p8 }
 0x4b3   : > { %p2079_p11 = pnand %p2078_p4, %p2072_p9 }
 0x4b4   : > { %v3245_v54 = vpop.permute.xlu1 %1275  ;;  %v3247_v33 = vpop.permute.xlu0 %1273 }
 0x4b8   : > { %v3257_v22 = vpop.permute.xlu1 %1291  ;;  %v3259_v26 = vpop.permute.xlu0 %1293 }
 0x4bc   : > { %v3277_v43 = vpop.permute.xlu1 %1341  ;;  %v3279_v45 = vpop.permute.xlu0 %1343 }
 0x4bd   : > { %v1346_v62 = vsel %vm1345_vm7, %v2742_v12, %v3277_v43 }
 0x4c0   : > { %v3293_v55 = vpop.permute.xlu1 %1361  ;;  %v3295_v4 = vpop.permute.xlu0 %1359 }
 0x4c4   : > { %v3319_v41 = vpop.permute.xlu1 %1377  ;;  %v3321_v1 = vpop.permute.xlu0 %1379 }
 0x4c8   : > { %v3366_v29 = vpop.permute.xlu1 %1483  ;;  %v3378_v47 = vpop.permute.xlu0 %1481 }
 0x4c9   : > { %3985 = vst [vmem:[#allocation43_spill] sm:$0xff] %v3366_v29  ;;  %3986 = vst [vmem:[#allocation44_spill] sm:$0xff] %v3378_v47  ;;  %v1544_v29 = vstv %s3331_s12  ;;  %v3431_v47 = vsel %vm639_vm11, %v1508_v40, %v1509_v53  ;;  %v1441_v40 = vstv %s3386_s13  ;;  %v1562_v53 = vstv %s3388_s23 }
 0x4cc   : > { %v3397_v5 = vpop.permute.xlu1 %1499  ;;  %v3404_v23 = vpop.permute.xlu0 %1501 }
 0x4cd   : > { %3987 = vst [vmem:[#allocation45_spill] sm:$0xff] %v3397_v5  ;;  %3988 = vst [vmem:[#allocation46_spill] sm:$0xff] %v3404_v23  ;;  %v3419_v5 = vsel %vm639_vm11, %v1368_v6, %v1369_v56  ;;  %v3423_v23 = vsel %vm639_vm11, %v1386_v34, %v1387_v52  ;;  %v3438_v6 = vsel %vm639_vm11, %v1404_v27, %v1405_v58  ;;  %v1466_v58 = vadd.s32 2, %v2969_v17 }
 0x4ce   : > { %v3442_v56 = vsel %vm639_vm11, %v1526_v37, %v1527_v50  ;;  %v3446_v34 = vsel %vm639_vm11, %v1422_v39, %v1423_v19  ;;  %v3450_v52 = vsel %vm639_vm11, %v1544_v29, %v1545_v18  ;;  %v3462_v19 = vsel %vm639_vm11, %v1318_v15, %v1319_v16 }
 0x4cf   : > { %v3466_v39 = vsel %vm1329_vm3, 1.0, %v3980_v44  ;;  %v3470_v18 = vsel %vm1330_vm4, 1.0, %v3980_v44  ;;  %v1440_v29 = vstv %s3380_s29  ;;  %v1207_v15 = vsel %vm1205_vm15, %v3223_v48, %v2708_v59 }
 0x4d0   : > { %v3434_v7 = vpop.permute.xlu1 %1397  ;;  %v3458_v20 = vpop.permute.xlu0 %1395  ;;  %v1243_v16 = vsel %vm1241_vm0, %v3237_v60, %v2716_v61  ;;  %v1242_v48 = vsel %vm1241_vm0, %v2716_v61, %v3239_v49  ;;  %v1232_v60 = vmul.f32 %v3350_v30, %v1224_v21  ;;  %v3508_v50 = vsel %vm639_vm11, %v1440_v29, %v1441_v40 }
 0x4d1   : > { %v1458_v59 = vstv %s3410_s1  ;;  %v1213_v31 = vmul.f32 %v3345_v46, %v1207_v15  ;;  %v1249_v61 = vmul.f32 %v3356_v8, %v1243_v16  ;;  %v1261_v49 = vsel %vm1259_vm1, %v2726_v3, %v3241_v38 }
 0x4d2   : > { %v1260_v30 = vsel %vm1259_vm1, %v3241_v38, %v3243_v2  ;;  %v1214_v21 = vmul.f32 %v3345_v46, %v1206_v0  ;;  %v1250_v29 = vmul.f32 %v3356_v8, %v1242_v48  ;;  %v3529_v40 = vsel %vm639_vm11, %v1562_v53, %v1563_v36 }
 0x4d3   : > { %v1233_v15 = vadd.f32 %v1231_v24, %v1213_v31  ;;  %v1279_v3 = vsel %vm1277_vm2, %v2724_v63, %v3247_v33  ;;  %v3540_v2 = vsel %vm639_vm11, %v1458_v59, %v1459_v57  ;;  %vm1470_vm13 = vcmp.lt.s32.totalorder %v1466_v58, 16 }
 0x4d4   : > { %v3500_v27 = vpop.permute.xlu1 %1517  ;;  %v3504_v37 = vpop.permute.xlu0 %1519  ;;  %v1234_v46 = vadd.f32 %v1232_v60, %v1214_v21  ;;  %v1267_v8 = vmul.f32 %v3360_v51, %v1261_v49  ;;  %v1268_v53 = vmul.f32 %v3360_v51, %v1260_v30  ;;  %v1278_v63 = vsel %vm1277_vm2, %v3247_v33, %v3245_v54 }
 0x4d5   : > { %vm1399_vm15 = vcmp.lt.s32.totalorder %v2415_v25, 126  ;;  %v1251_v36 = vadd.f32 %v1249_v61, %v1233_v15  ;;  %v1364_v0 = vsel %vm1363_vm5, %v2740_v11, %v3295_v4  ;;  %vm1417_vm0 = vcmp.lt.s32.totalorder %v2415_v25, 110 }
 0x4d6   : > { %v3561_v51 = vsel %vm1469_vm10, 1.0, %v3980_v44  ;;  %v1580_v54 = vstv %s3479_s3  ;;  %v1252_v33 = vadd.f32 %v1250_v29, %v1234_v46  ;;  %v1285_v24 = vmul.f32 %v3364_v35, %v1279_v3 }
 0x4d7   : > { %v1297_v48 = vsel %vm1295_vm6, %v2734_v10, %v3257_v22  ;;  %v1296_v4 = vsel %vm1295_vm6, %v3257_v22, %v3259_v26  ;;  %v1286_v60 = vmul.f32 %v3364_v35, %v1278_v63  ;;  %v1365_v59 = vsel %vm1363_vm5, %v3293_v55, %v2740_v11 }
 0x4d8   : > { %v3536_v38 = vpop.permute.xlu1 %1415  ;;  %v3552_v16 = vpop.permute.xlu0 %1413  ;;  %v1382_v10 = vsel %vm1381_vm8, %v2750_v14, %v3319_v41  ;;  %v1269_v22 = vadd.f32 %v1267_v8, %v1251_v36  ;;  %v1270_v26 = vadd.f32 %v1268_v53, %v1252_v33  ;;  %v1372_v35 = vmul.f32 %v3419_v5, %v1364_v0  ;;  %v3990_v33 = vld [vmem:[#allocation44_spill] sm:$0xff] }
 0x4d9   : > { %vm1521_vm1 = vcmp.lt.s32.totalorder %v2415_v25, 13  ;;  %v1581_v31 = vstv %s3512_s15  ;;  %v1303_v61 = vmul.f32 %v3370_v9, %v1297_v48  ;;  %v1304_v11 = vmul.f32 %v3370_v9, %v1296_v4  ;;  %v3992_v4 = vld [vmem:[#allocation45_spill] sm:$0xff] }
 0x4da   : > { %v1347_v55 = vsel %vm1345_vm7, %v3279_v45, %v2742_v12  ;;  %v1383_v41 = vsel %vm1381_vm8, %v3321_v1, %v2750_v14  ;;  %vm1435_vm2 = vcmp.lt.s32.totalorder %v2415_v25, 94  ;;  %v1354_v49 = vmul.f32 %v3374_v42, %v1346_v62 }
 0x4db   : > { %v1371_v30 = vmul.f32 %v3419_v5, %v1365_v59  ;;  %v1390_v21 = vmul.f32 %v3423_v23, %v1382_v10  ;;  %v3609_v9 = vsel %vm1470_vm13, 1.0, %v3980_v44  ;;  %v1287_v29 = vadd.f32 %v1285_v24, %v1269_v22  ;;  %v3989_v5 = vld [vmem:[#allocation29_spill] sm:$0xff]  ;;  %v3994_v10 = vld [vmem:[#allocation31_spill] sm:$0xff] }
 0x4dc   : > { %v3586_v57 = vpop.permute.xlu1 %1535  ;;  %v3590_v43 = vpop.permute.xlu0 %1537  ;;  %v1288_v15 = vadd.f32 %v1286_v60, %v1270_v26  ;;  %v3613_v45 = vsel %vm639_vm11, %v1580_v54, %v1581_v31  ;;  %v1598_v14 = vstv %s3542_s16  ;;  %v1353_v1 = vmul.f32 %v3374_v42, %v1347_v55  ;;  %v3993_v60 = vld [vmem:[#allocation32_spill] sm:$0xff]  ;;  %v3995_v31 = vld [vmem:[#allocation46_spill] sm:$0xff] }
 0x4dd   : > { %v1374_v3 = vadd.f32 %v1372_v35, %v1354_v49  ;;  %v1389_v46 = vmul.f32 %v3423_v23, %v1383_v41  ;;  %vm1539_vm3 = vcmp.lt.s32.totalorder %v2415_v25, 125  ;;  %v1305_v53 = vadd.f32 %v1303_v61, %v1287_v29  ;;  %v3991_v23 = vld [vmem:[#allocation30_spill] sm:$0xff]  ;;  %v3997_v49 = vld [vmem:[#allocation43_spill] sm:$0xff] }
 0x4de   : > { %v1306_v63 = vadd.f32 %v1304_v11, %v1288_v15  ;;  %v1373_v42 = vadd.f32 %v1371_v30, %v1353_v1  ;;  %v1486_v24 = vsel %vm1485_vm12, %v3991_v23, %v3990_v33  ;;  %vm1557_vm4 = vcmp.lt.s32.totalorder %v2415_v25, 109  ;;  %v3996_v11 = vld [vmem:[#allocation33_spill] sm:$0xff] }
 0x4df   : > { %v1392_v54 = vadd.f32 %v1390_v21, %v1374_v3  ;;  %vm1453_vm5 = vcmp.lt.s32.totalorder %v2415_v25, 78  ;;  %v1504_v62 = vsel %vm1503_vm14, %v3993_v60, %v3992_v4  ;;  %v1400_v59 = vsel %vm1399_vm15, %v3458_v20, %v3434_v7 }
 0x4e0   : > { %v1310_v12 = vpop.permute.xlu1 %1309  ;;  %v1312_v8 = vpop.permute.xlu0 %1311  ;;  %v1401_v22 = vsel %vm1399_vm15, %v3994_v10, %v3458_v20  ;;  %v1391_v35 = vadd.f32 %v1389_v46, %v1373_v42  ;;  %v1505_v61 = vsel %vm1503_vm14, %v3995_v31, %v3993_v60  ;;  %v1419_v55 = vsel %vm1417_vm0, %v3996_v11, %v3552_v16  ;;  %v4002_v60 = vld [vmem:[#allocation36_spill] sm:$0xff] }
 0x4e1   : > { %v1315_v58 = vsel %vm1313_vm9, %v3989_v5, %v1310_v12  ;;  %v1314_v0 = vsel %vm1313_vm9, %v1310_v12, %v1312_v8  ;;  %v1487_v20 = vsel %vm1485_vm12, %v3997_v49, %v3991_v23  ;;  %v1494_v30 = vmul.f32 %v3427_v13, %v1486_v24  ;;  %v3998_v5 = vld [vmem:[#allocation34_spill] sm:$0xff] }
 0x4e2   : > { %v1321_v36 = vmul.f32 %v3462_v19, %v1315_v58  ;;  %v1322_v48 = vmul.f32 %v3462_v19, %v1314_v0  ;;  %v1418_v21 = vsel %vm1417_vm0, %v3552_v16, %v3536_v38  ;;  %vm1575_vm6 = vcmp.lt.s32.totalorder %v2415_v25, 93  ;;  %v3999_v16 = vld [vmem:[#allocation41_spill] sm:$0xff] }
 0x4e3   : > { %v1512_v15 = vmul.f32 %v3431_v47, %v1504_v62  ;;  %v1407_v12 = vmul.f32 %v3438_v6, %v1401_v22  ;;  %v1408_v1 = vmul.f32 %v3438_v6, %v1400_v59  ;;  %v1511_v46 = vmul.f32 %v3431_v47, %v1505_v61  ;;  %v4001_v47 = vld [vmem:[#allocation35_spill] sm:$0xff] }
 0x4e4   : > { %v1323_v19 = vadd.f32 %v1321_v36, %v1305_v53  ;;  %v1434_v26 = vpop.permute.xlu1 %1433  ;;  %v1324_v41 = vadd.f32 %v1322_v48, %v1306_v63  ;;  %v1432_v7 = vpop.permute.xlu0 %1431  ;;  %v1522_v38 = vsel %vm1521_vm1, %v3998_v5, %v3500_v27  ;;  %v1426_v53 = vmul.f32 %v3446_v34, %v1418_v21  ;;  %v4000_v63 = vld [vmem:[#allocation42_spill] sm:$0xff] }
 0x4e5   : > { %v1436_v6 = vsel %vm1435_vm2, %v1432_v7, %v1434_v26  ;;  %v1493_v27 = vmul.f32 %v3427_v13, %v1487_v20  ;;  %v1523_v42 = vsel %vm1521_vm1, %v3504_v37, %v3998_v5  ;;  %v1599_v33 = vstv %s3625_s17 }
 0x4e6   : > { %v1335_v29 = vmul.f32 %v3466_v39, %v1323_v19  ;;  %v1336_v3 = vmul.f32 %v3470_v18, %v1324_v41  ;;  %v1425_v39 = vmul.f32 %v3446_v34, %v1419_v55  ;;  %v1437_v18 = vsel %vm1435_vm2, %v4001_v47, %v1432_v7 }
 0x4e7   : > { %v1605_v34 = vadd.s32 3, %v2965_v32  ;;  %v1514_v23 = vadd.f32 %v1512_v15, %v1494_v30  ;;  %v1409_v24 = vadd.f32 %v1407_v12, %v1391_v35  ;;  %v1410_v48 = vadd.f32 %v1408_v1, %v1392_v54  ;;  %v4003_v35 = vld [vmem:[#allocation38_spill] sm:$0xff]  ;;  %v4005_v1 = vld [vmem:[#allocation40_spill] sm:$0xff] }
 0x4e8   : > { %v3676_v58 = vadd.f32 %v1335_v29, %v3999_v16  ;;  %v1554_v8 = vpop.permute.xlu1 %1553  ;;  %v3680_v36 = vadd.f32 %v1336_v3, %v4000_v63  ;;  %v1556_v0 = vpop.permute.xlu0 %1555  ;;  %v1530_v4 = vmul.f32 %v3442_v56, %v1522_v38  ;;  %v1541_v62 = vsel %vm1539_vm3, %v4002_v60, %v3586_v57 }
 0x4e9   : > { %v1540_v13 = vsel %vm1539_vm3, %v3586_v57, %v3590_v43  ;;  %v1443_v37 = vmul.f32 %v3508_v50, %v1437_v18  ;;  %v1444_v59 = vmul.f32 %v3508_v50, %v1436_v6  ;;  %v1513_v10 = vadd.f32 %v1511_v46, %v1493_v27  ;;  %v4004_v43 = vld [vmem:[#allocation37_spill] sm:$0xff] }
 0x4ea   : > { %v1529_v54 = vmul.f32 %v3442_v56, %v1523_v42  ;;  %v1427_v22 = vadd.f32 %v1425_v39, %v1409_v24  ;;  %v1428_v19 = vadd.f32 %v1426_v53, %v1410_v48  ;;  %v1559_v31 = vsel %vm1557_vm4, %v4003_v35, %v1554_v8 }
 0x4eb   : > { %v1558_v61 = vsel %vm1557_vm4, %v1554_v8, %v1556_v0  ;;  %v1547_v11 = vmul.f32 %v3450_v52, %v1541_v62  ;;  %v1548_v56 = vmul.f32 %v3450_v52, %v1540_v13  ;;  %v1532_v7 = vadd.f32 %v1530_v4, %v1514_v23  ;;  %v4006_v0 = vld [vmem:[#allocation39_spill] sm:$0xff] }
 0x4ec   : > { %v1452_v32 = vpop.permute.xlu1 %1451  ;;  %v1450_v26 = vpop.permute.xlu0 %1449  ;;  %v1445_v49 = vadd.f32 %v1443_v37, %v1427_v22  ;;  %v1446_v20 = vadd.f32 %v1444_v59, %v1428_v19  ;;  %v1606_v21 = vadd.s32 3, %v2969_v17  ;;  %v1531_v29 = vadd.f32 %v1529_v54, %v1513_v10  ;;  %v4007_v10 = vld [vmem:[#allocation20_spill] sm:$0xff]  ;;  %v4009_v22 = vld [vmem:[#allocation23_spill] sm:$0xff] }
 0x4ed   : > { %v1454_v57 = vsel %vm1453_vm5, %v1450_v26, %v1452_v32  ;;  %v1455_v50 = vsel %vm1453_vm5, %v4004_v43, %v1450_v26  ;;  %v1565_v15 = vmul.f32 %v3529_v40, %v1559_v31  ;;  %v1566_v12 = vmul.f32 %v3529_v40, %v1558_v61  ;;  %v4010_v19 = vld [vmem:[#allocation24_spill] sm:$0xff]  ;;  %v4011_v26 = vld [vmem:[#allocation21_spill] sm:$0xff]  ;;  %v4012_v31 = vld [vmem:[#allocation22_spill] sm:$0xff] }
 0x4ee   : > { %v1461_v55 = vmul.f32 %v3540_v2, %v1455_v50  ;;  %v1462_v41 = vmul.f32 %v3540_v2, %v1454_v57  ;;  %vm1593_vm7 = vcmp.lt.s32.totalorder %v2415_v25, 77  ;;  %v1549_v38 = vadd.f32 %v1547_v11, %v1531_v29  ;;  %v4013_v57 = vld [vmem:[#allocation25_spill] sm:$0xff]  ;;  %v4014_v50 = vld [vmem:[#allocation26_spill] sm:$0xff] }
 0x4ef   : > { %v1550_v39 = vadd.f32 %v1548_v56, %v1532_v7  ;;  %v1600_v40 = vsel %vm639_vm11, %v1598_v14, %v1599_v33  ;;  %vm1609_vm8 = vcmp.lt.s32.totalorder %v1605_v34, 16  ;;  %vm1610_vm9 = vcmp.lt.s32.totalorder %v1606_v21, 16  ;;  %v4015_v56 = vld [vmem:[#allocation27_spill] sm:$0xff] }
 0x4f0   : > { %v1572_v30 = vpop.permute.xlu1 %1571  ;;  %v1574_v3 = vpop.permute.xlu0 %1573  ;;  %v1463_v46 = vadd.f32 %v1461_v55, %v1445_v49  ;;  %v1464_v5 = vadd.f32 %v1462_v41, %v1446_v20  ;;  %v1567_v53 = vadd.f32 %v1565_v15, %v1549_v38  ;;  %v1613_v28 = vsel %vm1609_vm8, 1.0, %v3980_v44  ;;  %v4016_v41 = vld [vmem:[#allocation28_spill] sm:$0xff] }
 0x4f1   : > { %v1577_v52 = vsel %vm1575_vm6, %v4005_v1, %v1572_v30  ;;  %v1576_v2 = vsel %vm1575_vm6, %v1572_v30, %v1574_v3  ;;  %v1568_v63 = vadd.f32 %v1566_v12, %v1550_v39  ;;  %v1614_v14 = vsel %vm1610_vm9, 1.0, %v3980_v44 }
 0x4f2   : > { %v1583_v17 = vmul.f32 %v3613_v45, %v1577_v52  ;;  %v1584_v16 = vmul.f32 %v3613_v45, %v1576_v2  ;;  %v1475_v47 = vmul.f32 %v3561_v51, %v1463_v46  ;;  %v1476_v25 = vmul.f32 %v3609_v9, %v1464_v5 }
 0x4f4   : > { %v1592_v8 = vpop.permute.xlu1 %1591  ;;  %v1590_v6 = vpop.permute.xlu0 %1589  ;;  %v1585_v42 = vadd.f32 %v1583_v17, %v1567_v53  ;;  %v1586_v23 = vadd.f32 %v1584_v16, %v1568_v63  ;;  %v1477_v48 = vadd.f32 %v1475_v47, %v3676_v58  ;;  %v1478_v51 = vadd.f32 %v1476_v25, %v3680_v36 }
 0x4f5   : > { %v1594_v18 = vsel %vm1593_vm7, %v1590_v6, %v1592_v8  ;;  %v1595_v27 = vsel %vm1593_vm7, %v4006_v0, %v1590_v6 }
 0x4f6   : > { %v1601_v45 = vmul.f32 %v1600_v40, %v1595_v27  ;;  %v1602_v24 = vmul.f32 %v1600_v40, %v1594_v18 }
 0x4f8   : > { %v1603_v33 = vadd.f32 %v1601_v45, %v1585_v42  ;;  %v1604_v34 = vadd.f32 %v1602_v24, %v1586_v23 }
 0x4fa   : > { %v1615_v9 = vmul.f32 %v1613_v28, %v1603_v33  ;;  %v1616_v4 = vmul.f32 %v1614_v14, %v1604_v34 }
 0x4fc   : > { %v1617_v60 = vadd.f32 %v1615_v9, %v1477_v48  ;;  %v1618_v62 = vadd.f32 %v1616_v4, %v1478_v51 }
 0x4fe   : > { %v1621_v13 = vrot.slane %v1617_v60, 1  ;;  %v1622_v37 = vrot.slane %v1618_v62, 1 }
 0x500   : > { %v1625_v59 = vadd.f32 %v1621_v13, %v1617_v60  ;;  %v1626_v32 = vadd.f32 %v1622_v37, %v1618_v62 }
 0x502   : > { %v1638_v54 = vrot.slane %v1625_v59, %v4007_v10  ;;  %v1642_v44 = vrot.slane %v1626_v32, %v4007_v10 }
 0x504   : > { %v1643_v58 = vmul.f32 %v1638_v54, %v4009_v22  ;;  %v1644_v36 = vmul.f32 %v1642_v44, %v4010_v19  ;;  %v1645_v35 = vmul.f32 %v1638_v54, %v4011_v26  ;;  %v1646_v61 = vmul.f32 %v1642_v44, %v4012_v31 }
 0x505   : > { %v1647_v43 = vmul.f32 %v1638_v54, %v4013_v57  ;;  %v1648_v11 = vmul.f32 %v1642_v44, %v4014_v50  ;;  %v1649_v55 = vmul.f32 %v1638_v54, %v4015_v56  ;;  %v1650_v7 = vmul.f32 %v1642_v44, %v4016_v41 }
 0x506   : > { %1651 = vst [vmem:[%s229_s24] sm:$0xff] %v1643_v58  ;;  %1652 = vst [vmem:[%s229_s24 + $0x8] sm:$0xff] %v1644_v36 }
 0x507   : > { %1653 = vst [vmem:[%s229_s24 + $0x10] sm:$0xff] %v1645_v35  ;;  %1654 = vst [vmem:[%s229_s24 + $0x18] sm:$0xff] %v1646_v61 }
 0x508   : > { %1655 = vst [vmem:[%s229_s24 + $0x20] sm:$0xff] %v1647_v43  ;;  %1656 = vst [vmem:[%s229_s24 + $0x28] sm:$0xff] %v1648_v11 }
 0x509   : > { %1657 = vst [vmem:[%s229_s24 + $0x30] sm:$0xff] %v1649_v55  ;;  %1658 = vst [vmem:[%s229_s24 + $0x38] sm:$0xff] %v1650_v7 }
 0x50a   : > { %2082 = shalt.err (!%p2079_p11)
}
 0x50b   : > { %s2083_s25 = scalar_lea.hbm %s3754_s19, 1024  ;;  %s2087_s30 = scalar_lea.hbm %s3809_s4, 2048 }
 0x50c   : > { %p2084_p0 = scmp.ne.s32.totalorder %s3754_s19, %s2083_s25  ;;  %p2088_p6 = scmp.lt.u32.totalorder %s3754_s19, %s3809_s4 }
 0x50d   : > { %p2089_p3 = scmp.lt.u32.totalorder %s2087_s30, %s2083_s25  ;;  %p2091_p5 = scmp.lt.u32.totalorder %s2083_s25, %s3754_s19 }
 0x50e   : > { %p2085_p2 = pnand %p2084_p0, %p4017_p12 }
 0x50f   : > { %p2090_p13 = por %p2089_p3, %p2088_p6 }
 0x510   : > { %p2086_p7 = pneg %p2085_p2 }
 0x511   : > { %p2092_p8 = por %p2091_p5, %p2090_p13 }
 0x513   : > { %p2093_p9 = pnand %p2092_p8, %p2086_p7 }
 0x515   : > { %2096 = shalt.err (!%p2093_p9)
}
 0x516   : > { %s2199_s29 = smov 256   ;;  %s4018_s13 = smov 16  }
 0x517   : > { %1912 = dma.vmem_to_hbm [thread:$0]  (%p4017_p12), %s3760_s28, 1024, %s3754_s19, %s1660_s9, %s2199_s29, %s2199_s29, %s4018_s13  }
 0x518 PF: > { %s4019_s23 = sld [smem:[#allocation13_spill]]  ;;  %s4020_s0 = sld [smem:[#allocation19_spill]] }
 0x519   : > { %s4021_s1 = sld [smem:[#allocation16_spill]] }
 0x51e   : > { %s1688_s2 = sand.u32 1, %s4019_s23   ;;  %p4022_p10 = scmp.ne.s32.totalorder %s4020_s0, 0 }
 0x51f   : > { %p4023_p1 = scmp.ge.s32.totalorder %s4021_s1, 2  ;;  %s1689_s3 = scalar_lea.sflag [#allocation6], %s1688_s2 }
 0x521   : > { %p1923_p4 = pnand %p4023_p1, %p4022_p10 }
 0x523   : > { %2122 = dma.done.wait (!%p1923_p4), %s1689_s3, 1024  }
 0x524   : > { %2124 = vsyncadd (!%p1923_p4), %s1689_s3, 4294966272  ;;  %s4024_s18 = sld [smem:[#allocation17_spill]]  ;;  %s4025_s15 = sld [smem:[#allocation14_spill]] }
 0x525   : > { %s4026_s16 = sld [smem:[#allocation15_spill]]  ;;  %s4027_s17 = sld [smem:[#allocation18_spill]] }
 0x52a   : > { %p18_p11 = scmp.ge.s32.totalorder %s4024_s18, 4  }
 0x52c   :  { %20 = sbr.rel (!%p18_p11) target bundleno = 11 (0xb), region = 87 }
 0x533   :  { %1694 = vsyncpa [#allocation5], 1 }
 0x534   :  { %1696 = vsyncpa [#allocation5 + $0x1], 1 }
 0x535   :  { %1697 = vsyncpa [#allocation6], 1 }
 0x536   :  { %1699 = vsyncpa [#allocation6 + $0x1], 1 }
 0x537   :  { %1700 = vsyncpa [#allocation7], 1 }
 0x538   :  { %1702 = vsyncpa [#allocation7 + $0x1], 1 }

</bundles_post_ra>
